<compile_context>
chip_gen: v7x
topology: tpu7x:2x2x1
jax: 0.10.0
libtpu: 0.0.40
codegen_flags: <defaults>
</compile_context>

<pallas_src>
import functools

import jax
import jax.numpy as jnp
from jax.experimental import pallas as pl
from jax.experimental.pallas import tpu as pltpu

SKIP_WINDOW = 70000  # the PyTorch module keeps only the last 70000 skip steps


# --------------------------------------------------------------------------------------
# Fused WaveNetBlock kernel (one (batch, time-tile) grid cell per invocation).
# All tensors inside the kernel are channels-first (C, TL): channels on sublanes,
# time on lanes.
# --------------------------------------------------------------------------------------
def _wavenet_block_kernel(x0_ref, x1_ref, wd0_ref, wd1_ref, wskip_ref, wres_ref,
                          bskip_ref, bres_ref, res_ref, skip_ref):
    x0 = x0_ref[0]                       # (C, TL) f32, tap 0: x[:, :, t]
    x1 = x1_ref[0]                       # (C, TL) f32, tap 1: x[:, :, t + dilation]
    #                                      (x1 is also exactly the residual input)

    # Dilated causal conv: two small K=16 MXU dots (bf16 in, f32 acc) accumulated in
    # f32 — avoids materializing a (2C, TL) concat temp every step.
    pre = (jnp.dot(wd0_ref[...], x0.astype(jnp.bfloat16),
                   preferred_element_type=jnp.float32)
           + jnp.dot(wd1_ref[...], x1.astype(jnp.bfloat16),
                     preferred_element_type=jnp.float32))              # (C, TL) f32

    # Gated activation on lane-dense vregs (EUP tanh/exp, VPU multiply).
    act = jnp.tanh(pre) * jax.nn.sigmoid(pre)                          # (C, TL) f32
    act_bf = act.astype(jnp.bfloat16)

    # 1x1 skip conv -> streamed straight into the skip output store.
    skip_ref[0] = (jnp.dot(wskip_ref[...], act_bf,
                           preferred_element_type=jnp.float32)
                   + bskip_ref[...])                                   # (S, TL)

    # 1x1 residual conv + residual add (f32).
    res_ref[0] = (jnp.dot(wres_ref[...], act_bf,
                          preferred_element_type=jnp.float32)
                  + bres_ref[...] + x1)                                # (C, TL)


def wavenet_block_forward(x, params, *, dilation, time_tile=2048,
                          vmem_limit_bytes=32 * 1024 * 1024):
    """x: (B, C, T) float32 (PyTorch NCT). Returns (out (B,C,L), skip (B,S,min(L,70000)))."""
    x = x.astype(jnp.float32)
    B, C, T = x.shape
    S = params['w_skip'].shape[0]
    L = T - dilation                      # valid output length of the k=2 dilated conv
    assert L > 0, "sequence too short for this dilation"

    # Time-tile: keep the lane dim a multiple of 128; shrink for short sequences.
    tl = max(128, min(time_tile, ((L + 127) // 128) * 128))
    nt = pl.cdiv(L, tl)                   # ragged trailing block is masked by Pallas

    # Tap 1 / residual input x[:, :, dilation:] (length L).  This is the only
    # host-side materialization; tap 0 reads the original x directly (tile i of x is
    # exactly x[:, :, i*tl : i*tl+tl]).
    xb = x[:, :, dilation:]

    wd0 = params['w_dil'][:, :, 0].astype(jnp.bfloat16)                 # (C, C)
    wd1 = params['w_dil'][:, :, 1].astype(jnp.bfloat16)                 # (C, C)
    wsk = params['w_skip'].astype(jnp.bfloat16)                         # (S, C)
    wrs = params['w_res'].astype(jnp.bfloat16)                          # (C, C)
    bsk = params['b_skip'].astype(jnp.float32)[:, None]                 # (S, 1)
    brs = params['b_res'].astype(jnp.float32)[:, None]                  # (C, 1)

    res, skip = pl.pallas_call(
        _wavenet_block_kernel,
        grid=(B, nt),
        out_shape=(jax.ShapeDtypeStruct((B, C, L), jnp.float32),
                   jax.ShapeDtypeStruct((B, S, L), jnp.float32)),
        in_specs=[
            pl.BlockSpec((1, C, tl), lambda b, i: (b, 0, i)),   # tap 0 tile (from x)
            pl.BlockSpec((1, C, tl), lambda b, i: (b, 0, i)),   # tap 1 / residual tile
            pl.BlockSpec(wd0.shape, lambda b, i: (0, 0)),       # dilated-conv tap-0 W
            pl.BlockSpec(wd1.shape, lambda b, i: (0, 0)),       # dilated-conv tap-1 W
            pl.BlockSpec(wsk.shape, lambda b, i: (0, 0)),       # skip 1x1 W
            pl.BlockSpec(wrs.shape, lambda b, i: (0, 0)),       # residual 1x1 W
            pl.BlockSpec(bsk.shape, lambda b, i: (0, 0)),       # skip bias
            pl.BlockSpec(brs.shape, lambda b, i: (0, 0)),       # residual bias
        ],
        out_specs=(pl.BlockSpec((1, C, tl), lambda b, i: (b, 0, i)),
                   pl.BlockSpec((1, S, tl), lambda b, i: (b, 0, i))),
        compiler_params=pltpu.CompilerParams(
            dimension_semantics=("parallel", "parallel"),
            vmem_limit_bytes=vmem_limit_bytes),
    )(x, xb, wd0, wd1, wsk, wrs, bsk, brs)

    # PyTorch: skip_out[:, :, -70000:] — only a real op when L > 70000.
    # TODO(synk): for L >> 70000, give the skip output a windowed out_shape so the
    # out-of-window tiles are never written to HBM at all.
    if L > SKIP_WINDOW:
        skip = skip[:, :, -SKIP_WINDOW:]
    return res, skip


# --------------------------------------------------------------------------------------
# Pure-JAX f32 reference (mirrors the PyTorch forward exactly) + synthetic params.
# --------------------------------------------------------------------------------------
def wavenet_block_ref(x, p, dilation):
    x = x.astype(jnp.float32)
    xa = x[:, :, :x.shape[2] - dilation]
    xb = x[:, :, dilation:]
    pre = (jnp.einsum('oi,bit->bot', p['w_dil'][:, :, 0], xa)
           + jnp.einsum('oi,bit->bot', p['w_dil'][:, :, 1], xb))
    act = jnp.tanh(pre) * jax.nn.sigmoid(pre)
    res = jnp.einsum('oi,bit->bot', p['w_res'], act) + p['b_res'][None, :, None] + xb
    skip = jnp.einsum('oi,bit->bot', p['w_skip'], act) + p['b_skip'][None, :, None]
    return res, skip[:, :, -SKIP_WINDOW:]


def init_params(key, hidden=16, skip=256):
    k = jax.random.split(key, 5)
    return {
        'w_dil': 0.1 * jax.random.normal(k[0], (hidden, hidden, 2), jnp.float32),
        'w_res': 0.1 * jax.random.normal(k[1], (hidden, hidden), jnp.float32),
        'b_res': 0.01 * jax.random.normal(k[2], (hidden,), jnp.float32),
        'w_skip': 0.1 * jax.random.normal(k[3], (skip, hidden), jnp.float32),
        'b_skip': 0.01 * jax.random.normal(k[4], (skip,), jnp.float32),
    }


if __name__ == "__main__":
    key = jax.random.PRNGKey(0)
    kx, kp = jax.random.split(key)

    B, HIDDEN, SKIP_CH = 2, 16, 256       # module defaults: hidden=16, skip=256
    DILATION = 4
    L = 2432                              # small test length; exercises the ragged tile
    T = L + DILATION

    x = jax.random.normal(kx, (B, HIDDEN, T), jnp.float32)   # PyTorch NCT layout
    params = init_params(kp, HIDDEN, SKIP_CH)

    fwd = jax.jit(functools.partial(wavenet_block_forward, dilation=DILATION))
    out, skip = fwd(x, params)
    out = jax.block_until_ready(out)
    skip = jax.block_until_ready(skip)

    out_ref, skip_ref = wavenet_block_ref(x, params, DILATION)

    assert out.shape == (B, HIDDEN, L), out.shape
    assert skip.shape == (B, SKIP_CH, min(L, SKIP_WINDOW)), skip.shape
    assert bool(jnp.isfinite(out).all()) and bool(jnp.isfinite(skip).all())
    # bf16 MXU operands with f32 accumulation -> loose-but-tight-enough tolerance.
    assert bool(jnp.allclose(out, out_ref, atol=5e-2, rtol=5e-2))
    assert bool(jnp.allclose(skip, skip_ref, atol=5e-2, rtol=5e-2))
    print("KERNEL_OK")
</pallas_src>

<mosaic_0001>
module attributes {stable_mosaic.version = 11 : i64} {
  func.func @_wavenet_block_kernel(%arg0: i32, %arg1: i32, %arg2: memref<1x16x2048xf32, #tpu.memory_space<vmem>>, %arg3: memref<1x16x2048xf32, #tpu.memory_space<vmem>>, %arg4: memref<16x16xbf16, #tpu.memory_space<vmem>>, %arg5: memref<16x16xbf16, #tpu.memory_space<vmem>>, %arg6: memref<256x16xbf16, #tpu.memory_space<vmem>>, %arg7: memref<16x16xbf16, #tpu.memory_space<vmem>>, %arg8: memref<256x1xf32, #tpu.memory_space<vmem>>, %arg9: memref<16x1xf32, #tpu.memory_space<vmem>>, %arg10: memref<1x16x2048xf32, #tpu.memory_space<vmem>>, %arg11: memref<1x256x2048xf32, #tpu.memory_space<vmem>>) attributes {dimension_semantics = [#tpu.dimension_semantics<parallel>, #tpu.dimension_semantics<parallel>], iteration_bounds = array<i64: 2, 2>, scalar_prefetch = 0 : i64, scratch_operands = 0 : i64, tpu.core_type = #tpu.core_type<tc>, window_params = [{transform_indices = @transform_0, window_bounds = array<i64: 1, 16, 2048>}, {transform_indices = @transform_1, window_bounds = array<i64: 1, 16, 2048>}, {pipeline_mode = #tpu.pipeline_mode<synchronous>, transform_indices = @transform_2, window_bounds = array<i64: 16, 16>}, {pipeline_mode = #tpu.pipeline_mode<synchronous>, transform_indices = @transform_3, window_bounds = array<i64: 16, 16>}, {pipeline_mode = #tpu.pipeline_mode<synchronous>, transform_indices = @transform_4, window_bounds = array<i64: 256, 16>}, {pipeline_mode = #tpu.pipeline_mode<synchronous>, transform_indices = @transform_5, window_bounds = array<i64: 16, 16>}, {pipeline_mode = #tpu.pipeline_mode<synchronous>, transform_indices = @transform_6, window_bounds = array<i64: 256, 1>}, {pipeline_mode = #tpu.pipeline_mode<synchronous>, transform_indices = @transform_7, window_bounds = array<i64: 16, 1>}, {transform_indices = @transform_8, window_bounds = array<i64: 1, 16, 2048>}, {transform_indices = @transform_9, window_bounds = array<i64: 1, 256, 2048>}]} {
    %c0 = arith.constant 0 : index
    %c0_0 = arith.constant 0 : index
    %c0_1 = arith.constant 0 : index
    %0 = vector.load %arg2[%c0, %c0_0, %c0_1] : memref<1x16x2048xf32, #tpu.memory_space<vmem>>, vector<1x16x2048xf32>
    %1 = vector.shape_cast %0 : vector<1x16x2048xf32> to vector<16x2048xf32>
    %c0_2 = arith.constant 0 : index
    %c0_3 = arith.constant 0 : index
    %c0_4 = arith.constant 0 : index
    %2 = vector.load %arg3[%c0_2, %c0_3, %c0_4] : memref<1x16x2048xf32, #tpu.memory_space<vmem>>, vector<1x16x2048xf32>
    %3 = vector.shape_cast %2 : vector<1x16x2048xf32> to vector<16x2048xf32>
    %c0_5 = arith.constant 0 : index
    %c0_6 = arith.constant 0 : index
    %4 = vector.load %arg4[%c0_5, %c0_6] : memref<16x16xbf16, #tpu.memory_space<vmem>>, vector<16x16xbf16>
    %5 = arith.truncf %1 : vector<16x2048xf32> to vector<16x2048xbf16>
    %cst = arith.constant dense<0.000000e+00> : vector<16x2048xf32>
    %6 = tpu.matmul %4, %5, %cst {dimension_numbers = #tpu.dot_dimension_numbers<[1], [0], [0], [1], [0, 0, 1, 1], [], []>} : vector<16x16xbf16>, vector<16x2048xbf16>, vector<16x2048xf32> -> vector<16x2048xf32>
    %c0_7 = arith.constant 0 : index
    %c0_8 = arith.constant 0 : index
    %7 = vector.load %arg5[%c0_7, %c0_8] : memref<16x16xbf16, #tpu.memory_space<vmem>>, vector<16x16xbf16>
    %8 = arith.truncf %3 : vector<16x2048xf32> to vector<16x2048xbf16>
    %cst_9 = arith.constant dense<0.000000e+00> : vector<16x2048xf32>
    %9 = tpu.matmul %7, %8, %cst_9 {dimension_numbers = #tpu.dot_dimension_numbers<[1], [0], [0], [1], [0, 0, 1, 1], [], []>} : vector<16x16xbf16>, vector<16x2048xbf16>, vector<16x2048xf32> -> vector<16x2048xf32>
    %10 = arith.addf %6, %9 : vector<16x2048xf32>
    %11 = math.tanh %10 : vector<16x2048xf32>
    %12 = arith.negf %10 : vector<16x2048xf32>
    %13 = math.exp %12 : vector<16x2048xf32>
    %cst_10 = arith.constant 1.000000e+00 : f32
    %14 = vector.broadcast %cst_10 : f32 to vector<16x2048xf32>
    %15 = arith.addf %14, %13 : vector<16x2048xf32>
    %16 = arith.divf %14, %15 : vector<16x2048xf32>
    %17 = arith.mulf %11, %16 : vector<16x2048xf32>
    %18 = arith.truncf %17 : vector<16x2048xf32> to vector<16x2048xbf16>
    %c0_11 = arith.constant 0 : index
    %c0_12 = arith.constant 0 : index
    %19 = vector.load %arg6[%c0_11, %c0_12] : memref<256x16xbf16, #tpu.memory_space<vmem>>, vector<256x16xbf16>
    %cst_13 = arith.constant dense<0.000000e+00> : vector<256x2048xf32>
    %20 = tpu.matmul %19, %18, %cst_13 {dimension_numbers = #tpu.dot_dimension_numbers<[1], [0], [0], [1], [0, 0, 1, 1], [], []>} : vector<256x16xbf16>, vector<16x2048xbf16>, vector<256x2048xf32> -> vector<256x2048xf32>
    %c0_14 = arith.constant 0 : index
    %c0_15 = arith.constant 0 : index
    %21 = vector.load %arg8[%c0_14, %c0_15] : memref<256x1xf32, #tpu.memory_space<vmem>>, vector<256x1xf32>
    %22 = vector.broadcast %21 : vector<256x1xf32> to vector<256x2048xf32>
    %23 = arith.addf %20, %22 : vector<256x2048xf32>
    %c0_16 = arith.constant 0 : index
    %c0_17 = arith.constant 0 : index
    %c0_18 = arith.constant 0 : index
    %24 = vector.load %arg11[%c0_16, %c0_17, %c0_18] : memref<1x256x2048xf32, #tpu.memory_space<vmem>>, vector<1x256x2048xf32>
    %25 = vector.shape_cast %24 : vector<1x256x2048xf32> to vector<256x2048xf32>
    %26 = vector.shape_cast %23 : vector<256x2048xf32> to vector<1x256x2048xf32>
    tpu.vector_store %arg11[%c0_16, %c0_17, %c0_18], %26 {strides = array<i32>} : memref<1x256x2048xf32, #tpu.memory_space<vmem>>, vector<1x256x2048xf32>,
    %c0_19 = arith.constant 0 : index
    %c0_20 = arith.constant 0 : index
    %27 = vector.load %arg7[%c0_19, %c0_20] : memref<16x16xbf16, #tpu.memory_space<vmem>>, vector<16x16xbf16>
    %cst_21 = arith.constant dense<0.000000e+00> : vector<16x2048xf32>
    %28 = tpu.matmul %27, %18, %cst_21 {dimension_numbers = #tpu.dot_dimension_numbers<[1], [0], [0], [1], [0, 0, 1, 1], [], []>} : vector<16x16xbf16>, vector<16x2048xbf16>, vector<16x2048xf32> -> vector<16x2048xf32>
    %c0_22 = arith.constant 0 : index
    %c0_23 = arith.constant 0 : index
    %29 = vector.load %arg9[%c0_22, %c0_23] : memref<16x1xf32, #tpu.memory_space<vmem>>, vector<16x1xf32>
    %30 = vector.broadcast %29 : vector<16x1xf32> to vector<16x2048xf32>
    %31 = arith.addf %28, %30 : vector<16x2048xf32>
    %32 = arith.addf %31, %3 : vector<16x2048xf32>
    %c0_24 = arith.constant 0 : index
    %c0_25 = arith.constant 0 : index
    %c0_26 = arith.constant 0 : index
    %33 = vector.load %arg10[%c0_24, %c0_25, %c0_26] : memref<1x16x2048xf32, #tpu.memory_space<vmem>>, vector<1x16x2048xf32>
    %34 = vector.shape_cast %33 : vector<1x16x2048xf32> to vector<16x2048xf32>
    %35 = vector.shape_cast %32 : vector<16x2048xf32> to vector<1x16x2048xf32>
    tpu.vector_store %arg10[%c0_24, %c0_25, %c0_26], %35 {strides = array<i32>} : memref<1x16x2048xf32, #tpu.memory_space<vmem>>, vector<1x16x2048xf32>,
    return
  }
  func.func @transform_0(%arg0: i32, %arg1: i32) -> (i32, i32, i32) {
    %c0_i32 = arith.constant 0 : i32
    %c0_i32_0 = arith.constant 0 : i32
    return %arg0, %c0_i32, %arg1 : i32, i32, i32
  }
  func.func @transform_1(%arg0: i32, %arg1: i32) -> (i32, i32, i32) {
    %c0_i32 = arith.constant 0 : i32
    %c0_i32_0 = arith.constant 0 : i32
    return %arg0, %c0_i32, %arg1 : i32, i32, i32
  }
  func.func @transform_2(%arg0: i32, %arg1: i32) -> (i32, i32) {
    %c0_i32 = arith.constant 0 : i32
    %c0_i32_0 = arith.constant 0 : i32
    %c0_i32_1 = arith.constant 0 : i32
    return %c0_i32, %c0_i32_0 : i32, i32
  }
  func.func @transform_3(%arg0: i32, %arg1: i32) -> (i32, i32) {
    %c0_i32 = arith.constant 0 : i32
    %c0_i32_0 = arith.constant 0 : i32
    %c0_i32_1 = arith.constant 0 : i32
    return %c0_i32, %c0_i32_0 : i32, i32
  }
  func.func @transform_4(%arg0: i32, %arg1: i32) -> (i32, i32) {
    %c0_i32 = arith.constant 0 : i32
    %c0_i32_0 = arith.constant 0 : i32
    %c0_i32_1 = arith.constant 0 : i32
    return %c0_i32, %c0_i32_0 : i32, i32
  }
  func.func @transform_5(%arg0: i32, %arg1: i32) -> (i32, i32) {
    %c0_i32 = arith.constant 0 : i32
    %c0_i32_0 = arith.constant 0 : i32
    %c0_i32_1 = arith.constant 0 : i32
    return %c0_i32, %c0_i32_0 : i32, i32
  }
  func.func @transform_6(%arg0: i32, %arg1: i32) -> (i32, i32) {
    %c0_i32 = arith.constant 0 : i32
    %c0_i32_0 = arith.constant 0 : i32
    %c0_i32_1 = arith.constant 0 : i32
    return %c0_i32, %c0_i32_0 : i32, i32
  }
  func.func @transform_7(%arg0: i32, %arg1: i32) -> (i32, i32) {
    %c0_i32 = arith.constant 0 : i32
    %c0_i32_0 = arith.constant 0 : i32
    %c0_i32_1 = arith.constant 0 : i32
    return %c0_i32, %c0_i32_0 : i32, i32
  }
  func.func @transform_8(%arg0: i32, %arg1: i32) -> (i32, i32, i32) {
    %c0_i32 = arith.constant 0 : i32
    %c0_i32_0 = arith.constant 0 : i32
    return %arg0, %c0_i32, %arg1 : i32, i32, i32
  }
  func.func @transform_9(%arg0: i32, %arg1: i32) -> (i32, i32, i32) {
    %c0_i32 = arith.constant 0 : i32
    %c0_i32_0 = arith.constant 0 : i32
    return %arg0, %c0_i32, %arg1 : i32, i32, i32
  }
}

</mosaic_0001>

<bundles_post_ra>
// kernel: wavenet_block_forward.1
= control target key start
LH: loop header
LB: loop body
LE: loop exit
PB: predicated region body
PF: predicated region fallthrough
CT: control target
= control target key end

     0   :  { %s8669_s0 = inlined_call_operand.hbm [shape: f32[2,16,2436], index: 0, kind: input, shape index: {}]   ;;  %s8670_s1 = inlined_call_operand.vmem [shape: f32[2,16,2432], index: 1, kind: input, shape index: {}]   ;;  %s8671_s2 = inlined_call_operand.vmem [shape: bf16[16,16], index: 2, kind: input, shape index: {}]   ;;  %s8672_s3 = inlined_call_operand.vmem [shape: bf16[16,16], index: 3, kind: input, shape index: {}]   ;;  %s8673_s4 = inlined_call_operand.vmem [shape: bf16[256,16], index: 4, kind: input, shape index: {}]   ;;  %s8674_s5 = inlined_call_operand.vmem [shape: bf16[16,16], index: 5, kind: input, shape index: {}]   ;;  %s8675_s6 = inlined_call_operand.vmem [shape: f32[256,1], index: 6, kind: input, shape index: {}]   ;;  %s8676_s7 = inlined_call_operand.vmem [shape: f32[16,1], index: 7, kind: input, shape index: {}]   ;;  %s8677_s8 = inlined_call_operand.hbm [shape: f32[2,16,2432], index: 8, kind: output, shape index: {0}]   ;;  %s8678_s9 = inlined_call_operand.hbm [shape: f32[2,256,2432], index: 9, kind: output, shape index: {1}]  }
   0x1   :  { %8699 = sst [smem:[#allocation31_spill]] %s8669_s0 }
   0x2   :  { %8700 = sst [smem:[#allocation32_spill]] %s8677_s8 }
   0x3   :  { %8701 = sst [smem:[#allocation33_spill]] %s8678_s9 }
   0x4   :  { %15 = vsyncpa [#allocation3], 0 }
   0x5   :  { %17 = vsyncpa [#allocation3 + $0x1], 0 }
   0x6   :  { %18 = vsyncpa [#allocation4], 0 }
   0x7   :  { %20 = vsyncpa [#allocation4 + $0x1], 0 }
   0x8   :  { %21 = vsyncpa [#allocation8], 0 }
   0x9   :  { %23 = vsyncpa [#allocation8 + $0x1], 0  ;;  %s6149_s30 = smov 0   ;;  %s6151_s10 = smov 0  }
   0xa   :  { %s6153_s11 = smov 0   ;;  %s6155_s12 = smov 0  }
   0xb   :  { %s6157_s13 = smov 0   ;;  %s6159_s14 = smov 0  }
   0xc   :  { %s6161_s15 = smov 0   ;;  %s6163_s16 = smov 0  }
   0xd LB: > { %8702 = sst [smem:[#allocation12_spill]] %s6025_s30  ;;  %s5047_s17 = sadd.s32 4294967295, %s6053_s16   ;;  %s6053_s16 = sphi %s6163_s16, %s29_s16   ;;  %s6049_s15 = sphi %s6161_s15, %s8762_s15   ;;  %s6045_s14 = sphi %s6159_s14, %s8761_s14   ;;  %s6041_s13 = sphi %s6157_s13, %s8760_s13   ;;  %s6037_s12 = sphi %s6155_s12, %s8759_s12   ;;  %s6033_s11 = sphi %s6153_s11, %s8758_s11   ;;  %s6029_s10 = sphi %s6151_s10, %s8757_s10   ;;  %s6025_s30 = sphi %s6149_s30, %s8756_s30  }
   0xe   : > { %8703 = sst [smem:[#allocation13_spill]] %s6037_s12  ;;  %s5048_s18 = sadd.s32 4294967294, %s6053_s16  }
   0xf   : > { %8704 = sst [smem:[#allocation14_spill]] %s6041_s13  ;;  %s38_s19 = sadd.s32 1, %s6045_s14 }
  0x10   : > { %p39_p0 = scmp.ge.s32.totalorder %s38_s19, 2  ;;  %s41_s20 = sadd.s32 1, %s6049_s15 }
  0x11   : > { %p57_p1 = scmp.ne.s32.totalorder %s6033_s11, %s6029_s10  ;;  %p58_p2 = scmp.eq.s32.totalorder %s6053_s16, 0 }
  0x12   : > { %s8764_s19 = smov (%p39_p0, %s38_s19), 0  ;;  %s8766_s20 = smov (!%p39_p0, %s41_s20), %s6049_s15 }
  0x13   : > { %8705 = sst [smem:[#allocation15_spill]] %s8764_s19  ;;  %s46_s21 = ssub.s32 %s6045_s14, %s8764_s19 }
  0x14   : > { %p6201_p3 = por %p58_p2, %p57_p1  ;;  %p43_p4 = scmp.ge.s32.totalorder %s8766_s20, 2 }
  0x15   : > { %p63_p5 = scmp.ne.s32.totalorder %s6029_s10, %s6025_s30  ;;  %p64_p6 = scmp.eq.s32.totalorder %s5047_s17, 0 }
  0x16   : > { %p243_p7 = scmp.eq.s32.totalorder %s5047_s17, 3  ;;  %s8768_s20 = smov (%p43_p4, %s8766_s20), 0 }
  0x17   : > { %8707 = sst [smem:[#allocation16_spill]] %s8768_s20  ;;  %p6209_p8 = por %p64_p6, %p63_p5 }
  0x18   : > { %p6213_p9 = por %p243_p7, %p57_p1  ;;  %s45_s25 = ssub.s32 %s6049_s15, %s8768_s20 }
  0x19   : > { %p249_p10 = scmp.eq.s32.totalorder %s5048_s18, 3  ;;  %s47_s26 = sor.u32 %s46_s21, %s45_s25 }
  0x1a   : > { %s8709_s24 = scalar_select %p6213_p9, 1, 0 }
  0x1b   : > { %s50_s27 = sadd.s32 1, %s6033_s11  ;;  %p48_p11 = scmp.eq.s32.totalorder %s47_s26, 0 }
  0x1c   : > { %8710 = sst [smem:[#allocation17_spill]] %s8709_s24  ;;  %p6220_p12 = por %p249_p10, %p63_p5 }
  0x1d   : > { %s6225_s29 = scalar_select %p48_p11, %s6033_s11, %s50_s27  }
  0x1e   : > { %s8711_s28 = scalar_select %p6220_p12, 1, 0 }
  0x1f   : > { %8713 = sst [smem:[#allocation19_spill]] %s6225_s29  ;;  %p5050_p13 = scmp.ge.s32.totalorder %s6053_s16, 4 }
  0x20   : > { %8712 = sst [smem:[#allocation18_spill]] %s8711_s28 }
  0x21   : > { %311 = sbr.rel (%p5050_p13) target bundleno = 167 (0xa7), region = 40 }
  0x28   : > { %314 = sbr.rel (!%p6201_p3) target bundleno = 81 (0x51), region = 44  ;;  %s315_s17 = sand.u32 (%p6201_p3), 1, %s6033_s11  }
  0x29   : > { %s5052_s20 = sshll.u32 (%p6201_p3), %s6045_s14, 4  ;;  %s5051_s18 = sshll.u32 (%p6201_p3), %s315_s17, 8 }
  0x2a   : > { %s321_s21 = ssub.s32 (%p6201_p3), 20, %s5052_s20  ;;  %s6238_s27 = scalar_lea.sflag (%p6201_p3), [#allocation3], %s315_s17 }
  0x2b   : > { %p322_p0 = scmp.lt.s32.totalorder (%p6201_p3), %s321_s21, 16  ;;  %s319_s19 = scalar_lea.vmem (%p6201_p3), [#allocation2], %s5051_s18 }
  0x2f   : > { %s8770_s21 = smov (!%p322_p0, %s321_s21), 16 }
  0x30   : > { %s6235_s25 = sshll.u32 %s8770_s21, 8 }
  0x31   : > { %s326_s26 = ssub.s32 4096, %s6235_s25 }
  0x32   : > { %327 = vsyncadd %s6238_s27, %s326_s26  ;;  %p5054_p1 = scmp.ne.s32.totalorder %s6235_s25, 0  ;;  %s5354_s29 = smul.u32 40, %s6049_s15 }
  0x33   : > { %s5056_s28 = sshll.u32 %s8770_s21, 3  ;;  %s335_s30 = sshll.u32 %s319_s19, 4  ;;  %s6244_s30 = int_to_ptr.vmem [resolvable:$true] %s335_s30 }
  0x34   : > { %s330_s9 = sadd.s32 %s5354_s29, %s5052_s20  ;;  %s8714_s0 = sld [smem:[#allocation31_spill]] }
  0x35   : > { %s5055_s8 = sshll.u32 %s330_s9, 7 }
  0x3a   : > { %s6249_s17 = scalar_lea.hbm %s8714_s0, %s5055_s8  ;;  %s5835_s20 = scalar_lea.hbm %s8714_s0, 10240 }
  0x3b   : > { %s5831_s18 = scalar_lea.hbm %s6249_s17, %s6235_s25  ;;  %p5836_p6 = scmp.lt.u32.totalorder %s6249_s17, %s8714_s0 }
  0x3c   : > { %p5832_p2 = scmp.ne.s32.totalorder %s6249_s17, %s5831_s18  ;;  %p5837_p7 = scmp.lt.u32.totalorder %s5835_s20, %s5831_s18 }
  0x3d   : > { %p5839_p11 = scmp.lt.u32.totalorder %s5831_s18, %s6249_s17 }
  0x3e   : > { %p5833_p4 = pnand %p5832_p2, %p5054_p1  ;;  %p5838_p10 = por %p5837_p7, %p5836_p6 }
  0x40   : > { %p5834_p5 = pneg %p5833_p4  ;;  %p5840_p13 = por %p5839_p11, %p5838_p10 }
  0x42   : > { %p5841_p0 = pnand %p5840_p13, %p5834_p5 }
  0x44   : > { %5844 = shalt.err (!%p5841_p0)
}
  0x45   : > { %s5845_s8 = scalar_lea.vmem %s6244_s30, %s6235_s25  ;;  %s6087_s12 = smov [#allocation2]  }
  0x46   : > { %p5846_p2 = scmp.ne.s32.totalorder %s6244_s30, %s5845_s8  ;;  %s5849_s13 = sshll.u32 %s6087_s12, 4  ;;  %s5850_s13 = int_to_ptr.vmem [resolvable:$false] %s5849_s13 }
  0x47   : > { %s5851_s26 = scalar_lea.vmem %s5850_s13, 8192  ;;  %p5852_p9 = scmp.lt.s32.totalorder %s6244_s30, %s5850_s13 }
  0x48   : > { %p5847_p4 = pnand %p5846_p2, %p5054_p1  ;;  %p5853_p6 = scmp.lt.s32.totalorder %s5851_s26, %s5845_s8 }
  0x4a   : > { %p5848_p12 = pneg %p5847_p4  ;;  %p5854_p7 = por %p5853_p6, %p5852_p9 }
  0x4c   : > { %p5855_p10 = pnand %p5854_p7, %p5848_p12 }
  0x4e   : > { %5858 = shalt.err (!%p5855_p10)
}
  0x4f   : > { %s6088_s18 = smov 2560   ;;  %s6089_s19 = smov 2048  }
  0x50   : > { %341 = dma.hbm_to_vmem [thread:$0]  (%p5054_p1), %s6249_s17, %s6235_s25, %s6244_s30, %s6238_s27, %s6088_s18, %s6089_s19, %s5056_s28  }
  0x51 PF: > { %344 = sbr.rel (!%p6201_p3) target bundleno = 167 (0xa7), region = 48  ;;  %s346_s20 = sand.u32 (%p6201_p3), 1, %s6033_s11  }
  0x52   : > { %s5060_s29 = sshll.u32 (%p6201_p3), %s6045_s14, 4  ;;  %s5059_s9 = sshll.u32 (%p6201_p3), %s346_s20, 8 }
  0x53   : > { %s350_s8 = ssub.s32 (%p6201_p3), 19, %s5060_s29  ;;  %s5355_s12 = smul.u32 (%p6201_p3), 38, %s6049_s15 }
  0x54   : > { %p351_p9 = scmp.lt.s32.totalorder (%p6201_p3), %s350_s8, 16  ;;  %s6290_s28 = scalar_lea.vmem (%p6201_p3), [#allocation5], %s5059_s9  }
  0x55   : > { %s356_s13 = sadd.s32 (%p6201_p3), %s5355_s12, %s5060_s29 }
  0x56   : > { %s5063_s0 = sshll.u32 (%p6201_p3), %s356_s13, 3 }
  0x57   : > { %s6286_s30 = scalar_lea.vmem (%p6201_p3), %s8670_s1, %s5063_s0  }
  0x58   : > { %s8772_s8 = smov (!%p351_p9, %s350_s8), 16 }
  0x59   : > { %s5061_s26 = sshll.u32 %s8772_s8, 8  ;;  %s6288_s22 = sshll.u32 %s8772_s8, 3 }
  0x5a   : > { %p5065_p3 = scmp.eq.s32.totalorder %s5061_s26, 0 }
  0x5b   : > { %p363_p12 = scmp.lt.u32.totalorder (!%p5065_p3), %s6288_s22, 8 }
  0x5c   : > { %362 = sbr.rel (%p5065_p3) target bundleno = 167 (0xa7), region = 52 }
  0x63   : > { %366 = sbr.rel (%p363_p12) target bundleno = 158 (0x9e), region = 56  ;;  %s6294_s25 = sand.u32 (!%p363_p12), 7, %s6288_s22  }
  0x64   : > { %p384_p1 = scmp.eq.s32.totalorder (!%p363_p12), %s6294_s25, 0  ;;  %p5066_p5 = scmp.ne.s32.totalorder (!%p363_p12), %s6294_s25, 0 }
  0x6a   : > { %387 = sbr.rel (%p5066_p5) target bundleno = 130 (0x82), region = 71  ;;  %s388_s0 = sshrl.u32 (!%p5066_p5), %s6288_s22, 3 }
  0x6b   : > { %s389_s24 = sshrl.u32 (!%p5066_p5), %s388_s0, 5  ;;  %s6299_s27 = sand.u32 (!%p5066_p5), 31, %s388_s0  }
  0x6c   : > { %s5314_s17 = sshll.u32 (!%p5066_p5), %s389_s24, 12  ;;  %p5073_p11 = scmp.le.s32.totalorder (!%p5066_p5), %s6299_s27, 0 }
  0x6d   : > { %s540_s18 = sshra.s32 (!%p5066_p5), %s5314_s17, 4 }
  0x6e   : > { %s6302_s19 = scalar_lea.vmem (!%p5066_p5), %s6286_s30, %s540_s18   ;;  %s544_s20 = scalar_lea.vmem (!%p5066_p5), %s6290_s28, %s540_s18 [#allocation5]  }
  0x71   : > { %4960 = sbr.rel (%p5073_p11) target bundleno = 130 (0x82), region = 211  ;;  %s6055_s29 = smov (!%p5073_p11), %s544_s20  }
  0x72   : > { %s6059_s9 = smov (!%p5073_p11), %s6302_s19   ;;  %s6063_s8 = smov (!%p5073_p11), 0  }
  0x73   : > { %s6067_s12 = smov (!%p5073_p11), 0  }
  0x78 LB: >> { %v556_v0 = vld [vmem:[%s6061_s9] sm:$0xff]  ;;  %v558_v1 = vld [vmem:[%s6061_s9 + $0x98] sm:$0xff]  ;;  %s560_s13 = sadd.s32 1, %s6065_s8  ;;  %s550_s12 = sadd.s32 1, %s6069_s12   ;;  %s6069_s12 = sphi %s6067_s12, %s550_s12   ;;  %s6065_s8 = sphi %s6063_s8, %s6064_s8   ;;  %s6061_s9 = sphi %s6059_s9, %s565_s9   ;;  %s6057_s29 = sphi %s6055_s29, %s566_s29  }
  0x79   : >> { %557 = vst [vmem:[%s6057_s29] sm:$0xff] %v556_v0  ;;  %559 = vst [vmem:[%s6057_s29 + $0x80] sm:$0xff] %v558_v1  ;;  %p561_p13 = scmp.ge.s32.totalorder %s560_s13, %s6299_s27  ;;  %p549_p0 = scmp.ge.s32.totalorder %s550_s12, %s6299_s27 }
  0x7b   : >> { %s8774_s13 = smov (%p561_p13, %s560_s13), 0  ;;  %552 = sbr.rel (!%p549_p0) target bundleno = 120 (0x78), region = 217 }
  0x7c   : >> { %s5074_s26 = sshll.u32 %s8774_s13, 3  ;;  %s6064_s8 = smov %s8774_s13  }
  0x7d   : >> { %s565_s9 = scalar_lea.vmem %s6302_s19, %s5074_s26   ;;  %s566_s29 = scalar_lea.vmem %s544_s20, %s5074_s26 [#allocation5]  }
  0x82 PF: > { %569 = sbr.rel (%p384_p1) target bundleno = 158 (0x9e), region = 89  ;;  %s571_s21 = ssub.s32 (!%p384_p1), %s6288_s22, %s6294_s25 }
  0x83   : > { %s575_s0 = sshrl.u32 (!%p384_p1), %s6288_s22, 3  ;;  %s6316_s24 = scalar_lea.vmem (!%p384_p1), %s6286_s30, %s571_s21 }
  0x84   : > { %s6319_s17 = scalar_lea.vmem (!%p384_p1), %s6290_s28, %s571_s21 [#allocation5]  ;;  %s576_s18 = sshrl.u32 (!%p384_p1), %s575_s0, 5 }
  0x85   : > { %s6321_s29 = sand.u32 (!%p384_p1), 31, %s575_s0   ;;  %s5316_s27 = sshll.u32 (!%p384_p1), %s576_s18, 12 }
  0x86   : > { %s727_s19 = sshra.s32 (!%p384_p1), %s5316_s27, 4  ;;  %p5082_p2 = scmp.le.s32.totalorder (!%p384_p1), %s6321_s29, 0 }
  0x87   : > { %s6324_s20 = scalar_lea.vmem (!%p384_p1), %s6286_s30, %s727_s19   ;;  %s731_s9 = scalar_lea.vmem (!%p384_p1), %s6290_s28, %s727_s19 [#allocation5]  }
  0x89   : > { %4988 = sbr.rel (%p5082_p2) target bundleno = 154 (0x9a), region = 233  ;;  %s6071_s8 = smov (!%p5082_p2), %s731_s9  }
  0x8a   : > { %s6075_s12 = smov (!%p5082_p2), %s6324_s20   ;;  %s6079_s13 = smov (!%p5082_p2), 0  }
  0x8b   : > { %s6083_s26 = smov (!%p5082_p2), 0  }
  0x90 LB: >> { %v743_v2 = vld [vmem:[%s6077_s12] sm:$0xff]  ;;  %v745_v3 = vld [vmem:[%s6077_s12 + $0x98] sm:$0xff]  ;;  %s747_s21 = sadd.s32 1, %s6081_s13  ;;  %s737_s26 = sadd.s32 1, %s6085_s26   ;;  %s6085_s26 = sphi %s6083_s26, %s737_s26   ;;  %s6081_s13 = sphi %s6079_s13, %s6080_s13   ;;  %s6077_s12 = sphi %s6075_s12, %s752_s12   ;;  %s6073_s8 = sphi %s6071_s8, %s753_s8  }
  0x91   : >> { %744 = vst [vmem:[%s6073_s8] sm:$0xff] %v743_v2  ;;  %746 = vst [vmem:[%s6073_s8 + $0x80] sm:$0xff] %v745_v3  ;;  %p748_p4 = scmp.ge.s32.totalorder %s747_s21, %s6321_s29  ;;  %p736_p6 = scmp.ge.s32.totalorder %s737_s26, %s6321_s29 }
  0x93   : >> { %s8776_s21 = smov (%p748_p4, %s747_s21), 0  ;;  %739 = sbr.rel (!%p736_p6) target bundleno = 144 (0x90), region = 239 }
  0x94   : >> { %s5083_s0 = sshll.u32 %s8776_s21, 3  ;;  %s6080_s13 = smov %s8776_s21  }
  0x95   : >> { %s752_s12 = scalar_lea.vmem %s6324_s20, %s5083_s0   ;;  %s753_s8 = scalar_lea.vmem %s731_s9, %s5083_s0 [#allocation5]  }
  0x9a PF: > { %s6090_s18 = smov 0  }
  0x9b   : > { %s754_s27 = sshllo.u32 %s6090_s18, %s6294_s25 }
  0x9c   : > { %v763_v4 = vld [vmem:[%s6316_s24] sm:%s754_s27]  ;;  %v765_v5 = vld [vmem:[%s6316_s24 + $0x98] sm:%s754_s27] }
  0x9d   : > { %764 = vst [vmem:[%s6319_s17] sm:%s754_s27] %v763_v4  ;;  %766 = vst [vmem:[%s6319_s17 + $0x80] sm:%s754_s27] %v765_v5 }
  0x9e PF: > { %p5085_p7 = scmp.ge.u32.totalorder %s6288_s22, 8 }
  0x9f   : > { %s6091_s19 = smov (!%p5085_p7), 0  }
  0xa0   : > { %369 = sbr.rel (%p5085_p7) target bundleno = 167 (0xa7), region = 60  ;;  %s370_s29 = sshllo.u32 (!%p5085_p7), %s6091_s19, %s6288_s22 }
  0xa1   : > { %v379_v6 = vld [vmem:[%s6286_s30] sm:%s370_s29] (!%p5085_p7)  ;;  %v381_v7 = vld [vmem:[%s6286_s30 + $0x98] sm:%s370_s29] (!%p5085_p7) }
  0xa2   : > { %380 = vst [vmem:[%s6290_s28] sm:%s370_s29] (!%p5085_p7), %v379_v6  ;;  %382 = vst [vmem:[%s6290_s28 + $0x80] sm:%s370_s29] (!%p5085_p7), %v381_v7 }
  0xa7 PF: > { %p5086_p10 = scmp.ge.s32.totalorder %s6053_s16, 1  ;;  %p769_p9 = scmp.lt.s32.totalorder %s6053_s16, 5 }
  0xa9   : > { %p770_p3 = pnand %p5086_p10, %p769_p9 }
  0xab   : > { %773 = sbr.rel (%p770_p3) target bundleno = 1322 (0x52a), region = 114 }
  0xb2   : > { %s6346_s25 = sand.u32 1, %s6029_s10  }
  0xb3   : > { %s6349_s22 = sshll.u32 %s6346_s25, 8  ;;  %s776_s30 = scalar_lea.sflag [#allocation3], %s6346_s25 }
  0xb4   : > { %s6353_s28 = scalar_lea.vmem [#allocation2], %s6349_s22 }
  0xb5   : > { %6012 = dma.done.wait (%p6209_p8), %s776_s30, 4096  }
  0xb6   : > { %6014 = vsyncadd (%p6209_p8), %s776_s30, 4294963200  ;;  %v8692_v8 = vmov 0   ;;  %s6364_s24 = scalar_lea.vmem [#allocation5], %s6349_s22  ;;  %v6377_v21 = vld [vmem:[%s8672_s3] sm:$0xff]   ;;  %vm956_vm0 = vcmask 130048   ;;  %v852_v56 = vld [vmem:[%s6353_s28 + $0x8] sm:$0xff] }
  0xb7   : > { %992 = vmatprep.mubr.bf16.mxu0 %v8692_v8  ;;  %1035 = vmatprep.mubr.bf16.mxu1 %v8692_v8  ;;  %v884_v9 = vld [vmem:[%s6364_s24 + $0x8] sm:$0xff]  ;;  %v886_v11 = vld [vmem:[%s6364_s24 + $0x18] sm:$0xff]  ;;  %v883_v14 = vld [vmem:[%s6364_s24] sm:$0xff]  ;;  %s5090_s21 = sshll.u32 %s6346_s25, 12  ;;  %s8447_s30 = scalar_lea.vmem [#allocation6], %s6349_s22 }
  0xb8   : > { %5570 = vset.pattern.permute.xlu0 %v8692_v8  ;;  %5571 = vset.pattern.permute.xlu1 %v8692_v8  ;;  %v900_v10 = vld [vmem:[%s6364_s24 + $0x88] sm:$0xff]  ;;  %v902_v13 = vld [vmem:[%s6364_s24 + $0x98] sm:$0xff]  ;;  %v899_v15 = vld [vmem:[%s6364_s24 + $0x80] sm:$0xff]  ;;  %s7007_s0 = scalar_lea.vmem [#allocation7], %s5090_s21  ;;  %s4767_s22 = scalar_lea.sflag [#allocation4], %s6346_s25 }
  0xb9   : > { %v936_v12 = vpack.c.bf16 %v900_v10, %v884_v9  ;;  %v938_v16 = vpack.c.bf16 %v902_v13, %v886_v11  ;;  %v935_v17 = vpack.c.bf16 %v899_v15, %v883_v14  ;;  %v885_v18 = vld [vmem:[%s6364_s24 + $0x10] sm:$0xff]  ;;  %v888_v22 = vld [vmem:[%s6364_s24 + $0x28] sm:$0xff]  ;;  %v890_v24 = vld [vmem:[%s6364_s24 + $0x38] sm:$0xff]  ;;  %s8738_s23 = sld [smem:[#allocation17_spill]] }
  0xba   : > { %v901_v19 = vld [vmem:[%s6364_s24 + $0x90] sm:$0xff]  ;;  %v904_v23 = vld [vmem:[%s6364_s24 + $0xa8] sm:$0xff]  ;;  %v906_v25 = vld [vmem:[%s6364_s24 + $0xb8] sm:$0xff] }
  0xbb   : > { %960 = vmatprep.subr.bf16.mxu0 %v936_v12  ;;  %v937_v20 = vpack.c.bf16 %v901_v19, %v885_v18  ;;  %1003 = vmatprep.subr.bf16.mxu1 %v938_v16  ;;  %v940_v26 = vpack.c.bf16 %v904_v23, %v888_v22  ;;  %v942_v27 = vpack.c.bf16 %v906_v25, %v890_v24  ;;  %v887_v28 = vld [vmem:[%s6364_s24 + $0x20] sm:$0xff]  ;;  %v889_v30 = vld [vmem:[%s6364_s24 + $0x30] sm:$0xff]  ;;  %v892_v33 = vld [vmem:[%s6364_s24 + $0x48] sm:$0xff] }
  0xbc   : > { %961 = vmatpush1.bf16.msra.mxu0 %v935_v17  ;;  %v903_v29 = vld [vmem:[%s6364_s24 + $0xa0] sm:$0xff]  ;;  %v905_v32 = vld [vmem:[%s6364_s24 + $0xb0] sm:$0xff]  ;;  %v908_v34 = vld [vmem:[%s6364_s24 + $0xc8] sm:$0xff] }
  0xbd   : > { %1004 = vmatpush1.bf16.msra.mxu1 %v937_v20  ;;  %v939_v31 = vpack.c.bf16 %v903_v29, %v887_v28  ;;  %1046 = vmatprep.subr.bf16.mxu0 %v940_v26  ;;  %v941_v35 = vpack.c.bf16 %v905_v32, %v889_v30  ;;  %v944_v36 = vpack.c.bf16 %v908_v34, %v892_v33  ;;  %v894_v37 = vld [vmem:[%s6364_s24 + $0x58] sm:$0xff]  ;;  %v891_v40 = vld [vmem:[%s6364_s24 + $0x40] sm:$0xff]  ;;  %v893_v42 = vld [vmem:[%s6364_s24 + $0x50] sm:$0xff] }
  0xbe   : > { %v910_v38 = vld [vmem:[%s6364_s24 + $0xd8] sm:$0xff]  ;;  %1089 = vmatprep.subr.bf16.mxu1 %v942_v27  ;;  %v907_v41 = vld [vmem:[%s6364_s24 + $0xc0] sm:$0xff]  ;;  %v909_v43 = vld [vmem:[%s6364_s24 + $0xd0] sm:$0xff] }
  0xbf   : > { %5092 = vmatmul.mubr.msk.bf16.vlgmr.msra.gmra.mrb[0].mxu0 %vm956_vm0, %v6377_v21  ;;  %v946_v39 = vpack.c.bf16 %v910_v38, %v894_v37  ;;  %v896_v44 = vld [vmem:[%s6364_s24 + $0x68] sm:$0xff]  ;;  %v943_v46 = vpack.c.bf16 %v907_v41, %v891_v40  ;;  %v898_v47 = vld [vmem:[%s6364_s24 + $0x78] sm:$0xff]  ;;  %v945_v49 = vpack.c.bf16 %v909_v43, %v893_v42  ;;  %v895_v52 = vld [vmem:[%s6364_s24 + $0x60] sm:$0xff]  ;;  %p8739_p8 = scmp.ne.s32.totalorder %s8738_s23, 0 }
  0xc0   : > { %5093 = vmatmul.mubr.msk.bf16.vlgmr.msra.gmra.mrb[0].mxu1 %vm956_vm0, %v6377_v21  ;;  %1047 = vmatpush1.bf16.msra.mxu0 %v939_v31  ;;  %v912_v45 = vld [vmem:[%s6364_s24 + $0xe8] sm:$0xff]  ;;  %v914_v48 = vld [vmem:[%s6364_s24 + $0xf8] sm:$0xff]  ;;  %v911_v53 = vld [vmem:[%s6364_s24 + $0xe0] sm:$0xff]  ;;  %s8740_s17 = sld [smem:[#allocation13_spill]] (%p8739_p8) }
  0xc1   : > { %1090 = vmatpush1.bf16.msra.mxu1 %v941_v35  ;;  %1078 = vmatprep.mubr.bf16.mxu0 %v8692_v8  ;;  %v948_v50 = vpack.c.bf16 %v912_v45, %v896_v44  ;;  %v950_v51 = vpack.c.bf16 %v914_v48, %v898_v47  ;;  %v897_v54 = vld [vmem:[%s6364_s24 + $0x70] sm:$0xff]  ;;  %v868_v57 = vld [vmem:[%s6353_s28 + $0x88] sm:$0xff]  ;;  %v947_v58 = vpack.c.bf16 %v911_v53, %v895_v52  ;;  %v854_v59 = vld [vmem:[%s6353_s28 + $0x18] sm:$0xff] }
  0xc2   : > { %1121 = vmatprep.mubr.bf16.mxu1 %v8692_v8  ;;  %1132 = vmatprep.subr.bf16.mxu0 %v944_v36  ;;  %v913_v55 = vld [vmem:[%s6364_s24 + $0xf0] sm:$0xff]  ;;  %v870_v60 = vld [vmem:[%s6353_s28 + $0x98] sm:$0xff]  ;;  %v918_v62 = vpack.c.bf16 %v868_v57, %v852_v56  ;;  %v851_v0 = vld [vmem:[%s6353_s28] sm:$0xff] }
  0xc3   : > { %1175 = vmatprep.subr.bf16.mxu1 %v946_v39  ;;  %v949_v61 = vpack.c.bf16 %v913_v55, %v897_v54  ;;  %v920_v63 = vpack.c.bf16 %v870_v60, %v854_v59  ;;  %v867_v1 = vld [vmem:[%s6353_s28 + $0x80] sm:$0xff]  ;;  %v853_v2 = vld [vmem:[%s6353_s28 + $0x10] sm:$0xff]  ;;  %v856_v4 = vld [vmem:[%s6353_s28 + $0x28] sm:$0xff] }
  0xc4   : > { %v869_v3 = vld [vmem:[%s6353_s28 + $0x90] sm:$0xff]  ;;  %v872_v5 = vld [vmem:[%s6353_s28 + $0xa8] sm:$0xff]  ;;  %v858_v6 = vld [vmem:[%s6353_s28 + $0x38] sm:$0xff]  ;;  %v917_v9 = vpack.c.bf16 %v867_v1, %v851_v0 }
  0xc5   : > { %v874_v7 = vld [vmem:[%s6353_s28 + $0xb8] sm:$0xff]  ;;  %v919_v10 = vpack.c.bf16 %v869_v3, %v853_v2  ;;  %v922_v11 = vpack.c.bf16 %v872_v5, %v856_v4  ;;  %v855_v13 = vld [vmem:[%s6353_s28 + $0x20] sm:$0xff]  ;;  %v857_v15 = vld [vmem:[%s6353_s28 + $0x30] sm:$0xff] }
  0xc6   : > { %v924_v12 = vpack.c.bf16 %v874_v7, %v858_v6  ;;  %v871_v14 = vld [vmem:[%s6353_s28 + $0xa0] sm:$0xff]  ;;  %v873_v16 = vld [vmem:[%s6353_s28 + $0xb0] sm:$0xff]  ;;  %v860_v18 = vld [vmem:[%s6353_s28 + $0x48] sm:$0xff]  ;;  %s5296_s20 = sshll.u32 (%p8739_p8), %s8740_s17, 4 }
  0xc7   : > { %5094 = vmatmul.mubr.msk.bf16.vlgmr.msra.gmra.mrb[4].mxu0 %vm956_vm0, %v6377_v21  ;;  %v5573_v17 = vld [vmem:[%s8671_s2] sm:$0xff]   ;;  %v876_v19 = vld [vmem:[%s6353_s28 + $0xc8] sm:$0xff]  ;;  %v921_v20 = vpack.c.bf16 %v871_v14, %v855_v13  ;;  %v878_v22 = vld [vmem:[%s6353_s28 + $0xd8] sm:$0xff]  ;;  %v923_v23 = vpack.c.bf16 %v873_v16, %v857_v15  ;;  %s4780_s9 = ssub.s32 (%p8739_p8), 19, %s5296_s20 }
  0xc8   : > { %5095 = vmatmul.mubr.msk.bf16.vlgmr.msra.gmra.mrb[4].mxu1 %vm956_vm0, %v6377_v21  ;;  %1133 = vmatpush1.bf16.msra.mxu0 %v943_v46  ;;  %v926_v24 = vpack.c.bf16 %v876_v19, %v860_v18  ;;  %v859_v26 = vld [vmem:[%s6353_s28 + $0x40] sm:$0xff]  ;;  %v861_v28 = vld [vmem:[%s6353_s28 + $0x50] sm:$0xff]  ;;  %v864_v30 = vld [vmem:[%s6353_s28 + $0x68] sm:$0xff]  ;;  %p4781_p12 = scmp.lt.s32.totalorder (%p8739_p8), %s4780_s9, 16 }
  0xc9   : > { %1176 = vmatpush1.bf16.msra.mxu1 %v945_v49  ;;  %1164 = vmatprep.mubr.bf16.mxu0 %v8692_v8  ;;  %v875_v27 = vld [vmem:[%s6353_s28 + $0xc0] sm:$0xff]  ;;  %v877_v29 = vld [vmem:[%s6353_s28 + $0xd0] sm:$0xff]  ;;  %v880_v31 = vld [vmem:[%s6353_s28 + $0xe8] sm:$0xff] }
  0xca   : > { %1207 = vmatprep.mubr.bf16.mxu1 %v8692_v8  ;;  %1218 = vmatprep.subr.bf16.mxu0 %v948_v50  ;;  %v925_v32 = vpack.c.bf16 %v875_v27, %v859_v26  ;;  %v866_v33 = vld [vmem:[%s6353_s28 + $0x78] sm:$0xff]  ;;  %v927_v35 = vpack.c.bf16 %v877_v29, %v861_v28  ;;  %v930_v36 = vpack.c.bf16 %v880_v31, %v864_v30  ;;  %v863_v38 = vld [vmem:[%s6353_s28 + $0x60] sm:$0xff]  ;;  %v865_v40 = vld [vmem:[%s6353_s28 + $0x70] sm:$0xff] }
  0xcb   : > { %1261 = vmatprep.subr.bf16.mxu1 %v950_v51  ;;  %v882_v34 = vld [vmem:[%s6353_s28 + $0xf8] sm:$0xff]  ;;  %v879_v39 = vld [vmem:[%s6353_s28 + $0xe0] sm:$0xff]  ;;  %v881_v41 = vld [vmem:[%s6353_s28 + $0xf0] sm:$0xff] }
  0xcc   : > { %v932_v37 = vpack.c.bf16 %v882_v34, %v866_v33  ;;  %v929_v42 = vpack.c.bf16 %v879_v39, %v863_v38  ;;  %v931_v43 = vpack.c.bf16 %v881_v41, %v865_v40  ;;  %v1960_v55 = vld [vmem:[%s8675_s6] sm:$0xff]  ;;  %v1961_v4 = vld [vmem:[%s8675_s6 + $0x8] sm:$0xff]  ;;  %v1962_v6 = vld [vmem:[%s8675_s6 + $0x10] sm:$0xff] }
  0xcd   : > { %1994 = vperm.xlu0 %5570, %v1960_v55   ;;  %2004 = vperm.xlu1 %5571, %v1962_v6   ;;  %v1963_v26 = vld [vmem:[%s8675_s6 + $0x18] sm:$0xff] }
  0xcf   : > { %5096 = vmatmul.mubr.msk.bf16.vlgmr.msra.gmra.mrb[8].mxu0 %vm956_vm0, %v6377_v21 }
  0xd0   : > { %5097 = vmatmul.mubr.msk.bf16.vlgmr.msra.gmra.mrb[8].mxu1 %vm956_vm0, %v6377_v21  ;;  %1219 = vmatpush1.bf16.msra.mxu0 %v947_v58 }
  0xd1   : > { %1262 = vmatpush1.bf16.msra.mxu1 %v949_v61  ;;  %1250 = vmatprep.mubr.bf16.mxu0 %v8692_v8 }
  0xd2   : > { %1293 = vmatprep.mubr.bf16.mxu1 %v8692_v8  ;;  %1312 = vmatprep.subr.bf16.mxu0 %v918_v62 }
  0xd3   : > { %1355 = vmatprep.subr.bf16.mxu1 %v920_v63  ;;  %1999 = vperm.xlu0 %5570, %v1961_v4  }
  0xd4   : > { %2009 = vperm.xlu1 %5571, %v1963_v26  }
  0xd7   : > { %5098 = vmatmul.mubr.msk.bf16.vlgmr.msra.gmra.mrb[12].mxu0 %vm956_vm0, %v6377_v21 }
  0xd8   : > { %5099 = vmatmul.mubr.msk.bf16.vlgmr.msra.gmra.mrb[12].mxu1 %vm956_vm0, %v6377_v21  ;;  %1313 = vmatpush1.bf16.msra.mxu0 %v917_v9  ;;  %v862_v21 = vld [vmem:[%s6353_s28 + $0x58] sm:$0xff] }
  0xd9   : > { %1356 = vmatpush1.bf16.msra.mxu1 %v919_v10  ;;  %1344 = vmatprep.mubr.bf16.mxu0 %v8692_v8  ;;  %v928_v25 = vpack.c.bf16 %v878_v22, %v862_v21 }
  0xda   : > { %1387 = vmatprep.mubr.bf16.mxu1 %v8692_v8  ;;  %1398 = vmatprep.subr.bf16.mxu0 %v922_v11 }
  0xdb   : > { %1441 = vmatprep.subr.bf16.mxu1 %v924_v12 }
  0xdf   : > { %5101 = vmatmul.mubr.msk.bf16.vlgmr.msra.gmra.mrb[0].mxu0 %vm956_vm0, %v5573_v17 }
  0xe0   : > { %5102 = vmatmul.mubr.msk.bf16.vlgmr.msra.gmra.mrb[0].mxu1 %vm956_vm0, %v5573_v17  ;;  %1399 = vmatpush1.bf16.msra.mxu0 %v921_v20 }
  0xe1   : > { %1442 = vmatpush1.bf16.msra.mxu1 %v923_v23  ;;  %1430 = vmatprep.mubr.bf16.mxu0 %v8692_v8 }
  0xe2   : > { %1473 = vmatprep.mubr.bf16.mxu1 %v8692_v8  ;;  %1484 = vmatprep.subr.bf16.mxu0 %v926_v24 }
  0xe3   : > { %1527 = vmatprep.subr.bf16.mxu1 %v928_v25 }
  0xe7   : > { %5103 = vmatmul.mubr.msk.bf16.vlgmr.msra.gmra.mrb[4].mxu0 %vm956_vm0, %v5573_v17 }
  0xe8   : > { %5104 = vmatmul.mubr.msk.bf16.vlgmr.msra.gmra.mrb[4].mxu1 %vm956_vm0, %v5573_v17  ;;  %1485 = vmatpush1.bf16.msra.mxu0 %v925_v32 }
  0xe9   : > { %1528 = vmatpush1.bf16.msra.mxu1 %v927_v35  ;;  %1516 = vmatprep.mubr.bf16.mxu0 %v8692_v8 }
  0xea   : > { %1559 = vmatprep.mubr.bf16.mxu1 %v8692_v8  ;;  %1570 = vmatprep.subr.bf16.mxu0 %v930_v36 }
  0xeb   : > { %1613 = vmatprep.subr.bf16.mxu1 %v932_v37 }
  0xef   : > { %5105 = vmatmul.mubr.msk.bf16.vlgmr.msra.gmra.mrb[8].mxu0 %vm956_vm0, %v5573_v17 }
  0xf0   : > { %5106 = vmatmul.mubr.msk.bf16.vlgmr.msra.gmra.mrb[8].mxu1 %vm956_vm0, %v5573_v17  ;;  %1571 = vmatpush1.bf16.msra.mxu0 %v929_v42 }
  0xf1   : > { %1614 = vmatpush1.bf16.msra.mxu1 %v931_v43  ;;  %1602 = vmatprep.mubr.bf16.mxu0 %v8692_v8 }
  0xf2   : > { %1645 = vmatprep.mubr.bf16.mxu1 %v8692_v8 }
  0xf7   : > { %5107 = vmatmul.mubr.msk.bf16.vlgmr.msra.gmra.mrb[12].mxu0 %vm956_vm0, %v5573_v17 }
  0xf8   : > { %5108 = vmatmul.mubr.msk.bf16.vlgmr.msra.gmra.mrb[12].mxu1 %vm956_vm0, %v5573_v17  ;;  %2312 = vmatprep.mubr.bf16.mxu0 %v8692_v8 }
  0xf9   : > { %2505 = vmatprep.mubr.bf16.mxu1 %v8692_v8 }
 0x1b2   : > { %v1346_v44 = vpop.f32.mrb[0].mxu0 }
 0x1b3   : > { %v5109_v45 = vmul.f32 -1.442695, %v1346_v44  ;;  %v1389_v46 = vpop.f32.mrb[0].mxu1  ;;  %v1348_v47 = vpop.f32.mrb[1].mxu0 }
 0x1b4   : > { %v5111_v48 = vmul.f32 -1.442695, %v1389_v46  ;;  %v5110_v49 = vmul.f32 -1.442695, %v1348_v47  ;;  %v1391_v50 = vpop.f32.mrb[1].mxu1  ;;  %v1350_v51 = vpop.f32.mrb[2].mxu0 }
 0x1b5   : > { %5591 = vpow2.f32 %v5109_v45  ;;  %v1393_v52 = vpop.f32.mrb[2].mxu1  ;;  %v1352_v53 = vpop.f32.mrb[3].mxu0  ;;  %v5125_v56 = vmul.f32 -1.442695, %v1350_v51  ;;  %v5112_v57 = vmul.f32 -1.442695, %v1391_v50 }
 0x1b6   : > { %5593 = vpow2.f32 %v5111_v48  ;;  %v6478_v54 = vpop.f32.mrb[3].mxu1  ;;  %v5127_v58 = vmul.f32 -1.442695, %v1393_v52  ;;  %v5126_v62 = vmul.f32 -1.442695, %v1352_v53 }
 0x1b7   : > { %5595 = vpow2.f32 %v5110_v49  ;;  %v5128_v9 = vmul.f32 -1.442695, %v6478_v54  ;;  %v1965_v49 = vld [vmem:[%s8675_s6 + $0x28] sm:$0xff] }
 0x1b8   : > { %5597 = vtanh.f32 %v1346_v44  ;;  %2019 = vperm.xlu1 %5571, %v1965_v49  }
 0x1b9   : > { %5599 = vtanh.f32 %v1389_v46 }
 0x1ba   : > { %v6483_v59 = vpop.f32.mrb[4].mxu0  ;;  %5601 = vpow2.f32 %v5125_v56 }
 0x1bb   : > { %v6485_v60 = vpop.f32.mrb[4].mxu1  ;;  %v6487_v61 = vpop.f32.mrb[5].mxu0  ;;  %5603 = vpow2.f32 %v5112_v57  ;;  %v5113_v23 = vmul.f32 -1.442695, %v6483_v59 }
 0x1bc   : > { %v6489_v63 = vpop.f32.mrb[5].mxu1  ;;  %v6491_v0 = vpop.f32.mrb[6].mxu0  ;;  %5605 = vpow2.f32 %v5127_v58  ;;  %v5115_v37 = vmul.f32 -1.442695, %v6485_v60 }
 0x1bd   : > { %v6493_v1 = vpop.f32.mrb[6].mxu1  ;;  %v6495_v2 = vpop.f32.mrb[7].mxu0  ;;  %5607 = vtanh.f32 %v1348_v47  ;;  %v5114_v47 = vmul.f32 -1.442695, %v6487_v61  ;;  %v5116_v57 = vmul.f32 -1.442695, %v6489_v63 }
 0x1be   : > { %v6497_v3 = vpop.f32.mrb[7].mxu1  ;;  %5609 = vpow2.f32 %v5126_v62  ;;  %v5131_v62 = vmul.f32 -1.442695, %v6493_v1 }
 0x1bf   : > { %v5592_v5 = vpop.eup %5591  ;;  %5611 = vtanh.f32 %v1391_v50 }
 0x1c0   : > { %v5594_v7 = vpop.eup %5593  ;;  %v1784_v11 = vadd.f32 1.0, %v5592_v5  ;;  %5613 = vtanh.f32 %v1350_v51 }
 0x1c1   : > { %v5596_v10 = vpop.eup %5595  ;;  %v1786_v13 = vadd.f32 1.0, %v5594_v7  ;;  %5615 = vtanh.f32 %v1393_v52  ;;  %v1964_v52 = vld [vmem:[%s8675_s6 + $0x20] sm:$0xff]  ;;  %v1966_v7 = vld [vmem:[%s8675_s6 + $0x30] sm:$0xff] }
 0x1c2   : > { %v6506_v12 = vpop.f32.mrb[8].mxu0  ;;  %v6512_v16 = vpop.eup %5597  ;;  %v1785_v17 = vadd.f32 1.0, %v5596_v10  ;;  %5617 = vpow2.f32 %v5128_v9  ;;  %2014 = vperm.xlu0 %5570, %v1964_v52  }
 0x1c3   : > { %v6508_v14 = vpop.f32.mrb[8].mxu1  ;;  %v6510_v15 = vpop.f32.mrb[9].mxu0  ;;  %5619 = vtanh.f32 %v1352_v53 }
 0x1c4   : > { %v6514_v18 = vpop.f32.mrb[9].mxu1  ;;  %v6516_v19 = vpop.f32.mrb[10].mxu0  ;;  %5621 = vrcp.f32 %v1784_v11 }
 0x1c5   : > { %v6518_v20 = vpop.eup %5599  ;;  %v6520_v21 = vpop.f32.mrb[10].mxu1  ;;  %5623 = vrcp.f32 %v1786_v13 }
 0x1c6   : > { %v5602_v22 = vpop.eup %5601  ;;  %v6523_v24 = vpop.f32.mrb[11].mxu0  ;;  %5625 = vrcp.f32 %v1785_v17  ;;  %2024 = vperm.xlu0 %5570, %v1966_v7  }
 0x1c7   : > { %v6525_v25 = vpop.f32.mrb[11].mxu1  ;;  %v5604_v27 = vpop.eup %5603  ;;  %v1800_v28 = vadd.f32 1.0, %v5602_v22 }
 0x1c8   : > { %v5606_v29 = vpop.eup %5605  ;;  %v1787_v33 = vadd.f32 1.0, %v5604_v27 }
 0x1c9   : > { %v6530_v30 = vpop.eup %5607  ;;  %5627 = vrcp.f32 %v1800_v28  ;;  %v1802_v31 = vadd.f32 1.0, %v5606_v29  ;;  %v5132_v29 = vmul.f32 -1.442695, %v6497_v3 }
 0x1ca   : > { %v5610_v32 = vpop.eup %5609  ;;  %5629 = vpow2.f32 %v5113_v23  ;;  %v6532_v34 = vpop.f32.mrb[12].mxu0 }
 0x1cb   : > { %v6534_v35 = vpop.eup %5611  ;;  %5631 = vrcp.f32 %v1802_v31  ;;  %v1801_v36 = vadd.f32 1.0, %v5610_v32  ;;  %v6537_v38 = vpop.f32.mrb[12].mxu1 }
 0x1cc   : > { %v6539_v39 = vpop.f32.mrb[13].mxu0  ;;  %v5614_v40 = vpop.eup %5613  ;;  %5633 = vtanh.f32 %v6478_v54  ;;  %v5129_v54 = vmul.f32 -1.442695, %v6491_v0 }
 0x1cd   : > { %v6542_v41 = vpop.f32.mrb[13].mxu1  ;;  %v6544_v42 = vpop.f32.mrb[14].mxu0  ;;  %5635 = vrcp.f32 %v1801_v36 }
 0x1ce   : > { %v5616_v43 = vpop.eup %5615  ;;  %v6546_v44 = vpop.f32.mrb[14].mxu1  ;;  %5637 = vrcp.f32 %v1787_v33 }
 0x1cf   : > { %v6548_v45 = vpop.f32.mrb[15].mxu0  ;;  %v5618_v46 = vpop.eup %5617  ;;  %5639 = vpow2.f32 %v5115_v37 }
 0x1d0   : > { %v6551_v48 = vpop.f32.mrb[15].mxu1  ;;  %v5620_v50 = vpop.eup %5619  ;;  %v1803_v51 = vadd.f32 1.0, %v5618_v46  ;;  %5641 = vtanh.f32 %v6483_v59  ;;  %v1967_v59 = vld [vmem:[%s8675_s6 + $0x38] sm:$0xff] }
 0x1d1   : > { %v5622_v53 = vpop.eup %5621  ;;  %2029 = vperm.xlu1 %5571, %v1967_v59  }
 0x1d2   : > { %v5624_v55 = vpop.eup %5623  ;;  %5643 = vrcp.f32 %v1803_v51  ;;  %v1880_v5 = vmul.f32 %v5622_v53, %v6512_v16 }
 0x1d3   : > { %v5626_v56 = vpop.eup %5625  ;;  %5645 = vpow2.f32 %v5114_v47  ;;  %v1882_v13 = vmul.f32 %v5624_v55, %v6518_v20 }
 0x1d4   : > { %v5628_v58 = vpop.eup %5627  ;;  %5647 = vtanh.f32 %v6485_v60  ;;  %v5130_v60 = vmul.f32 -1.442695, %v6495_v2  ;;  %v1881_v26 = vmul.f32 %v5626_v56, %v6530_v30 }
 0x1d5   : > { %v5630_v4 = vpop.eup %5629  ;;  %5649 = vpow2.f32 %v5129_v54  ;;  %v1896_v6 = vmul.f32 %v5628_v58, %v5614_v40  ;;  %v1969_v40 = vld [vmem:[%s8675_s6 + $0x48] sm:$0xff] }
 0x1d6   : > { %v5632_v9 = vpop.eup %5631  ;;  %5651 = vtanh.f32 %v6487_v61  ;;  %v1788_v23 = vadd.f32 1.0, %v5630_v4  ;;  %2039 = vperm.xlu1 %5571, %v1969_v40   ;;  %v1971_v4 = vld [vmem:[%s8675_s6 + $0x58] sm:$0xff] }
 0x1d7   : > { %v5634_v10 = vpop.eup %5633  ;;  %5653 = vpow2.f32 %v5116_v57  ;;  %v6573_v11 = vpack.c.bf16 %v1896_v6, %v1880_v5  ;;  %v1898_v16 = vmul.f32 %v5632_v9, %v5616_v43  ;;  %v6623_v57 = vld [vmem:[%s8673_s4 + $0x8] sm:$0xff]   ;;  %v1970_v5 = vld [vmem:[%s8675_s6 + $0x50] sm:$0xff] }
 0x1d8   : > { %v5636_v17 = vpop.eup %5635  ;;  %5655 = vpow2.f32 %v5131_v62 }
 0x1d9   : > { %v5638_v22 = vpop.eup %5637  ;;  %v1897_v27 = vmul.f32 %v5636_v17, %v5620_v50  ;;  %v6577_v28 = vpack.c.bf16 %v1898_v16, %v1882_v13  ;;  %5657 = vtanh.f32 %v6489_v63  ;;  %v6591_v63 = vld [vmem:[%s8673_s4] sm:$0xff]   ;;  %v5120_v16 = vmul.f32 -1.442695, %v6514_v18 }
 0x1da   : > { %v5640_v61 = vpop.eup %5639  ;;  %5659 = vpow2.f32 %v5130_v60  ;;  %v1883_v30 = vmul.f32 %v5638_v22, %v6534_v35  ;;  %2049 = vperm.xlu1 %5571, %v1971_v4   ;;  %v5133_v60 = vmul.f32 -1.442695, %v6516_v19  ;;  %v5135_v22 = vmul.f32 -1.442695, %v6520_v21 }
 0x1db   : > { %v6581_v31 = vpop.eup %5641  ;;  %v6583_v32 = vpack.c.bf16 %v1897_v27, %v1881_v26  ;;  %5661 = vtanh.f32 %v6491_v0  ;;  %v1790_v36 = vadd.f32 1.0, %v5640_v61  ;;  %v1968_v0 = vld [vmem:[%s8675_s6 + $0x40] sm:$0xff]  ;;  %v6645_v61 = vld [vmem:[%s8673_s4 + $0x10] sm:$0xff]  }
 0x1dc   : > { %v5644_v20 = vpop.eup %5643  ;;  %5663 = vrcp.f32 %v1788_v23  ;;  %2034 = vperm.xlu0 %5570, %v1968_v0  }
 0x1dd   : > { %v5646_v33 = vpop.eup %5645  ;;  %2280 = vmatprep.subr.bf16.mxu0 %v6583_v32  ;;  %v1899_v37 = vmul.f32 %v5644_v20, %v5634_v10  ;;  %5665 = vpow2.f32 %v5132_v29  ;;  %v1973_v29 = vld [vmem:[%s8675_s6 + $0x68] sm:$0xff]  ;;  %v1972_v20 = vld [vmem:[%s8675_s6 + $0x60] sm:$0xff] }
 0x1de   : > { %v6599_v43 = vpop.eup %5647  ;;  %2281 = vmatpush1.bf16.msra.mxu0 %v6573_v11  ;;  %5667 = vtanh.f32 %v6493_v1  ;;  %v1789_v49 = vadd.f32 1.0, %v5646_v33  ;;  %v5117_v1 = vmul.f32 -1.442695, %v6506_v12  ;;  %2059 = vperm.xlu1 %5571, %v1973_v29   ;;  %v4339_v29 = vld [vmem:[%s8676_s7 + $0x8] sm:$0xff] }
 0x1df   : > { %v5650_v35 = vpop.eup %5649  ;;  %v6603_v46 = vpack.c.bf16 %v1899_v37, %v1883_v30  ;;  %5669 = vtanh.f32 %v6495_v2  ;;  %v5119_v2 = vmul.f32 -1.442695, %v6508_v14 }
 0x1e0   : > { %v6605_v47 = vpop.eup %5651  ;;  %v1804_v50 = vadd.f32 1.0, %v5650_v35  ;;  %5671 = vrcp.f32 %v1790_v36  ;;  %2044 = vperm.xlu0 %5570, %v1970_v5   ;;  %v5134_v36 = vmul.f32 -1.442695, %v6523_v24 }
 0x1e1   : > { %v5654_v51 = vpop.eup %5653  ;;  %2473 = vmatprep.subr.bf16.mxu1 %v6603_v46  ;;  %5157 = vmatmul.mubr.msk.bf16.vlgmr.msra.gmra.mrb[16].mxu0 %vm956_vm0, %v6591_v63 }
 0x1e2   : > { %v5656_v52 = vpop.eup %5655  ;;  %5673 = vrcp.f32 %v1804_v50  ;;  %2474 = vmatpush1.bf16.msra.mxu1 %v6577_v28  ;;  %2322 = vmatprep.mubr.bf16.mxu0 %v8692_v8  ;;  %v1791_v56 = vadd.f32 1.0, %v5654_v51 }
 0x1e3   : > { %v1806_v53 = vadd.f32 1.0, %v5656_v52  ;;  %5675 = vtanh.f32 %v6497_v3  ;;  %v6616_v54 = vpop.eup %5657  ;;  %v5118_v3 = vmul.f32 -1.442695, %v6510_v15 }
 0x1e4   : > { %5677 = vrcp.f32 %v1789_v49  ;;  %v5660_v55 = vpop.eup %5659  ;;  %2054 = vperm.xlu0 %5570, %v1972_v20   ;;  %v5136_v49 = vmul.f32 -1.442695, %v6525_v25 }
 0x1e5   : > { %5679 = vrcp.f32 %v1806_v53  ;;  %5173 = vmatmul.mubr.msk.bf16.vlgmr.msra.gmra.mrb[16].mxu1 %vm956_vm0, %v6591_v63  ;;  %v5662_v58 = vpop.eup %5661  ;;  %v1805_v62 = vadd.f32 1.0, %v5660_v55  ;;  %v6677_v55 = vld [vmem:[%s8673_s4 + $0x18] sm:$0xff]  }
 0x1e6   : > { %5681 = vpow2.f32 %v5117_v1  ;;  %2515 = vmatprep.mubr.bf16.mxu1 %v8692_v8  ;;  %v5664_v6 = vpop.eup %5663 }
 0x1e7   : > { %5683 = vpow2.f32 %v5119_v2  ;;  %v5666_v59 = vpop.eup %5665  ;;  %v1884_v26 = vmul.f32 %v5664_v6, %v6581_v31 }
 0x1e8   : > { %5685 = vrcp.f32 %v1805_v62  ;;  %v5668_v7 = vpop.eup %5667  ;;  %v1807_v9 = vadd.f32 1.0, %v5666_v59 }
 0x1e9   : > { %5687 = vrcp.f32 %v1791_v56  ;;  %5158 = vmatmul.mubr.msk.bf16.gmra.mrb[20].mxu0 %vm956_vm0, %v6623_v57  ;;  %v5670_v10 = vpop.eup %5669 }
 0x1ea   : > { %5689 = vpow2.f32 %v5118_v3  ;;  %2332 = vmatprep.mubr.bf16.mxu0 %v8692_v8  ;;  %v5672_v13 = vpop.eup %5671 }
 0x1eb   : > { %5691 = vrcp.f32 %v1807_v9  ;;  %v1886_v40 = vmul.f32 %v5672_v13, %v6599_v43  ;;  %v5121_v9 = vmul.f32 -1.442695, %v6532_v34 }
 0x1ec   : > { %v5674_v17 = vpop.eup %5673  ;;  %5693 = vpow2.f32 %v5133_v60 }
 0x1ed   : > { %v5676_v23 = vpop.eup %5675  ;;  %v1900_v27 = vmul.f32 %v5674_v17, %v5662_v58  ;;  %5174 = vmatmul.mubr.msk.bf16.gmra.mrb[20].mxu1 %vm956_vm0, %v6623_v57  ;;  %5695 = vtanh.f32 %v6506_v12  ;;  %v1976_v17 = vld [vmem:[%s8675_s6 + $0x80] sm:$0xff] }
 0x1ee   : > { %v5678_v33 = vpop.eup %5677  ;;  %2525 = vmatprep.mubr.bf16.mxu1 %v8692_v8  ;;  %5697 = vpow2.f32 %v5120_v16  ;;  %v6709_v16 = vld [vmem:[%s8673_s4 + $0x20] sm:$0xff]  }
 0x1ef   : > { %v5680_v31 = vpop.eup %5679  ;;  %v6656_v30 = vpack.c.bf16 %v1900_v27, %v1884_v26  ;;  %5699 = vpow2.f32 %v5135_v22  ;;  %v1885_v43 = vmul.f32 %v5678_v33, %v6605_v47  ;;  %v1975_v47 = vld [vmem:[%s8675_s6 + $0x78] sm:$0xff]  ;;  %v5123_v26 = vmul.f32 -1.442695, %v6537_v38 }
 0x1f0   : > { %v5682_v37 = vpop.eup %5681  ;;  %v1902_v0 = vmul.f32 %v5680_v31, %v5668_v7  ;;  %5701 = vtanh.f32 %v6508_v14  ;;  %2069 = vperm.xlu1 %5571, %v1975_v47   ;;  %v5122_v33 = vmul.f32 -1.442695, %v6539_v39  ;;  %v5138_v47 = vmul.f32 -1.442695, %v6548_v45 }
 0x1f1   : > { %v5684_v35 = vpop.eup %5683  ;;  %5159 = vmatmul.mubr.msk.bf16.gmra.mrb[24].mxu0 %vm956_vm0, %v6645_v61  ;;  %5703 = vtanh.f32 %v6510_v15  ;;  %v1792_v52 = vadd.f32 1.0, %v5682_v37 }
 0x1f2   : > { %v5686_v12 = vpop.eup %5685  ;;  %v6664_v50 = vpack.c.bf16 %v1902_v0, %v1886_v40  ;;  %2342 = vmatprep.mubr.bf16.mxu0 %v8692_v8  ;;  %5705 = vpow2.f32 %v5134_v36  ;;  %v1794_v2 = vadd.f32 1.0, %v5684_v35  ;;  %v5124_v0 = vmul.f32 -1.442695, %v6542_v41 }
 0x1f3   : > { %v5688_v51 = vpop.eup %5687  ;;  %v1901_v1 = vmul.f32 %v5686_v12, %v5670_v10  ;;  %5707 = vtanh.f32 %v6514_v18  ;;  %v1974_v18 = vld [vmem:[%s8675_s6 + $0x70] sm:$0xff]  ;;  %v5139_v12 = vmul.f32 -1.442695, %v6546_v44 }
 0x1f4   : > { %8715 = vst [vmem:[#allocation20_spill] sm:$0xff] %v6664_v50  ;;  %v5690_v53 = vpop.eup %5689  ;;  %5709 = vtanh.f32 %v6516_v19  ;;  %v1887_v19 = vmul.f32 %v5688_v51, %v6616_v54  ;;  %2064 = vperm.xlu0 %5570, %v1974_v18   ;;  %v4338_v54 = vld [vmem:[%s8676_s7] sm:$0xff]  ;;  %v6737_v51 = vld [vmem:[%s8673_s4 + $0x28] sm:$0xff]  }
 0x1f5   : > { %v5692_v14 = vpop.eup %5691  ;;  %v6670_v15 = vpack.c.bf16 %v1901_v1, %v1885_v43  ;;  %5175 = vmatmul.mubr.msk.bf16.gmra.mrb[24].mxu1 %vm956_vm0, %v6645_v61  ;;  %5711 = vpow2.f32 %v5136_v49  ;;  %v1793_v3 = vadd.f32 1.0, %v5690_v53  ;;  %4342 = vperm.xlu1 %5571, %v4338_v54   ;;  %v1979_v1 = vld [vmem:[%s8675_s6 + $0x98] sm:$0xff]  ;;  %v1978_v53 = vld [vmem:[%s8675_s6 + $0x90] sm:$0xff] }
 0x1f6   : > { %v1903_v56 = vmul.f32 %v5692_v14, %v5676_v23  ;;  %2535 = vmatprep.mubr.bf16.mxu1 %v8692_v8  ;;  %v5694_v58 = vpop.eup %5693  ;;  %5713 = vrcp.f32 %v1792_v52 }
 0x1f7   : > { %2666 = vmatprep.subr.bf16.mxu0 %v6670_v15  ;;  %v5696_v62 = vpop.eup %5695  ;;  %v1808_v4 = vadd.f32 1.0, %v5694_v58  ;;  %5715 = vtanh.f32 %v6520_v21 }
 0x1f8   : > { %v6689_v5 = vpack.c.bf16 %v1903_v56, %v1887_v19  ;;  %2667 = vmatpush1.bf16.msra.mxu0 %v6656_v30  ;;  %v5698_v6 = vpop.eup %5697  ;;  %5717 = vrcp.f32 %v1794_v2  ;;  %2074 = vperm.xlu0 %5570, %v1976_v17  }
 0x1f9   : > { %5160 = vmatmul.mubr.msk.bf16.gmra.mrb[28].mxu0 %vm956_vm0, %v6677_v55  ;;  %v5700_v59 = vpop.eup %5699  ;;  %5719 = vrcp.f32 %v1808_v4  ;;  %v1795_v13 = vadd.f32 1.0, %v5698_v6  ;;  %v5140_v4 = vmul.f32 -1.442695, %v6551_v48 }
 0x1fa   : > { %2859 = vmatprep.subr.bf16.mxu1 %v6689_v5  ;;  %2352 = vmatprep.mubr.bf16.mxu0 %v8692_v8  ;;  %v5702_v21 = vpop.eup %5701  ;;  %v1810_v7 = vadd.f32 1.0, %v5700_v59  ;;  %5721 = vtanh.f32 %v6523_v24  ;;  %v1977_v24 = vld [vmem:[%s8675_s6 + $0x88] sm:$0xff] }
 0x1fb   : > { %2860 = vmatpush1.bf16.msra.mxu1 %v6664_v50  ;;  %v6702_v60 = vpop.eup %5703  ;;  %5723 = vrcp.f32 %v1793_v3  ;;  %2079 = vperm.xlu1 %5571, %v1977_v24  }
 0x1fc   : > { %v5706_v10 = vpop.eup %5705  ;;  %5725 = vrcp.f32 %v1810_v7  ;;  %4347 = vperm.xlu0 %5570, %v4339_v29  }
 0x1fd   : > { %5176 = vmatmul.mubr.msk.bf16.gmra.mrb[28].mxu1 %vm956_vm0, %v6677_v55  ;;  %v6717_v22 = vpop.eup %5707  ;;  %v1809_v23 = vadd.f32 1.0, %v5706_v10  ;;  %5727 = vtanh.f32 %v6525_v25  ;;  %v5137_v25 = vmul.f32 -1.442695, %v6544_v42 }
 0x1fe   : > { %2545 = vmatprep.mubr.bf16.mxu1 %v8692_v8  ;;  %v5710_v27 = vpop.eup %5709  ;;  %5729 = vpow2.f32 %v5121_v9 }
 0x1ff   : > { %v5712_v20 = vpop.eup %5711  ;;  %5731 = vrcp.f32 %v1809_v23  ;;  %2089 = vperm.xlu1 %5571, %v1979_v1  }
 0x200   : > { %v5714_v31 = vpop.eup %5713  ;;  %5733 = vrcp.f32 %v1795_v13  ;;  %v1811_v36 = vadd.f32 1.0, %v5712_v20  ;;  %2084 = vperm.xlu0 %5570, %v1978_v53  }
 0x201   : > { %5161 = vmatmul.mubr.msk.bf16.gmra.mrb[32].mxu0 %vm956_vm0, %v6709_v16  ;;  %v5716_v37 = vpop.eup %5715  ;;  %5735 = vpow2.f32 %v5123_v26  ;;  %v1888_v52 = vmul.f32 %v5714_v31, %v5696_v62 }
 0x202   : > { %2362 = vmatprep.mubr.bf16.mxu0 %v8692_v8  ;;  %v5718_v40 = vpop.eup %5717  ;;  %5737 = vrcp.f32 %v1811_v36 }
 0x203   : > { %v5720_v35 = vpop.eup %5719  ;;  %5739 = vpow2.f32 %v5122_v33  ;;  %v1890_v56 = vmul.f32 %v5718_v40, %v5702_v21  ;;  %v1982_v40 = vld [vmem:[%s8675_s6 + $0xb0] sm:$0xff] }
 0x204   : > { %v5722_v49 = vpop.eup %5721  ;;  %5741 = vpow2.f32 %v5137_v25  ;;  %v1904_v43 = vmul.f32 %v5720_v35, %v5710_v27 }
 0x205   : > { %5177 = vmatmul.mubr.msk.bf16.gmra.mrb[32].mxu1 %vm956_vm0, %v6709_v16  ;;  %v5724_v14 = vpop.eup %5723  ;;  %5743 = vpow2.f32 %v5124_v0 }
 0x206   : > { %2555 = vmatprep.mubr.bf16.mxu1 %v8692_v8  ;;  %v5726_v2 = vpop.eup %5725  ;;  %v6747_v18 = vpack.c.bf16 %v1904_v43, %v1888_v52  ;;  %5745 = vpow2.f32 %v5139_v12  ;;  %v1889_v59 = vmul.f32 %v5724_v14, %v6702_v60  ;;  %v1981_v60 = vld [vmem:[%s8675_s6 + $0xa8] sm:$0xff] }
 0x207   : > { %v5728_v19 = vpop.eup %5727  ;;  %v1906_v58 = vmul.f32 %v5726_v2, %v5716_v37  ;;  %5747 = vtanh.f32 %v6532_v34  ;;  %v6766_v34 = vld [vmem:[%s8673_s4 + $0x30] sm:$0xff]   ;;  %2099 = vperm.xlu1 %5571, %v1981_v60   ;;  %v1983_v37 = vld [vmem:[%s8675_s6 + $0xb8] sm:$0xff]  ;;  %v1985_v2 = vld [vmem:[%s8675_s6 + $0xc8] sm:$0xff] }
 0x208   : > { %8716 = vst [vmem:[#allocation21_spill] sm:$0xff] %v6747_v18  ;;  %v5730_v62 = vpop.eup %5729  ;;  %5749 = vpow2.f32 %v5138_v47 }
 0x209   : > { %5162 = vmatmul.mubr.msk.bf16.gmra.mrb[36].mxu0 %vm956_vm0, %v6737_v51  ;;  %v5732_v3 = vpop.eup %5731  ;;  %v6754_v54 = vpack.c.bf16 %v1906_v58, %v1890_v56  ;;  %v1796_v9 = vadd.f32 1.0, %v5730_v62  ;;  %5751 = vtanh.f32 %v6537_v38  ;;  %v1980_v38 = vld [vmem:[%s8675_s6 + $0xa0] sm:$0xff] }
 0x20a   : > { %2372 = vmatprep.mubr.bf16.mxu0 %v8692_v8  ;;  %v5734_v6 = vpop.eup %5733  ;;  %v1905_v7 = vmul.f32 %v5732_v3, %v5722_v49  ;;  %5753 = vtanh.f32 %v6539_v39  ;;  %2094 = vperm.xlu0 %5570, %v1980_v38  }
 0x20b   : > { %8717 = vst [vmem:[#allocation22_spill] sm:$0xff] %v6754_v54  ;;  %v5736_v21 = vpop.eup %5735  ;;  %5755 = vpow2.f32 %v5140_v4  ;;  %v1891_v39 = vmul.f32 %v5734_v6, %v6717_v22  ;;  %2109 = vperm.xlu1 %5571, %v1983_v37   ;;  %v1990_v37 = vld [vmem:[%s8675_s6 + $0xf0] sm:$0xff] }
 0x20c   : > { %v5738_v10 = vpop.eup %5737  ;;  %v6759_v13 = vpack.c.bf16 %v1905_v7, %v1889_v59  ;;  %v1798_v26 = vadd.f32 1.0, %v5736_v21  ;;  %5757 = vtanh.f32 %v6542_v41 }
 0x20d   : > { %5178 = vmatmul.mubr.msk.bf16.gmra.mrb[36].mxu1 %vm956_vm0, %v6737_v51  ;;  %v5740_v24 = vpop.eup %5739  ;;  %v1907_v17 = vmul.f32 %v5738_v10, %v5728_v19  ;;  %5759 = vrcp.f32 %v1796_v9 }
 0x20e   : > { %8718 = vst [vmem:[#allocation23_spill] sm:$0xff] %v6759_v13  ;;  %2565 = vmatprep.mubr.bf16.mxu1 %v8692_v8  ;;  %v5742_v23 = vpop.eup %5741  ;;  %3052 = vmatprep.subr.bf16.mxu0 %v6759_v13  ;;  %5761 = vtanh.f32 %v6544_v42  ;;  %v1797_v33 = vadd.f32 1.0, %v5740_v24  ;;  %v6791_v42 = vld [vmem:[%s8673_s4 + $0x38] sm:$0xff]  }
 0x20f   : > { %v1812_v27 = vadd.f32 1.0, %v5742_v23  ;;  %v6778_v29 = vpack.c.bf16 %v1907_v17, %v1891_v39  ;;  %v5744_v20 = vpop.eup %5743  ;;  %2104 = vperm.xlu0 %5570, %v1982_v40   ;;  %2119 = vperm.xlu1 %5571, %v1985_v2   ;;  %v6831_v39 = vld [vmem:[%s8673_s4 + $0x48] sm:$0xff]   ;;  %v1987_v23 = vld [vmem:[%s8675_s6 + $0xd8] sm:$0xff]  ;;  %v6886_v40 = vld [vmem:[%s8673_s4 + $0x60] sm:$0xff]  }
 0x210   : > { %v5746_v22 = vpop.eup %5745  ;;  %v1799_v25 = vadd.f32 1.0, %v5744_v20 }
 0x211   : > { %8719 = vst [vmem:[#allocation24_spill] sm:$0xff] %v6778_v29  ;;  %5163 = vmatmul.mubr.msk.bf16.gmra.mrb[40].mxu0 %vm956_vm0, %v6766_v34  ;;  %5763 = vrcp.f32 %v1812_v27  ;;  %3245 = vmatprep.subr.bf16.mxu1 %v6778_v29  ;;  %v1814_v41 = vadd.f32 1.0, %v5746_v22  ;;  %v5748_v31 = vpop.eup %5747 }
 0x212   : > { %2382 = vmatprep.mubr.bf16.mxu0 %v8692_v8  ;;  %5765 = vrcp.f32 %v1798_v26  ;;  %v5750_v36 = vpop.eup %5749  ;;  %v1986_v26 = vld [vmem:[%s8675_s6 + $0xd0] sm:$0xff] }
 0x213   : > { %5767 = vtanh.f32 %v6546_v44  ;;  %v5752_v44 = vpop.eup %5751  ;;  %v1813_v0 = vadd.f32 1.0, %v5750_v36  ;;  %2129 = vperm.xlu1 %5571, %v1987_v23   ;;  %v6869_v36 = vld [vmem:[%s8673_s4 + $0x58] sm:$0xff]  }
 0x214   : > { %5769 = vrcp.f32 %v1814_v41  ;;  %v5754_v35 = vpop.eup %5753  ;;  %v1989_v41 = vld [vmem:[%s8675_s6 + $0xe8] sm:$0xff] }
 0x215   : > { %5179 = vmatmul.mubr.msk.bf16.gmra.mrb[40].mxu1 %vm956_vm0, %v6766_v34  ;;  %5771 = vrcp.f32 %v1797_v33  ;;  %v5756_v12 = vpop.eup %5755  ;;  %v6852_v33 = vld [vmem:[%s8673_s4 + $0x50] sm:$0xff]  }
 0x216   : > { %2575 = vmatprep.mubr.bf16.mxu1 %v8692_v8  ;;  %5773 = vtanh.f32 %v6548_v45  ;;  %v5758_v49 = vpop.eup %5757  ;;  %v1815_v52 = vadd.f32 1.0, %v5756_v12  ;;  %v6810_v45 = vld [vmem:[%s8673_s4 + $0x40] sm:$0xff]  }
 0x217   : > { %5775 = vrcp.f32 %v1813_v0  ;;  %v5760_v43 = vpop.eup %5759  ;;  %2139 = vperm.xlu1 %5571, %v1989_v41   ;;  %v6908_v0 = vld [vmem:[%s8673_s4 + $0x70] sm:$0xff]  }
 0x218   : > { %5777 = vrcp.f32 %v1799_v25  ;;  %v5762_v1 = vpop.eup %5761  ;;  %v1892_v47 = vmul.f32 %v5760_v43, %v5748_v31  ;;  %v1988_v31 = vld [vmem:[%s8675_s6 + $0xe0] sm:$0xff]  ;;  %v1991_v25 = vld [vmem:[%s8675_s6 + $0xf8] sm:$0xff] }
 0x219   : > { %5164 = vmatmul.mubr.msk.bf16.gmra.mrb[44].mxu0 %vm956_vm0, %v6791_v42  ;;  %5779 = vtanh.f32 %v6551_v48  ;;  %v1984_v48 = vld [vmem:[%s8675_s6 + $0xc0] sm:$0xff] }
 0x21a   : > { %2392 = vmatprep.mubr.bf16.mxu0 %v8692_v8  ;;  %5781 = vrcp.f32 %v1815_v52  ;;  %2114 = vperm.xlu0 %5570, %v1984_v48  }
 0x21b   : > { %v5764_v53 = vpop.eup %5763  ;;  %2149 = vperm.xlu1 %5571, %v1991_v25  }
 0x21c   : > { %v5766_v14 = vpop.eup %5765  ;;  %v1908_v19 = vmul.f32 %v5764_v53, %v5762_v1 }
 0x21d   : > { %5180 = vmatmul.mubr.msk.bf16.gmra.mrb[44].mxu1 %vm956_vm0, %v6791_v42  ;;  %v5768_v56 = vpop.eup %5767  ;;  %v1894_v4 = vmul.f32 %v5766_v14, %v5752_v44  ;;  %v6897_v44 = vld [vmem:[%s8673_s4 + $0x68] sm:$0xff]  }
 0x21e   : > { %2585 = vmatprep.mubr.bf16.mxu1 %v8692_v8  ;;  %v5770_v58 = vpop.eup %5769  ;;  %v6819_v62 = vpack.c.bf16 %v1908_v19, %v1892_v47  ;;  %2124 = vperm.xlu0 %5570, %v1986_v26  }
 0x21f   : > { %v5772_v3 = vpop.eup %5771  ;;  %v1910_v6 = vmul.f32 %v5770_v58, %v5768_v56 }
 0x220   : > { %8720 = vst [vmem:[#allocation25_spill] sm:$0xff] %v6819_v62  ;;  %v5774_v59 = vpop.eup %5773  ;;  %v1893_v10 = vmul.f32 %v5772_v3, %v5754_v35  ;;  %v6919_v35 = vld [vmem:[%s8673_s4 + $0x78] sm:$0xff]  }
 0x221   : > { %5165 = vmatmul.mubr.msk.bf16.gmra.mrb[48].mxu0 %vm956_vm0, %v6810_v45  ;;  %v5776_v7 = vpop.eup %5775  ;;  %v6824_v21 = vpack.c.bf16 %v1910_v6, %v1894_v4 }
 0x222   : > { %2402 = vmatprep.mubr.bf16.mxu0 %v8692_v8  ;;  %v5778_v9 = vpop.eup %5777  ;;  %v1909_v60 = vmul.f32 %v5776_v7, %v5774_v59  ;;  %2134 = vperm.xlu0 %5570, %v1988_v31  }
 0x223   : > { %8721 = vst [vmem:[#allocation26_spill] sm:$0xff] %v6824_v21  ;;  %v5780_v38 = vpop.eup %5779  ;;  %v1895_v27 = vmul.f32 %v5778_v9, %v5758_v49 }
 0x224   : > { %v5782_v24 = vpop.eup %5781  ;;  %v6833_v17 = vpack.c.bf16 %v1909_v60, %v1893_v10 }
 0x225   : > { %5181 = vmatmul.mubr.msk.bf16.gmra.mrb[48].mxu1 %vm956_vm0, %v6810_v45  ;;  %v1911_v20 = vmul.f32 %v5782_v24, %v5780_v38 }
 0x226   : > { %8722 = vst [vmem:[#allocation27_spill] sm:$0xff] %v6833_v17  ;;  %2595 = vmatprep.mubr.bf16.mxu1 %v8692_v8  ;;  %2144 = vperm.xlu0 %5570, %v1990_v37  }
 0x227   : > { %v6842_v22 = vpack.c.bf16 %v1911_v20, %v1895_v27 }
 0x229   : > { %8723 = vst [vmem:[#allocation28_spill] sm:$0xff] %v6842_v22  ;;  %5166 = vmatmul.mubr.msk.bf16.gmra.mrb[52].mxu0 %vm956_vm0, %v6831_v39 }
 0x22a   : > { %2412 = vmatprep.mubr.bf16.mxu0 %v8692_v8 }
 0x22d   : > { %5182 = vmatmul.mubr.msk.bf16.gmra.mrb[52].mxu1 %vm956_vm0, %v6831_v39 }
 0x22e   : > { %2605 = vmatprep.mubr.bf16.mxu1 %v8692_v8 }
 0x231   : > { %5167 = vmatmul.mubr.msk.bf16.gmra.mrb[56].mxu0 %vm956_vm0, %v6852_v33 }
 0x232   : > { %2422 = vmatprep.mubr.bf16.mxu0 %v8692_v8 }
 0x235   : > { %5183 = vmatmul.mubr.msk.bf16.gmra.mrb[56].mxu1 %vm956_vm0, %v6852_v33 }
 0x236   : > { %2615 = vmatprep.mubr.bf16.mxu1 %v8692_v8 }
 0x239   : > { %5168 = vmatmul.mubr.msk.bf16.gmra.mrb[60].mxu0 %vm956_vm0, %v6869_v36 }
 0x23a   : > { %2432 = vmatprep.mubr.bf16.mxu0 %v8692_v8 }
 0x23d   : > { %5184 = vmatmul.mubr.msk.bf16.gmra.mrb[60].mxu1 %vm956_vm0, %v6869_v36 }
 0x23e   : > { %2625 = vmatprep.mubr.bf16.mxu1 %v8692_v8 }
 0x241   : > { %5169 = vmatmul.mubr.msk.bf16.gmra.mrb[64].mxu0 %vm956_vm0, %v6886_v40 }
 0x242   : > { %2442 = vmatprep.mubr.bf16.mxu0 %v8692_v8 }
 0x245   : > { %5185 = vmatmul.mubr.msk.bf16.gmra.mrb[64].mxu1 %vm956_vm0, %v6886_v40 }
 0x246   : > { %2635 = vmatprep.mubr.bf16.mxu1 %v8692_v8 }
 0x249   : > { %5170 = vmatmul.mubr.msk.bf16.gmra.mrb[68].mxu0 %vm956_vm0, %v6897_v44 }
 0x24a   : > { %2452 = vmatprep.mubr.bf16.mxu0 %v8692_v8 }
 0x24d   : > { %5186 = vmatmul.mubr.msk.bf16.gmra.mrb[68].mxu1 %vm956_vm0, %v6897_v44 }
 0x24e   : > { %2645 = vmatprep.mubr.bf16.mxu1 %v8692_v8 }
 0x251   : > { %5171 = vmatmul.mubr.msk.bf16.gmra.mrb[72].mxu0 %vm956_vm0, %v6908_v0 }
 0x252   : > { %2462 = vmatprep.mubr.bf16.mxu0 %v8692_v8 }
 0x255   : > { %5187 = vmatmul.mubr.msk.bf16.gmra.mrb[72].mxu1 %vm956_vm0, %v6908_v0 }
 0x256   : > { %2655 = vmatprep.mubr.bf16.mxu1 %v8692_v8 }
 0x259   : > { %5172 = vmatmul.mubr.msk.bf16.gmra.mrb[76].mxu0 %vm956_vm0, %v6919_v35 }
 0x25a   : > { %2698 = vmatprep.mubr.bf16.mxu0 %v8692_v8 }
 0x25d   : > { %5188 = vmatmul.mubr.msk.bf16.gmra.mrb[76].mxu1 %vm956_vm0, %v6919_v35 }
 0x25e   : > { %2891 = vmatprep.mubr.bf16.mxu1 %v8692_v8 }
 0x261   : > { %5189 = vmatmul.mubr.msk.bf16.vlgmr.msra.gmra.mrb[80].mxu0 %vm956_vm0, %v6591_v63 }
 0x262   : > { %3053 = vmatpush1.bf16.msra.mxu0 %v6747_v18  ;;  %2708 = vmatprep.mubr.bf16.mxu0 %v8692_v8 }
 0x263   : > { %3438 = vmatprep.subr.bf16.mxu0 %v6833_v17 }
 0x265   : > { %5205 = vmatmul.mubr.msk.bf16.vlgmr.msra.gmra.mrb[80].mxu1 %vm956_vm0, %v6591_v63  ;;  %v6992_v63 = vpop.permute.xlu0 %1994 }
 0x266   : > { %3246 = vmatpush1.bf16.msra.mxu1 %v6754_v54  ;;  %2901 = vmatprep.mubr.bf16.mxu1 %v8692_v8 }
 0x267   : > { %3631 = vmatprep.subr.bf16.mxu1 %v6842_v22 }
 0x269   : > { %5190 = vmatmul.mubr.msk.bf16.gmra.mrb[84].mxu0 %vm956_vm0, %v6623_v57 }
 0x26a   : > { %2718 = vmatprep.mubr.bf16.mxu0 %v8692_v8 }
 0x26d   : > { %5206 = vmatmul.mubr.msk.bf16.gmra.mrb[84].mxu1 %vm956_vm0, %v6623_v57 }
 0x26e   : > { %2911 = vmatprep.mubr.bf16.mxu1 %v8692_v8 }
 0x271   : > { %5191 = vmatmul.mubr.msk.bf16.gmra.mrb[88].mxu0 %vm956_vm0, %v6645_v61 }
 0x272   : > { %2728 = vmatprep.mubr.bf16.mxu0 %v8692_v8 }
 0x275   : > { %5207 = vmatmul.mubr.msk.bf16.gmra.mrb[88].mxu1 %vm956_vm0, %v6645_v61  ;;  %v6998_v61 = vpop.permute.xlu0 %1999 }
 0x276   : > { %2921 = vmatprep.mubr.bf16.mxu1 %v8692_v8 }
 0x279   : > { %5192 = vmatmul.mubr.msk.bf16.gmra.mrb[92].mxu0 %vm956_vm0, %v6677_v55  ;;  %v7044_v23 = vpop.permute.xlu0 %2014 }
 0x27a   : > { %2738 = vmatprep.mubr.bf16.mxu0 %v8692_v8 }
 0x27d   : > { %5208 = vmatmul.mubr.msk.bf16.gmra.mrb[92].mxu1 %vm956_vm0, %v6677_v55 }
 0x27e   : > { %2931 = vmatprep.mubr.bf16.mxu1 %v8692_v8 }
 0x281   : > { %5193 = vmatmul.mubr.msk.bf16.gmra.mrb[96].mxu0 %vm956_vm0, %v6709_v16 }
 0x282   : > { %2748 = vmatprep.mubr.bf16.mxu0 %v8692_v8 }
 0x285   : > { %5209 = vmatmul.mubr.msk.bf16.gmra.mrb[96].mxu1 %vm956_vm0, %v6709_v16 }
 0x286   : > { %2941 = vmatprep.mubr.bf16.mxu1 %v8692_v8 }
 0x289   : > { %5194 = vmatmul.mubr.msk.bf16.gmra.mrb[100].mxu0 %vm956_vm0, %v6737_v51 }
 0x28a   : > { %2758 = vmatprep.mubr.bf16.mxu0 %v8692_v8 }
 0x28d   : > { %5210 = vmatmul.mubr.msk.bf16.gmra.mrb[100].mxu1 %vm956_vm0, %v6737_v51 }
 0x28e   : > { %2951 = vmatprep.mubr.bf16.mxu1 %v8692_v8 }
 0x291   : > { %5195 = vmatmul.mubr.msk.bf16.gmra.mrb[104].mxu0 %vm956_vm0, %v6766_v34 }
 0x292   : > { %2768 = vmatprep.mubr.bf16.mxu0 %v8692_v8 }
 0x295   : > { %5211 = vmatmul.mubr.msk.bf16.gmra.mrb[104].mxu1 %vm956_vm0, %v6766_v34 }
 0x296   : > { %2961 = vmatprep.mubr.bf16.mxu1 %v8692_v8 }
 0x299   : > { %5196 = vmatmul.mubr.msk.bf16.gmra.mrb[108].mxu0 %vm956_vm0, %v6791_v42 }
 0x29a   : > { %2778 = vmatprep.mubr.bf16.mxu0 %v8692_v8 }
 0x29d   : > { %5212 = vmatmul.mubr.msk.bf16.gmra.mrb[108].mxu1 %vm956_vm0, %v6791_v42  ;;  %v7005_v42 = vpop.permute.xlu1 %2004 }
 0x29e   : > { %2971 = vmatprep.mubr.bf16.mxu1 %v8692_v8 }
 0x2a1   : > { %5197 = vmatmul.mubr.msk.bf16.gmra.mrb[112].mxu0 %vm956_vm0, %v6810_v45  ;;  %v7024_v56 = vpop.permute.xlu1 %2009 }
 0x2a2   : > { %2788 = vmatprep.mubr.bf16.mxu0 %v8692_v8 }
 0x2a5   : > { %5213 = vmatmul.mubr.msk.bf16.gmra.mrb[112].mxu1 %vm956_vm0, %v6810_v45  ;;  %v7050_v41 = vpop.permute.xlu1 %2019 }
 0x2a6   : > { %2981 = vmatprep.mubr.bf16.mxu1 %v8692_v8 }
 0x2a9   : > { %5198 = vmatmul.mubr.msk.bf16.gmra.mrb[116].mxu0 %vm956_vm0, %v6831_v39 }
 0x2aa   : > { %2798 = vmatprep.mubr.bf16.mxu0 %v8692_v8 }
 0x2ad   : > { %5214 = vmatmul.mubr.msk.bf16.gmra.mrb[116].mxu1 %vm956_vm0, %v6831_v39 }
 0x2ae   : > { %2991 = vmatprep.mubr.bf16.mxu1 %v8692_v8 }
 0x2b1   : > { %5199 = vmatmul.mubr.msk.bf16.gmra.mrb[120].mxu0 %vm956_vm0, %v6852_v33 }
 0x2b2   : > { %2808 = vmatprep.mubr.bf16.mxu0 %v8692_v8 }
 0x2b4   : > { %v2314_v57 = vpop.f32.mrb[16].mxu0 }
 0x2b5   : > { %5215 = vmatmul.mubr.msk.bf16.gmra.mrb[120].mxu1 %vm956_vm0, %v6852_v33  ;;  %v2315_v55 = vadd.f32 %v2314_v57, %v6992_v63  ;;  %v2316_v16 = vpop.f32.mrb[17].mxu0 }
 0x2b6   : > { %v2317_v51 = vadd.f32 %v2316_v16, %v6992_v63  ;;  %v2318_v34 = vpop.f32.mrb[18].mxu0  ;;  %3001 = vmatprep.mubr.bf16.mxu1 %v8692_v8 }
 0x2b7   : > { %3824 = vst [vmem:[%s7007_s0] sm:$0xff] %v2315_v55  ;;  %v2319_v12 = vadd.f32 %v2318_v34, %v6998_v61  ;;  %v2320_v49 = vpop.f32.mrb[19].mxu0 }
 0x2b8   : > { %v2507_v52 = vpop.f32.mrb[16].mxu1  ;;  %3825 = vst [vmem:[%s7007_s0 + $0x8] sm:$0xff] %v2317_v51  ;;  %v2321_v43 = vadd.f32 %v2320_v49, %v6998_v61 }
 0x2b9   : > { %v2508_v1 = vadd.f32 %v2507_v52, %v6992_v63  ;;  %v2509_v53 = vpop.f32.mrb[17].mxu1  ;;  %3840 = vst [vmem:[%s7007_s0 + $0x80] sm:$0xff] %v2319_v12  ;;  %5200 = vmatmul.mubr.msk.bf16.gmra.mrb[124].mxu0 %vm956_vm0, %v6869_v36  ;;  %v7070_v52 = vpop.permute.xlu0 %2024 }
 0x2ba   : > { %v2510_v14 = vadd.f32 %v2509_v53, %v6992_v63  ;;  %v2511_v45 = vpop.f32.mrb[18].mxu1  ;;  %3841 = vst [vmem:[%s7007_s0 + $0x88] sm:$0xff] %v2321_v43  ;;  %2818 = vmatprep.mubr.bf16.mxu0 %v8692_v8 }
 0x2bb   : > { %3826 = vst [vmem:[%s7007_s0 + $0x10] sm:$0xff] %v2508_v1  ;;  %v2512_v2 = vadd.f32 %v2511_v45, %v6998_v61  ;;  %v2513_v48 = vpop.f32.mrb[19].mxu1  ;;  %v7076_v45 = vpop.permute.xlu1 %2029 }
 0x2bc   : > { %3827 = vst [vmem:[%s7007_s0 + $0x18] sm:$0xff] %v2510_v14  ;;  %v2514_v47 = vadd.f32 %v2513_v48, %v6998_v61  ;;  %v2324_v19 = vpop.f32.mrb[20].mxu0 }
 0x2bd   : > { %3842 = vst [vmem:[%s7007_s0 + $0x90] sm:$0xff] %v2512_v2  ;;  %5216 = vmatmul.mubr.msk.bf16.gmra.mrb[124].mxu1 %vm956_vm0, %v6869_v36  ;;  %v2325_v58 = vadd.f32 %v2324_v19, %v7005_v42  ;;  %v2326_v3 = vpop.f32.mrb[21].mxu0 }
 0x2be   : > { %3843 = vst [vmem:[%s7007_s0 + $0x98] sm:$0xff] %v2514_v47  ;;  %v2327_v4 = vadd.f32 %v2326_v3, %v7005_v42  ;;  %v2328_v6 = vpop.f32.mrb[22].mxu0  ;;  %3011 = vmatprep.mubr.bf16.mxu1 %v8692_v8 }
 0x2bf   : > { %3856 = vst [vmem:[%s7007_s0 + $0x100] sm:$0xff] %v2325_v58  ;;  %v2329_v59 = vadd.f32 %v2328_v6, %v7024_v56  ;;  %v2330_v7 = vpop.f32.mrb[23].mxu0 }
 0x2c0   : > { %v2517_v9 = vpop.f32.mrb[20].mxu1  ;;  %3857 = vst [vmem:[%s7007_s0 + $0x108] sm:$0xff] %v2327_v4  ;;  %v2331_v10 = vadd.f32 %v2330_v7, %v7024_v56 }
 0x2c1   : > { %v2518_v60 = vadd.f32 %v2517_v9, %v7005_v42  ;;  %v2519_v38 = vpop.f32.mrb[21].mxu1  ;;  %3872 = vst [vmem:[%s7007_s0 + $0x180] sm:$0xff] %v2329_v59  ;;  %5201 = vmatmul.mubr.msk.bf16.gmra.mrb[128].mxu0 %vm956_vm0, %v6886_v40 }
 0x2c2   : > { %v2520_v24 = vadd.f32 %v2519_v38, %v7005_v42  ;;  %v2521_v39 = vpop.f32.mrb[22].mxu1  ;;  %3873 = vst [vmem:[%s7007_s0 + $0x188] sm:$0xff] %v2331_v10  ;;  %2828 = vmatprep.mubr.bf16.mxu0 %v8692_v8  ;;  %v7096_v10 = vpop.permute.xlu0 %2034 }
 0x2c3   : > { %3858 = vst [vmem:[%s7007_s0 + $0x110] sm:$0xff] %v2518_v60  ;;  %v2522_v26 = vadd.f32 %v2521_v39, %v7024_v56  ;;  %v2523_v27 = vpop.f32.mrb[23].mxu1 }
 0x2c4   : > { %3859 = vst [vmem:[%s7007_s0 + $0x118] sm:$0xff] %v2520_v24  ;;  %v2524_v20 = vadd.f32 %v2523_v27, %v7024_v56  ;;  %v2334_v33 = vpop.f32.mrb[24].mxu0 }
 0x2c5   : > { %3874 = vst [vmem:[%s7007_s0 + $0x190] sm:$0xff] %v2522_v26  ;;  %5217 = vmatmul.mubr.msk.bf16.gmra.mrb[128].mxu1 %vm956_vm0, %v6886_v40  ;;  %v2336_v31 = vpop.f32.mrb[25].mxu0  ;;  %v2335_v36 = vadd.f32 %v2334_v33, %v7044_v23  ;;  %v7102_v26 = vpop.permute.xlu1 %2039 }
 0x2c6   : > { %3875 = vst [vmem:[%s7007_s0 + $0x198] sm:$0xff] %v2524_v20  ;;  %v2338_v25 = vpop.f32.mrb[26].mxu0  ;;  %3021 = vmatprep.mubr.bf16.mxu1 %v8692_v8  ;;  %v2337_v37 = vadd.f32 %v2336_v31, %v7044_v23 }
 0x2c7   : > { %v2339_v57 = vadd.f32 %v2338_v25, %v7050_v41  ;;  %3888 = vst [vmem:[%s7007_s0 + $0x200] sm:$0xff] %v2335_v36  ;;  %v2340_v55 = vpop.f32.mrb[27].mxu0 }
 0x2c8   : > { %v2527_v16 = vpop.f32.mrb[24].mxu1  ;;  %3889 = vst [vmem:[%s7007_s0 + $0x208] sm:$0xff] %v2337_v37  ;;  %v2341_v40 = vadd.f32 %v2340_v55, %v7050_v41 }
 0x2c9   : > { %v2529_v51 = vpop.f32.mrb[25].mxu1  ;;  %3904 = vst [vmem:[%s7007_s0 + $0x280] sm:$0xff] %v2339_v57  ;;  %v2528_v34 = vadd.f32 %v2527_v16, %v7044_v23  ;;  %5202 = vmatmul.mubr.msk.bf16.gmra.mrb[132].mxu0 %vm956_vm0, %v6897_v44 }
 0x2ca   : > { %v2531_v12 = vpop.f32.mrb[26].mxu1  ;;  %v2530_v49 = vadd.f32 %v2529_v51, %v7044_v23  ;;  %3905 = vst [vmem:[%s7007_s0 + $0x288] sm:$0xff] %v2341_v40  ;;  %2838 = vmatprep.mubr.bf16.mxu0 %v8692_v8  ;;  %v7122_v51 = vpop.permute.xlu0 %2044 }
 0x2cb   : > { %v2532_v43 = vadd.f32 %v2531_v12, %v7050_v41  ;;  %3890 = vst [vmem:[%s7007_s0 + $0x210] sm:$0xff] %v2528_v34  ;;  %v2533_v1 = vpop.f32.mrb[27].mxu1 }
 0x2cc   : > { %3891 = vst [vmem:[%s7007_s0 + $0x218] sm:$0xff] %v2530_v49  ;;  %v2534_v53 = vadd.f32 %v2533_v1, %v7050_v41  ;;  %v2344_v14 = vpop.f32.mrb[28].mxu0  ;;  %v7128_v1 = vpop.permute.xlu1 %2049 }
 0x2cd   : > { %3906 = vst [vmem:[%s7007_s0 + $0x290] sm:$0xff] %v2532_v43  ;;  %5218 = vmatmul.mubr.msk.bf16.gmra.mrb[132].mxu1 %vm956_vm0, %v6897_v44  ;;  %v2346_v2 = vpop.f32.mrb[29].mxu0  ;;  %v2345_v48 = vadd.f32 %v2344_v14, %v7070_v52 }
 0x2ce   : > { %3907 = vst [vmem:[%s7007_s0 + $0x298] sm:$0xff] %v2534_v53  ;;  %v2348_v47 = vpop.f32.mrb[30].mxu0  ;;  %3031 = vmatprep.mubr.bf16.mxu1 %v8692_v8  ;;  %v2347_v19 = vadd.f32 %v2346_v2, %v7070_v52 }
 0x2cf   : > { %v2349_v58 = vadd.f32 %v2348_v47, %v7076_v45  ;;  %3920 = vst [vmem:[%s7007_s0 + $0x300] sm:$0xff] %v2345_v48  ;;  %v2350_v3 = vpop.f32.mrb[31].mxu0 }
 0x2d0   : > { %v2537_v4 = vpop.f32.mrb[28].mxu1  ;;  %3921 = vst [vmem:[%s7007_s0 + $0x308] sm:$0xff] %v2347_v19  ;;  %v2351_v44 = vadd.f32 %v2350_v3, %v7076_v45 }
 0x2d1   : > { %v2539_v6 = vpop.f32.mrb[29].mxu1  ;;  %3936 = vst [vmem:[%s7007_s0 + $0x380] sm:$0xff] %v2349_v58  ;;  %v2538_v59 = vadd.f32 %v2537_v4, %v7070_v52  ;;  %5203 = vmatmul.mubr.msk.bf16.gmra.mrb[136].mxu0 %vm956_vm0, %v6908_v0 }
 0x2d2   : > { %v2541_v7 = vpop.f32.mrb[30].mxu1  ;;  %v2540_v9 = vadd.f32 %v2539_v6, %v7070_v52  ;;  %3937 = vst [vmem:[%s7007_s0 + $0x388] sm:$0xff] %v2351_v44  ;;  %2848 = vmatprep.mubr.bf16.mxu0 %v8692_v8  ;;  %v7146_v44 = vld [vmem:[%s8673_s4] sm:$0xff]  }
 0x2d3   : > { %v2542_v60 = vadd.f32 %v2541_v7, %v7076_v45  ;;  %3922 = vst [vmem:[%s7007_s0 + $0x310] sm:$0xff] %v2538_v59  ;;  %v2543_v38 = vpop.f32.mrb[31].mxu1  ;;  %v7154_v7 = vpop.permute.xlu0 %2054 }
 0x2d4   : > { %3923 = vst [vmem:[%s7007_s0 + $0x318] sm:$0xff] %v2540_v9  ;;  %v2544_v24 = vadd.f32 %v2543_v38, %v7076_v45  ;;  %v2354_v39 = vpop.f32.mrb[32].mxu0  ;;  %v7159_v38 = vpop.permute.xlu1 %2059 }
 0x2d5   : > { %3938 = vst [vmem:[%s7007_s0 + $0x390] sm:$0xff] %v2542_v60  ;;  %5219 = vmatmul.mubr.msk.bf16.gmra.mrb[136].mxu1 %vm956_vm0, %v6908_v0  ;;  %v2356_v27 = vpop.f32.mrb[33].mxu0  ;;  %v2355_v20 = vadd.f32 %v2354_v39, %v7096_v10 }
 0x2d6   : > { %3939 = vst [vmem:[%s7007_s0 + $0x398] sm:$0xff] %v2544_v24  ;;  %v2358_v33 = vpop.f32.mrb[34].mxu0  ;;  %3041 = vmatprep.mubr.bf16.mxu1 %v8692_v8  ;;  %v2357_v31 = vadd.f32 %v2356_v27, %v7096_v10 }
 0x2d7   : > { %v2359_v36 = vadd.f32 %v2358_v33, %v7102_v26  ;;  %3952 = vst [vmem:[%s7007_s0 + $0x400] sm:$0xff] %v2355_v20  ;;  %v2360_v25 = vpop.f32.mrb[35].mxu0 }
 0x2d8   : > { %v2547_v37 = vpop.f32.mrb[32].mxu1  ;;  %3953 = vst [vmem:[%s7007_s0 + $0x408] sm:$0xff] %v2357_v31  ;;  %v2361_v0 = vadd.f32 %v2360_v25, %v7102_v26  ;;  %v7174_v25 = vpop.permute.xlu1 %2069 }
 0x2d9   : > { %v2549_v57 = vpop.f32.mrb[33].mxu1  ;;  %3968 = vst [vmem:[%s7007_s0 + $0x480] sm:$0xff] %v2359_v36  ;;  %v2548_v55 = vadd.f32 %v2547_v37, %v7096_v10  ;;  %5204 = vmatmul.mubr.msk.bf16.gmra.mrb[140].mxu0 %vm956_vm0, %v6919_v35 }
 0x2da   : > { %v2551_v16 = vpop.f32.mrb[34].mxu1  ;;  %v2550_v40 = vadd.f32 %v2549_v57, %v7096_v10  ;;  %3969 = vst [vmem:[%s7007_s0 + $0x488] sm:$0xff] %v2361_v0  ;;  %3084 = vmatprep.mubr.bf16.mxu0 %v8692_v8 }
 0x2db   : > { %v2552_v34 = vadd.f32 %v2551_v16, %v7102_v26  ;;  %3954 = vst [vmem:[%s7007_s0 + $0x410] sm:$0xff] %v2548_v55  ;;  %v2553_v12 = vpop.f32.mrb[35].mxu1 }
 0x2dc   : > { %3955 = vst [vmem:[%s7007_s0 + $0x418] sm:$0xff] %v2550_v40  ;;  %v2554_v49 = vadd.f32 %v2553_v12, %v7102_v26  ;;  %v2364_v43 = vpop.f32.mrb[36].mxu0 }
 0x2dd   : > { %3970 = vst [vmem:[%s7007_s0 + $0x490] sm:$0xff] %v2552_v34  ;;  %5220 = vmatmul.mubr.msk.bf16.gmra.mrb[140].mxu1 %vm956_vm0, %v6919_v35  ;;  %v2366_v53 = vpop.f32.mrb[37].mxu0  ;;  %v2365_v14 = vadd.f32 %v2364_v43, %v7122_v51  ;;  %v7190_v34 = vpop.permute.xlu0 %2064 }
 0x2de   : > { %3971 = vst [vmem:[%s7007_s0 + $0x498] sm:$0xff] %v2554_v49  ;;  %v2368_v2 = vpop.f32.mrb[38].mxu0  ;;  %3277 = vmatprep.mubr.bf16.mxu1 %v8692_v8  ;;  %v2367_v48 = vadd.f32 %v2366_v53, %v7122_v51 }
 0x2df   : > { %v2369_v47 = vadd.f32 %v2368_v2, %v7128_v1  ;;  %3984 = vst [vmem:[%s7007_s0 + $0x500] sm:$0xff] %v2365_v14  ;;  %v2370_v19 = vpop.f32.mrb[39].mxu0 }
 0x2e0   : > { %v2557_v58 = vpop.f32.mrb[36].mxu1  ;;  %3985 = vst [vmem:[%s7007_s0 + $0x508] sm:$0xff] %v2367_v48  ;;  %v2371_v3 = vadd.f32 %v2370_v19, %v7128_v1  ;;  %v7200_v48 = vpop.permute.xlu1 %4342 }
 0x2e1   : > { %v2559_v35 = vpop.f32.mrb[37].mxu1  ;;  %4000 = vst [vmem:[%s7007_s0 + $0x580] sm:$0xff] %v2369_v47  ;;  %v2558_v4 = vadd.f32 %v2557_v58, %v7122_v51  ;;  %5221 = vmatmul.mubr.msk.bf16.vlgmr.msra.gmra.mrb[144].mxu0 %vm956_vm0, %v7146_v44  ;;  %8724 = vst [vmem:[#allocation29_spill] sm:$0xff] %v7200_v48  ;;  %v7205_v58 = vpop.permute.xlu0 %2074 }
 0x2e2   : > { %v2561_v6 = vpop.f32.mrb[38].mxu1  ;;  %v2560_v59 = vadd.f32 %v2559_v35, %v7122_v51  ;;  %4001 = vst [vmem:[%s7007_s0 + $0x588] sm:$0xff] %v2371_v3  ;;  %3439 = vmatpush1.bf16.msra.mxu0 %v6819_v62  ;;  %3094 = vmatprep.mubr.bf16.mxu0 %v8692_v8 }
 0x2e3   : > { %v2562_v9 = vadd.f32 %v2561_v6, %v7128_v1  ;;  %3986 = vst [vmem:[%s7007_s0 + $0x510] sm:$0xff] %v2558_v4  ;;  %v2563_v60 = vpop.f32.mrb[39].mxu1  ;;  %4358 = vmatprep.subr.bf16.mxu0 %v6583_v32 }
 0x2e4   : > { %3987 = vst [vmem:[%s7007_s0 + $0x518] sm:$0xff] %v2560_v59  ;;  %v2564_v24 = vadd.f32 %v2563_v60, %v7128_v1  ;;  %v2374_v39 = vpop.f32.mrb[40].mxu0  ;;  %v7216_v60 = vld [vmem:[%s8673_s4 + $0x10] sm:$0xff]  }
 0x2e5   : > { %4002 = vst [vmem:[%s7007_s0 + $0x590] sm:$0xff] %v2562_v9  ;;  %5237 = vmatmul.mubr.msk.bf16.vlgmr.msra.gmra.mrb[144].mxu1 %vm956_vm0, %v7146_v44  ;;  %v2376_v27 = vpop.f32.mrb[41].mxu0  ;;  %v2375_v20 = vadd.f32 %v2374_v39, %v7154_v7 }
 0x2e6   : > { %4003 = vst [vmem:[%s7007_s0 + $0x598] sm:$0xff] %v2564_v24  ;;  %3632 = vmatpush1.bf16.msra.mxu1 %v6824_v21  ;;  %v2378_v32 = vpop.f32.mrb[42].mxu0  ;;  %3287 = vmatprep.mubr.bf16.mxu1 %v8692_v8  ;;  %v2377_v33 = vadd.f32 %v2376_v27, %v7154_v7 }
 0x2e7   : > { %4401 = vmatprep.subr.bf16.mxu1 %v6603_v46  ;;  %v2379_v31 = vadd.f32 %v2378_v32, %v7159_v38  ;;  %4016 = vst [vmem:[%s7007_s0 + $0x600] sm:$0xff] %v2375_v20  ;;  %v2380_v36 = vpop.f32.mrb[43].mxu0  ;;  %v7183_v46 = vld [vmem:[%s8673_s4 + $0x8] sm:$0xff]   ;;  %v7225_v32 = vpop.permute.xlu1 %2079 }
 0x2e8   : > { %v2567_v37 = vpop.f32.mrb[40].mxu1  ;;  %4017 = vst [vmem:[%s7007_s0 + $0x608] sm:$0xff] %v2377_v33  ;;  %v2381_v0 = vadd.f32 %v2380_v36, %v7159_v38  ;;  %v7229_v36 = vpop.permute.xlu0 %4347 }
 0x2e9   : > { %v2569_v57 = vpop.f32.mrb[41].mxu1  ;;  %4032 = vst [vmem:[%s7007_s0 + $0x680] sm:$0xff] %v2379_v31  ;;  %v2568_v55 = vadd.f32 %v2567_v37, %v7154_v7  ;;  %5222 = vmatmul.mubr.msk.bf16.gmra.mrb[148].mxu0 %vm956_vm0, %v7183_v46  ;;  %8725 = vst [vmem:[#allocation30_spill] sm:$0xff] %v7229_v36 }
 0x2ea   : > { %v2571_v16 = vpop.f32.mrb[42].mxu1  ;;  %v2570_v40 = vadd.f32 %v2569_v57, %v7154_v7  ;;  %4033 = vst [vmem:[%s7007_s0 + $0x688] sm:$0xff] %v2381_v0  ;;  %3104 = vmatprep.mubr.bf16.mxu0 %v8692_v8 }
 0x2eb   : > { %v2572_v12 = vadd.f32 %v2571_v16, %v7159_v38  ;;  %4018 = vst [vmem:[%s7007_s0 + $0x610] sm:$0xff] %v2568_v55  ;;  %v2573_v49 = vpop.f32.mrb[43].mxu1 }
 0x2ec   : > { %4019 = vst [vmem:[%s7007_s0 + $0x618] sm:$0xff] %v2570_v40  ;;  %v2574_v43 = vadd.f32 %v2573_v49, %v7159_v38  ;;  %v2384_v53 = vpop.f32.mrb[44].mxu0 }
 0x2ed   : > { %4034 = vst [vmem:[%s7007_s0 + $0x690] sm:$0xff] %v2572_v12  ;;  %5238 = vmatmul.mubr.msk.bf16.gmra.mrb[148].mxu1 %vm956_vm0, %v7183_v46  ;;  %v2386_v14 = vpop.f32.mrb[45].mxu0  ;;  %v2385_v2 = vadd.f32 %v2384_v53, %v7190_v34 }
 0x2ee   : > { %4035 = vst [vmem:[%s7007_s0 + $0x698] sm:$0xff] %v2574_v43  ;;  %v2388_v47 = vpop.f32.mrb[46].mxu0  ;;  %3297 = vmatprep.mubr.bf16.mxu1 %v8692_v8  ;;  %v2387_v19 = vadd.f32 %v2386_v14, %v7190_v34  ;;  %v7247_v14 = vld [vmem:[%s8673_s4 + $0x18] sm:$0xff]  }
 0x2ef   : > { %v2389_v3 = vadd.f32 %v2388_v47, %v7174_v25  ;;  %4048 = vst [vmem:[%s7007_s0 + $0x700] sm:$0xff] %v2385_v2  ;;  %v2390_v35 = vpop.f32.mrb[47].mxu0 }
 0x2f0   : > { %v2577_v4 = vpop.f32.mrb[44].mxu1  ;;  %4049 = vst [vmem:[%s7007_s0 + $0x708] sm:$0xff] %v2387_v19  ;;  %v2391_v6 = vadd.f32 %v2390_v35, %v7174_v25  ;;  %v7254_v19 = vpop.permute.xlu0 %2084 }
 0x2f1   : > { %v2579_v59 = vpop.f32.mrb[45].mxu1  ;;  %4064 = vst [vmem:[%s7007_s0 + $0x780] sm:$0xff] %v2389_v3  ;;  %v2578_v9 = vadd.f32 %v2577_v4, %v7190_v34  ;;  %5223 = vmatmul.mubr.msk.bf16.gmra.mrb[152].mxu0 %vm956_vm0, %v7216_v60 }
 0x2f2   : > { %v2581_v24 = vpop.f32.mrb[46].mxu1  ;;  %v2580_v39 = vadd.f32 %v2579_v59, %v7190_v34  ;;  %4065 = vst [vmem:[%s7007_s0 + $0x788] sm:$0xff] %v2391_v6  ;;  %3114 = vmatprep.mubr.bf16.mxu0 %v8692_v8  ;;  %v7260_v59 = vpop.permute.xlu1 %2089 }
 0x2f3   : > { %v2582_v27 = vadd.f32 %v2581_v24, %v7174_v25  ;;  %4050 = vst [vmem:[%s7007_s0 + $0x710] sm:$0xff] %v2578_v9  ;;  %v2583_v20 = vpop.f32.mrb[47].mxu1 }
 0x2f4   : > { %4051 = vst [vmem:[%s7007_s0 + $0x718] sm:$0xff] %v2580_v39  ;;  %v2584_v33 = vadd.f32 %v2583_v20, %v7174_v25  ;;  %v2394_v31 = vpop.f32.mrb[48].mxu0 }
 0x2f5   : > { %4066 = vst [vmem:[%s7007_s0 + $0x790] sm:$0xff] %v2582_v27  ;;  %5239 = vmatmul.mubr.msk.bf16.gmra.mrb[152].mxu1 %vm956_vm0, %v7216_v60  ;;  %v2396_v37 = vpop.f32.mrb[49].mxu0  ;;  %v2395_v0 = vadd.f32 %v2394_v31, %v7205_v58 }
 0x2f6   : > { %4067 = vst [vmem:[%s7007_s0 + $0x798] sm:$0xff] %v2584_v33  ;;  %v2398_v57 = vpop.f32.mrb[50].mxu0  ;;  %3307 = vmatprep.mubr.bf16.mxu1 %v8692_v8  ;;  %v2397_v55 = vadd.f32 %v2396_v37, %v7205_v58 }
 0x2f7   : > { %v2399_v16 = vadd.f32 %v2398_v57, %v7225_v32  ;;  %4080 = vst [vmem:[%s7007_s0 + $0x800] sm:$0xff] %v2395_v0  ;;  %v2400_v40 = vpop.f32.mrb[51].mxu0 }
 0x2f8   : > { %v2587_v12 = vpop.f32.mrb[48].mxu1  ;;  %4081 = vst [vmem:[%s7007_s0 + $0x808] sm:$0xff] %v2397_v55  ;;  %v2401_v49 = vadd.f32 %v2400_v40, %v7225_v32  ;;  %v7278_v55 = vld [vmem:[%s8673_s4 + $0x20] sm:$0xff]  }
 0x2f9   : > { %v2589_v43 = vpop.f32.mrb[49].mxu1  ;;  %4096 = vst [vmem:[%s7007_s0 + $0x880] sm:$0xff] %v2399_v16  ;;  %v2588_v53 = vadd.f32 %v2587_v12, %v7205_v58  ;;  %5224 = vmatmul.mubr.msk.bf16.gmra.mrb[156].mxu0 %vm956_vm0, %v7247_v14  ;;  %v7285_v12 = vpop.permute.xlu0 %2094 }
 0x2fa   : > { %v2591_v2 = vpop.f32.mrb[50].mxu1  ;;  %v2590_v47 = vadd.f32 %v2589_v43, %v7205_v58  ;;  %4097 = vst [vmem:[%s7007_s0 + $0x888] sm:$0xff] %v2401_v49  ;;  %3124 = vmatprep.mubr.bf16.mxu0 %v8692_v8 }
 0x2fb   : > { %v2592_v3 = vadd.f32 %v2591_v2, %v7225_v32  ;;  %4082 = vst [vmem:[%s7007_s0 + $0x810] sm:$0xff] %v2588_v53  ;;  %v2593_v35 = vpop.f32.mrb[51].mxu1 }
 0x2fc   : > { %4083 = vst [vmem:[%s7007_s0 + $0x818] sm:$0xff] %v2590_v47  ;;  %v2594_v4 = vadd.f32 %v2593_v35, %v7225_v32  ;;  %v2404_v6 = vpop.f32.mrb[52].mxu0  ;;  %v7291_v47 = vpop.permute.xlu1 %2099 }
 0x2fd   : > { %4098 = vst [vmem:[%s7007_s0 + $0x890] sm:$0xff] %v2592_v3  ;;  %5240 = vmatmul.mubr.msk.bf16.gmra.mrb[156].mxu1 %vm956_vm0, %v7247_v14  ;;  %v2406_v9 = vpop.f32.mrb[53].mxu0  ;;  %v2405_v24 = vadd.f32 %v2404_v6, %v7254_v19 }
 0x2fe   : > { %4099 = vst [vmem:[%s7007_s0 + $0x898] sm:$0xff] %v2594_v4  ;;  %v2408_v39 = vpop.f32.mrb[54].mxu0  ;;  %3317 = vmatprep.mubr.bf16.mxu1 %v8692_v8  ;;  %v2407_v27 = vadd.f32 %v2406_v9, %v7254_v19 }
 0x2ff   : > { %v2409_v20 = vadd.f32 %v2408_v39, %v7260_v59  ;;  %4112 = vst [vmem:[%s7007_s0 + $0x900] sm:$0xff] %v2405_v24  ;;  %v2410_v33 = vpop.f32.mrb[55].mxu0 }
 0x300   : > { %v2597_v31 = vpop.f32.mrb[52].mxu1  ;;  %4113 = vst [vmem:[%s7007_s0 + $0x908] sm:$0xff] %v2407_v27  ;;  %v2411_v37 = vadd.f32 %v2410_v33, %v7260_v59 }
 0x301   : > { %v2599_v0 = vpop.f32.mrb[53].mxu1  ;;  %4128 = vst [vmem:[%s7007_s0 + $0x980] sm:$0xff] %v2409_v20  ;;  %v2598_v57 = vadd.f32 %v2597_v31, %v7254_v19  ;;  %5225 = vmatmul.mubr.msk.bf16.gmra.mrb[160].mxu0 %vm956_vm0, %v7278_v55  ;;  %v7309_v31 = vld [vmem:[%s8673_s4 + $0x28] sm:$0xff]  }
 0x302   : > { %v2601_v16 = vpop.f32.mrb[54].mxu1  ;;  %v2600_v40 = vadd.f32 %v2599_v0, %v7254_v19  ;;  %4129 = vst [vmem:[%s7007_s0 + $0x988] sm:$0xff] %v2411_v37  ;;  %3134 = vmatprep.mubr.bf16.mxu0 %v8692_v8 }
 0x303   : > { %v2602_v49 = vadd.f32 %v2601_v16, %v7260_v59  ;;  %4114 = vst [vmem:[%s7007_s0 + $0x910] sm:$0xff] %v2598_v57  ;;  %v2603_v43 = vpop.f32.mrb[55].mxu1  ;;  %v7316_v57 = vpop.permute.xlu0 %2104 }
 0x304   : > { %4115 = vst [vmem:[%s7007_s0 + $0x918] sm:$0xff] %v2600_v40  ;;  %v2604_v53 = vadd.f32 %v2603_v43, %v7260_v59  ;;  %v2414_v2 = vpop.f32.mrb[56].mxu0 }
 0x305   : > { %4130 = vst [vmem:[%s7007_s0 + $0x990] sm:$0xff] %v2602_v49  ;;  %5241 = vmatmul.mubr.msk.bf16.gmra.mrb[160].mxu1 %vm956_vm0, %v7278_v55  ;;  %v2416_v3 = vpop.f32.mrb[57].mxu0  ;;  %v2415_v35 = vadd.f32 %v2414_v2, %v7285_v12 }
 0x306   : > { %4131 = vst [vmem:[%s7007_s0 + $0x998] sm:$0xff] %v2604_v53  ;;  %v2418_v4 = vpop.f32.mrb[58].mxu0  ;;  %3327 = vmatprep.mubr.bf16.mxu1 %v8692_v8  ;;  %v2417_v6 = vadd.f32 %v2416_v3, %v7285_v12  ;;  %v7322_v53 = vpop.permute.xlu1 %2109 }
 0x307   : > { %v2419_v9 = vadd.f32 %v2418_v4, %v7291_v47  ;;  %4144 = vst [vmem:[%s7007_s0 + $0xa00] sm:$0xff] %v2415_v35  ;;  %v2420_v24 = vpop.f32.mrb[59].mxu0 }
 0x308   : > { %v2607_v39 = vpop.f32.mrb[56].mxu1  ;;  %4145 = vst [vmem:[%s7007_s0 + $0xa08] sm:$0xff] %v2417_v6  ;;  %v2421_v27 = vadd.f32 %v2420_v24, %v7291_v47 }
 0x309   : > { %v2609_v20 = vpop.f32.mrb[57].mxu1  ;;  %4160 = vst [vmem:[%s7007_s0 + $0xa80] sm:$0xff] %v2419_v9  ;;  %v2608_v33 = vadd.f32 %v2607_v39, %v7285_v12  ;;  %5226 = vmatmul.mubr.msk.bf16.gmra.mrb[164].mxu0 %vm956_vm0, %v7309_v31 }
 0x30a   : > { %v2611_v37 = vpop.f32.mrb[58].mxu1  ;;  %v2610_v0 = vadd.f32 %v2609_v20, %v7285_v12  ;;  %4161 = vst [vmem:[%s7007_s0 + $0xa88] sm:$0xff] %v2421_v27  ;;  %3144 = vmatprep.mubr.bf16.mxu0 %v8692_v8 }
 0x30b   : > { %v2612_v16 = vadd.f32 %v2611_v37, %v7291_v47  ;;  %4146 = vst [vmem:[%s7007_s0 + $0xa10] sm:$0xff] %v2608_v33  ;;  %v2613_v40 = vpop.f32.mrb[59].mxu1  ;;  %v7340_v33 = vld [vmem:[%s8673_s4 + $0x30] sm:$0xff]  }
 0x30c   : > { %4147 = vst [vmem:[%s7007_s0 + $0xa18] sm:$0xff] %v2610_v0  ;;  %v2614_v49 = vadd.f32 %v2613_v40, %v7291_v47  ;;  %v2424_v43 = vpop.f32.mrb[60].mxu0 }
 0x30d   : > { %4162 = vst [vmem:[%s7007_s0 + $0xa90] sm:$0xff] %v2612_v16  ;;  %5242 = vmatmul.mubr.msk.bf16.gmra.mrb[164].mxu1 %vm956_vm0, %v7309_v31  ;;  %v2426_v2 = vpop.f32.mrb[61].mxu0  ;;  %v2425_v3 = vadd.f32 %v2424_v43, %v7316_v57  ;;  %v7347_v16 = vpop.permute.xlu0 %2114 }
 0x30e   : > { %4163 = vst [vmem:[%s7007_s0 + $0xa98] sm:$0xff] %v2614_v49  ;;  %v2428_v35 = vpop.f32.mrb[62].mxu0  ;;  %3337 = vmatprep.mubr.bf16.mxu1 %v8692_v8  ;;  %v2427_v4 = vadd.f32 %v2426_v2, %v7316_v57 }
 0x30f   : > { %v2429_v6 = vadd.f32 %v2428_v35, %v7322_v53  ;;  %4176 = vst [vmem:[%s7007_s0 + $0xb00] sm:$0xff] %v2425_v3  ;;  %v2430_v9 = vpop.f32.mrb[63].mxu0  ;;  %v7353_v3 = vpop.permute.xlu1 %2119 }
 0x310   : > { %v2617_v24 = vpop.f32.mrb[60].mxu1  ;;  %4177 = vst [vmem:[%s7007_s0 + $0xb08] sm:$0xff] %v2427_v4  ;;  %v2431_v39 = vadd.f32 %v2430_v9, %v7322_v53 }
 0x311   : > { %v2619_v27 = vpop.f32.mrb[61].mxu1  ;;  %4192 = vst [vmem:[%s7007_s0 + $0xb80] sm:$0xff] %v2429_v6  ;;  %v2618_v20 = vadd.f32 %v2617_v24, %v7316_v57  ;;  %5227 = vmatmul.mubr.msk.bf16.gmra.mrb[168].mxu0 %vm956_vm0, %v7340_v33 }
 0x312   : > { %v2621_v37 = vpop.f32.mrb[62].mxu1  ;;  %v2620_v0 = vadd.f32 %v2619_v27, %v7316_v57  ;;  %4193 = vst [vmem:[%s7007_s0 + $0xb88] sm:$0xff] %v2431_v39  ;;  %3154 = vmatprep.mubr.bf16.mxu0 %v8692_v8 }
 0x313   : > { %v2622_v40 = vadd.f32 %v2621_v37, %v7322_v53  ;;  %4178 = vst [vmem:[%s7007_s0 + $0xb10] sm:$0xff] %v2618_v20  ;;  %v2623_v49 = vpop.f32.mrb[63].mxu1 }
 0x314   : > { %4179 = vst [vmem:[%s7007_s0 + $0xb18] sm:$0xff] %v2620_v0  ;;  %v2624_v43 = vadd.f32 %v2623_v49, %v7322_v53  ;;  %v2434_v2 = vpop.f32.mrb[64].mxu0 }
 0x315   : > { %4194 = vst [vmem:[%s7007_s0 + $0xb90] sm:$0xff] %v2622_v40  ;;  %5243 = vmatmul.mubr.msk.bf16.gmra.mrb[168].mxu1 %vm956_vm0, %v7340_v33  ;;  %v2436_v35 = vpop.f32.mrb[65].mxu0  ;;  %v2435_v4 = vadd.f32 %v2434_v2, %v7347_v16  ;;  %v7371_v40 = vld [vmem:[%s8673_s4 + $0x38] sm:$0xff]   ;;  %v7378_v2 = vpop.permute.xlu0 %2124 }
 0x316   : > { %4195 = vst [vmem:[%s7007_s0 + $0xb98] sm:$0xff] %v2624_v43  ;;  %v2438_v6 = vpop.f32.mrb[66].mxu0  ;;  %3347 = vmatprep.mubr.bf16.mxu1 %v8692_v8  ;;  %v2437_v9 = vadd.f32 %v2436_v35, %v7347_v16 }
 0x317   : > { %v2439_v24 = vadd.f32 %v2438_v6, %v7353_v3  ;;  %4208 = vst [vmem:[%s7007_s0 + $0xc00] sm:$0xff] %v2435_v4  ;;  %v2440_v39 = vpop.f32.mrb[67].mxu0 }
 0x318   : > { %v2627_v27 = vpop.f32.mrb[64].mxu1  ;;  %4209 = vst [vmem:[%s7007_s0 + $0xc08] sm:$0xff] %v2437_v9  ;;  %v2441_v20 = vadd.f32 %v2440_v39, %v7353_v3 }
 0x319   : > { %v2629_v37 = vpop.f32.mrb[65].mxu1  ;;  %4224 = vst [vmem:[%s7007_s0 + $0xc80] sm:$0xff] %v2439_v24  ;;  %v2628_v0 = vadd.f32 %v2627_v27, %v7347_v16  ;;  %5228 = vmatmul.mubr.msk.bf16.gmra.mrb[172].mxu0 %vm956_vm0, %v7371_v40  ;;  %v7384_v24 = vpop.permute.xlu1 %2129 }
 0x31a   : > { %v2631_v49 = vpop.f32.mrb[66].mxu1  ;;  %v2630_v43 = vadd.f32 %v2629_v37, %v7347_v16  ;;  %4225 = vst [vmem:[%s7007_s0 + $0xc88] sm:$0xff] %v2441_v20  ;;  %3164 = vmatprep.mubr.bf16.mxu0 %v8692_v8 }
 0x31b   : > { %v2632_v35 = vadd.f32 %v2631_v49, %v7353_v3  ;;  %4210 = vst [vmem:[%s7007_s0 + $0xc10] sm:$0xff] %v2628_v0  ;;  %v2633_v4 = vpop.f32.mrb[67].mxu1 }
 0x31c   : > { %4211 = vst [vmem:[%s7007_s0 + $0xc18] sm:$0xff] %v2630_v43  ;;  %v2634_v6 = vadd.f32 %v2633_v4, %v7353_v3  ;;  %v2444_v9 = vpop.f32.mrb[68].mxu0 }
 0x31d   : > { %4226 = vst [vmem:[%s7007_s0 + $0xc90] sm:$0xff] %v2632_v35  ;;  %5244 = vmatmul.mubr.msk.bf16.gmra.mrb[172].mxu1 %vm956_vm0, %v7371_v40  ;;  %v2446_v39 = vpop.f32.mrb[69].mxu0  ;;  %v2445_v27 = vadd.f32 %v2444_v9, %v7378_v2  ;;  %v7402_v9 = vld [vmem:[%s8673_s4 + $0x40] sm:$0xff]   ;;  %v7415_v36 = vpop.permute.xlu1 %2139 }
 0x31e   : > { %4227 = vst [vmem:[%s7007_s0 + $0xc98] sm:$0xff] %v2634_v6  ;;  %v2448_v20 = vpop.f32.mrb[70].mxu0  ;;  %3357 = vmatprep.mubr.bf16.mxu1 %v8692_v8  ;;  %v2447_v37 = vadd.f32 %v2446_v39, %v7378_v2 }
 0x31f   : > { %v2449_v0 = vadd.f32 %v2448_v20, %v7384_v24  ;;  %4240 = vst [vmem:[%s7007_s0 + $0xd00] sm:$0xff] %v2445_v27  ;;  %v2450_v49 = vpop.f32.mrb[71].mxu0  ;;  %v7409_v20 = vpop.permute.xlu0 %2134 }
 0x320   : > { %v2637_v43 = vpop.f32.mrb[68].mxu1  ;;  %4241 = vst [vmem:[%s7007_s0 + $0xd08] sm:$0xff] %v2447_v37  ;;  %v2451_v35 = vadd.f32 %v2450_v49, %v7384_v24 }
 0x321   : > { %v2639_v4 = vpop.f32.mrb[69].mxu1  ;;  %4256 = vst [vmem:[%s7007_s0 + $0xd80] sm:$0xff] %v2449_v0  ;;  %v2638_v6 = vadd.f32 %v2637_v43, %v7378_v2  ;;  %5229 = vmatmul.mubr.msk.bf16.gmra.mrb[176].mxu0 %vm956_vm0, %v7402_v9  ;;  %v7446_v62 = vpop.permute.xlu1 %2149 }
 0x322   : > { %v2641_v39 = vpop.f32.mrb[70].mxu1  ;;  %v2640_v27 = vadd.f32 %v2639_v4, %v7378_v2  ;;  %4257 = vst [vmem:[%s7007_s0 + $0xd88] sm:$0xff] %v2451_v35  ;;  %3174 = vmatprep.mubr.bf16.mxu0 %v8692_v8 }
 0x323   : > { %v2642_v37 = vadd.f32 %v2641_v39, %v7384_v24  ;;  %4242 = vst [vmem:[%s7007_s0 + $0xd10] sm:$0xff] %v2638_v6  ;;  %v2643_v0 = vpop.f32.mrb[71].mxu1 }
 0x324   : > { %4243 = vst [vmem:[%s7007_s0 + $0xd18] sm:$0xff] %v2640_v27  ;;  %v2644_v49 = vadd.f32 %v2643_v0, %v7384_v24  ;;  %v2454_v43 = vpop.f32.mrb[72].mxu0 }
 0x325   : > { %4258 = vst [vmem:[%s7007_s0 + $0xd90] sm:$0xff] %v2642_v37  ;;  %5245 = vmatmul.mubr.msk.bf16.gmra.mrb[176].mxu1 %vm956_vm0, %v7402_v9  ;;  %v2456_v35 = vpop.f32.mrb[73].mxu0  ;;  %v2455_v4 = vadd.f32 %v2454_v43, %v7409_v20  ;;  %v7433_v43 = vld [vmem:[%s8673_s4 + $0x48] sm:$0xff]  }
 0x326   : > { %4259 = vst [vmem:[%s7007_s0 + $0xd98] sm:$0xff] %v2644_v49  ;;  %v2458_v39 = vpop.f32.mrb[74].mxu0  ;;  %3367 = vmatprep.mubr.bf16.mxu1 %v8692_v8  ;;  %v2457_v6 = vadd.f32 %v2456_v35, %v7409_v20 }
 0x327   : > { %v2459_v27 = vadd.f32 %v2458_v39, %v7415_v36  ;;  %4272 = vst [vmem:[%s7007_s0 + $0xe00] sm:$0xff] %v2455_v4  ;;  %v2460_v0 = vpop.f32.mrb[75].mxu0  ;;  %v7440_v39 = vpop.permute.xlu0 %2144 }
 0x328   : > { %v2647_v48 = vpop.f32.mrb[72].mxu1  ;;  %4273 = vst [vmem:[%s7007_s0 + $0xe08] sm:$0xff] %v2457_v6  ;;  %v2461_v37 = vadd.f32 %v2460_v0, %v7415_v36 }
 0x329   : > { %v2649_v21 = vpop.f32.mrb[73].mxu1  ;;  %4288 = vst [vmem:[%s7007_s0 + $0xe80] sm:$0xff] %v2459_v27  ;;  %v2648_v49 = vadd.f32 %v2647_v48, %v7409_v20  ;;  %5230 = vmatmul.mubr.msk.bf16.gmra.mrb[180].mxu0 %vm956_vm0, %v7433_v43 }
 0x32a   : > { %v2651_v35 = vpop.f32.mrb[74].mxu1  ;;  %v2650_v4 = vadd.f32 %v2649_v21, %v7409_v20  ;;  %4289 = vst [vmem:[%s7007_s0 + $0xe88] sm:$0xff] %v2461_v37  ;;  %3184 = vmatprep.mubr.bf16.mxu0 %v8692_v8 }
 0x32b   : > { %v2652_v6 = vadd.f32 %v2651_v35, %v7415_v36  ;;  %4274 = vst [vmem:[%s7007_s0 + $0xe10] sm:$0xff] %v2648_v49  ;;  %v2653_v48 = vpop.f32.mrb[75].mxu1 }
 0x32c   : > { %4275 = vst [vmem:[%s7007_s0 + $0xe18] sm:$0xff] %v2650_v4  ;;  %v2654_v27 = vadd.f32 %v2653_v48, %v7415_v36  ;;  %v2464_v0 = vpop.f32.mrb[76].mxu0 }
 0x32d   : > { %4290 = vst [vmem:[%s7007_s0 + $0xe90] sm:$0xff] %v2652_v6  ;;  %5246 = vmatmul.mubr.msk.bf16.gmra.mrb[180].mxu1 %vm956_vm0, %v7433_v43  ;;  %v2466_v21 = vpop.f32.mrb[77].mxu0  ;;  %v2465_v37 = vadd.f32 %v2464_v0, %v7440_v39  ;;  %v7464_v0 = vld [vmem:[%s8673_s4 + $0x50] sm:$0xff]  }
 0x32e   : > { %4291 = vst [vmem:[%s7007_s0 + $0xe98] sm:$0xff] %v2654_v27  ;;  %v2468_v35 = vpop.f32.mrb[78].mxu0  ;;  %3377 = vmatprep.mubr.bf16.mxu1 %v8692_v8  ;;  %v2467_v49 = vadd.f32 %v2466_v21, %v7440_v39 }
 0x32f   : > { %v2469_v4 = vadd.f32 %v2468_v35, %v7446_v62  ;;  %4304 = vst [vmem:[%s7007_s0 + $0xf00] sm:$0xff] %v2465_v37  ;;  %v2470_v48 = vpop.f32.mrb[79].mxu0 }
 0x330   : > { %v2657_v6 = vpop.f32.mrb[76].mxu1  ;;  %4305 = vst [vmem:[%s7007_s0 + $0xf08] sm:$0xff] %v2467_v49  ;;  %v2471_v22 = vadd.f32 %v2470_v48, %v7446_v62 }
 0x331   : > { %v2659_v54 = vpop.f32.mrb[77].mxu1  ;;  %4320 = vst [vmem:[%s7007_s0 + $0xf80] sm:$0xff] %v2469_v4  ;;  %v2658_v27 = vadd.f32 %v2657_v6, %v7440_v39  ;;  %5231 = vmatmul.mubr.msk.bf16.gmra.mrb[184].mxu0 %vm956_vm0, %v7464_v0 }
 0x332   : > { %v2661_v21 = vpop.f32.mrb[78].mxu1  ;;  %v2660_v37 = vadd.f32 %v2659_v54, %v7440_v39  ;;  %4321 = vst [vmem:[%s7007_s0 + $0xf88] sm:$0xff] %v2471_v22  ;;  %3194 = vmatprep.mubr.bf16.mxu0 %v8692_v8 }
 0x333   : > { %v2662_v35 = vadd.f32 %v2661_v21, %v7446_v62  ;;  %4306 = vst [vmem:[%s7007_s0 + $0xf10] sm:$0xff] %v2658_v27  ;;  %v2663_v49 = vpop.f32.mrb[79].mxu1 }
 0x334   : > { %4307 = vst [vmem:[%s7007_s0 + $0xf18] sm:$0xff] %v2660_v37  ;;  %v2664_v4 = vadd.f32 %v2663_v49, %v7446_v62  ;;  %v2700_v48 = vpop.f32.mrb[80].mxu0 }
 0x335   : > { %4322 = vst [vmem:[%s7007_s0 + $0xf90] sm:$0xff] %v2662_v35  ;;  %5247 = vmatmul.mubr.msk.bf16.gmra.mrb[184].mxu1 %vm956_vm0, %v7464_v0  ;;  %v2701_v54 = vadd.f32 %v2700_v48, %v6992_v63  ;;  %v2702_v22 = vpop.f32.mrb[81].mxu0 }
 0x336   : > { %4323 = vst [vmem:[%s7007_s0 + $0xf98] sm:$0xff] %v2664_v4  ;;  %v2703_v6 = vadd.f32 %v2702_v22, %v6992_v63  ;;  %v2704_v21 = vpop.f32.mrb[82].mxu0  ;;  %3387 = vmatprep.mubr.bf16.mxu1 %v8692_v8  ;;  %v7491_v22 = vld [vmem:[%s8673_s4 + $0x58] sm:$0xff]  }
 0x337   : > { %3828 = vst [vmem:[%s7007_s0 + $0x20] sm:$0xff] %v2701_v54  ;;  %v2705_v27 = vadd.f32 %v2704_v21, %v6998_v61  ;;  %v2706_v37 = vpop.f32.mrb[83].mxu0 }
 0x338   : > { %v2893_v35 = vpop.f32.mrb[80].mxu1  ;;  %3829 = vst [vmem:[%s7007_s0 + $0x28] sm:$0xff] %v2703_v6  ;;  %v2707_v49 = vadd.f32 %v2706_v37, %v6998_v61 }
 0x339   : > { %v2894_v48 = vadd.f32 %v2893_v35, %v6992_v63  ;;  %v2895_v4 = vpop.f32.mrb[81].mxu1  ;;  %3844 = vst [vmem:[%s7007_s0 + $0xa0] sm:$0xff] %v2705_v27  ;;  %5232 = vmatmul.mubr.msk.bf16.gmra.mrb[188].mxu0 %vm956_vm0, %v7491_v22 }
 0x33a   : > { %v2896_v54 = vadd.f32 %v2895_v4, %v6992_v63  ;;  %v2897_v21 = vpop.f32.mrb[82].mxu1  ;;  %3845 = vst [vmem:[%s7007_s0 + $0xa8] sm:$0xff] %v2707_v49  ;;  %3204 = vmatprep.mubr.bf16.mxu0 %v8692_v8 }
 0x33b   : > { %3830 = vst [vmem:[%s7007_s0 + $0x30] sm:$0xff] %v2894_v48  ;;  %v2898_v6 = vadd.f32 %v2897_v21, %v6998_v61  ;;  %v2899_v27 = vpop.f32.mrb[83].mxu1  ;;  %v8726_v21 = vmov 0  }
 0x33c   : > { %3831 = vst [vmem:[%s7007_s0 + $0x38] sm:$0xff] %v2896_v54  ;;  %v2900_v37 = vadd.f32 %v2899_v27, %v6998_v61  ;;  %v2710_v35 = vpop.f32.mrb[84].mxu0 }
 0x33d   : > { %3846 = vst [vmem:[%s7007_s0 + $0xb0] sm:$0xff] %v2898_v6  ;;  %5248 = vmatmul.mubr.msk.bf16.gmra.mrb[188].mxu1 %vm956_vm0, %v7491_v22  ;;  %v2711_v4 = vadd.f32 %v2710_v35, %v7005_v42  ;;  %v2712_v49 = vpop.f32.mrb[85].mxu0 }
 0x33e   : > { %3847 = vst [vmem:[%s7007_s0 + $0xb8] sm:$0xff] %v2900_v37  ;;  %v2713_v8 = vadd.f32 %v2712_v49, %v7005_v42  ;;  %v2714_v48 = vpop.f32.mrb[86].mxu0  ;;  %3397 = vmatprep.mubr.bf16.mxu1 %v8726_v21  ;;  %v7518_v49 = vld [vmem:[%s8673_s4 + $0x60] sm:$0xff]  }
 0x33f   : > { %3860 = vst [vmem:[%s7007_s0 + $0x120] sm:$0xff] %v2711_v4  ;;  %v2715_v54 = vadd.f32 %v2714_v48, %v7024_v56  ;;  %v2716_v27 = vpop.f32.mrb[87].mxu0 }
 0x340   : > { %v2903_v6 = vpop.f32.mrb[84].mxu1  ;;  %3861 = vst [vmem:[%s7007_s0 + $0x128] sm:$0xff] %v2713_v8  ;;  %v2717_v17 = vadd.f32 %v2716_v27, %v7024_v56 }
 0x341   : > { %v2904_v35 = vadd.f32 %v2903_v6, %v7005_v42  ;;  %v2905_v37 = vpop.f32.mrb[85].mxu1  ;;  %3876 = vst [vmem:[%s7007_s0 + $0x1a0] sm:$0xff] %v2715_v54  ;;  %5233 = vmatmul.mubr.msk.bf16.gmra.mrb[192].mxu0 %vm956_vm0, %v7518_v49 }
 0x342   : > { %v2906_v4 = vadd.f32 %v2905_v37, %v7005_v42  ;;  %v2907_v48 = vpop.f32.mrb[86].mxu1  ;;  %3877 = vst [vmem:[%s7007_s0 + $0x1a8] sm:$0xff] %v2717_v17  ;;  %3214 = vmatprep.mubr.bf16.mxu0 %v8726_v21 }
 0x343   : > { %3862 = vst [vmem:[%s7007_s0 + $0x130] sm:$0xff] %v2904_v35  ;;  %v2908_v8 = vadd.f32 %v2907_v48, %v7024_v56  ;;  %v2909_v54 = vpop.f32.mrb[87].mxu1 }
 0x344   : > { %3863 = vst [vmem:[%s7007_s0 + $0x138] sm:$0xff] %v2906_v4  ;;  %v2910_v27 = vadd.f32 %v2909_v54, %v7024_v56  ;;  %v2720_v6 = vpop.f32.mrb[88].mxu0 }
 0x345   : > { %3878 = vst [vmem:[%s7007_s0 + $0x1b0] sm:$0xff] %v2908_v8  ;;  %5249 = vmatmul.mubr.msk.bf16.gmra.mrb[192].mxu1 %vm956_vm0, %v7518_v49  ;;  %v2721_v37 = vadd.f32 %v2720_v6, %v7044_v23  ;;  %v2722_v17 = vpop.f32.mrb[89].mxu0 }
 0x346   : > { %3879 = vst [vmem:[%s7007_s0 + $0x1b8] sm:$0xff] %v2910_v27  ;;  %v2723_v18 = vadd.f32 %v2722_v17, %v7044_v23  ;;  %v2724_v35 = vpop.f32.mrb[90].mxu0  ;;  %3407 = vmatprep.mubr.bf16.mxu1 %v8726_v21  ;;  %v7545_v17 = vld [vmem:[%s8673_s4 + $0x68] sm:$0xff]  }
 0x347   : > { %3892 = vst [vmem:[%s7007_s0 + $0x220] sm:$0xff] %v2721_v37  ;;  %v2725_v4 = vadd.f32 %v2724_v35, %v7050_v41  ;;  %v2726_v48 = vpop.f32.mrb[91].mxu0 }
 0x348   : > { %v2913_v8 = vpop.f32.mrb[88].mxu1  ;;  %3893 = vst [vmem:[%s7007_s0 + $0x228] sm:$0xff] %v2723_v18  ;;  %v2727_v54 = vadd.f32 %v2726_v48, %v7050_v41 }
 0x349   : > { %v2914_v6 = vadd.f32 %v2913_v8, %v7044_v23  ;;  %v2915_v27 = vpop.f32.mrb[89].mxu1  ;;  %3908 = vst [vmem:[%s7007_s0 + $0x2a0] sm:$0xff] %v2725_v4  ;;  %5234 = vmatmul.mubr.msk.bf16.gmra.mrb[196].mxu0 %vm956_vm0, %v7545_v17 }
 0x34a   : > { %v2916_v37 = vadd.f32 %v2915_v27, %v7044_v23  ;;  %v2917_v35 = vpop.f32.mrb[90].mxu1  ;;  %3909 = vst [vmem:[%s7007_s0 + $0x2a8] sm:$0xff] %v2727_v54  ;;  %3224 = vmatprep.mubr.bf16.mxu0 %v8726_v21 }
 0x34b   : > { %3894 = vst [vmem:[%s7007_s0 + $0x230] sm:$0xff] %v2914_v6  ;;  %v2918_v18 = vadd.f32 %v2917_v35, %v7050_v41  ;;  %v2919_v4 = vpop.f32.mrb[91].mxu1 }
 0x34c   : > { %3895 = vst [vmem:[%s7007_s0 + $0x238] sm:$0xff] %v2916_v37  ;;  %v2920_v48 = vadd.f32 %v2919_v4, %v7050_v41  ;;  %v2730_v8 = vpop.f32.mrb[92].mxu0 }
 0x34d   : > { %3910 = vst [vmem:[%s7007_s0 + $0x2b0] sm:$0xff] %v2918_v18  ;;  %5250 = vmatmul.mubr.msk.bf16.gmra.mrb[196].mxu1 %vm956_vm0, %v7545_v17  ;;  %v2731_v27 = vadd.f32 %v2730_v8, %v7070_v52  ;;  %v2732_v54 = vpop.f32.mrb[93].mxu0 }
 0x34e   : > { %3911 = vst [vmem:[%s7007_s0 + $0x2b8] sm:$0xff] %v2920_v48  ;;  %v2733_v29 = vadd.f32 %v2732_v54, %v7070_v52  ;;  %v2734_v6 = vpop.f32.mrb[94].mxu0  ;;  %3417 = vmatprep.mubr.bf16.mxu1 %v8726_v21  ;;  %v7572_v54 = vld [vmem:[%s8673_s4 + $0x70] sm:$0xff]  }
 0x34f   : > { %3924 = vst [vmem:[%s7007_s0 + $0x320] sm:$0xff] %v2731_v27  ;;  %v2735_v37 = vadd.f32 %v2734_v6, %v7076_v45  ;;  %v2736_v35 = vpop.f32.mrb[95].mxu0 }
 0x350   : > { %v2923_v18 = vpop.f32.mrb[92].mxu1  ;;  %3925 = vst [vmem:[%s7007_s0 + $0x328] sm:$0xff] %v2733_v29  ;;  %v2737_v4 = vadd.f32 %v2736_v35, %v7076_v45 }
 0x351   : > { %v2924_v8 = vadd.f32 %v2923_v18, %v7070_v52  ;;  %v2925_v48 = vpop.f32.mrb[93].mxu1  ;;  %3940 = vst [vmem:[%s7007_s0 + $0x3a0] sm:$0xff] %v2735_v37  ;;  %5235 = vmatmul.mubr.msk.bf16.gmra.mrb[200].mxu0 %vm956_vm0, %v7572_v54 }
 0x352   : > { %v2926_v27 = vadd.f32 %v2925_v48, %v7070_v52  ;;  %v2927_v6 = vpop.f32.mrb[94].mxu1  ;;  %3941 = vst [vmem:[%s7007_s0 + $0x3a8] sm:$0xff] %v2737_v4  ;;  %3234 = vmatprep.mubr.bf16.mxu0 %v8726_v21 }
 0x353   : > { %3926 = vst [vmem:[%s7007_s0 + $0x330] sm:$0xff] %v2924_v8  ;;  %v2928_v29 = vadd.f32 %v2927_v6, %v7076_v45  ;;  %v2929_v37 = vpop.f32.mrb[95].mxu1 }
 0x354   : > { %3927 = vst [vmem:[%s7007_s0 + $0x338] sm:$0xff] %v2926_v27  ;;  %v2930_v35 = vadd.f32 %v2929_v37, %v7076_v45  ;;  %v2740_v18 = vpop.f32.mrb[96].mxu0 }
 0x355   : > { %3942 = vst [vmem:[%s7007_s0 + $0x3b0] sm:$0xff] %v2928_v29  ;;  %5251 = vmatmul.mubr.msk.bf16.gmra.mrb[200].mxu1 %vm956_vm0, %v7572_v54  ;;  %v2741_v48 = vadd.f32 %v2740_v18, %v7096_v10  ;;  %v2742_v4 = vpop.f32.mrb[97].mxu0 }
 0x356   : > { %3943 = vst [vmem:[%s7007_s0 + $0x3b8] sm:$0xff] %v2930_v35  ;;  %v2743_v50 = vadd.f32 %v2742_v4, %v7096_v10  ;;  %v2744_v8 = vpop.f32.mrb[98].mxu0  ;;  %3427 = vmatprep.mubr.bf16.mxu1 %v8726_v21  ;;  %v7599_v4 = vld [vmem:[%s8673_s4 + $0x78] sm:$0xff]  }
 0x357   : > { %3956 = vst [vmem:[%s7007_s0 + $0x420] sm:$0xff] %v2741_v48  ;;  %v2745_v27 = vadd.f32 %v2744_v8, %v7102_v26  ;;  %v2746_v6 = vpop.f32.mrb[99].mxu0 }
 0x358   : > { %v2933_v29 = vpop.f32.mrb[96].mxu1  ;;  %3957 = vst [vmem:[%s7007_s0 + $0x428] sm:$0xff] %v2743_v50  ;;  %v2747_v37 = vadd.f32 %v2746_v6, %v7102_v26 }
 0x359   : > { %v2934_v18 = vadd.f32 %v2933_v29, %v7096_v10  ;;  %v2935_v35 = vpop.f32.mrb[97].mxu1  ;;  %3972 = vst [vmem:[%s7007_s0 + $0x4a0] sm:$0xff] %v2745_v27  ;;  %5236 = vmatmul.mubr.msk.bf16.gmra.mrb[204].mxu0 %vm956_vm0, %v7599_v4 }
 0x35a   : > { %v2936_v48 = vadd.f32 %v2935_v35, %v7096_v10  ;;  %v2937_v8 = vpop.f32.mrb[98].mxu1  ;;  %3973 = vst [vmem:[%s7007_s0 + $0x4a8] sm:$0xff] %v2747_v37  ;;  %3470 = vmatprep.mubr.bf16.mxu0 %v8726_v21 }
 0x35b   : > { %3958 = vst [vmem:[%s7007_s0 + $0x430] sm:$0xff] %v2934_v18  ;;  %v2938_v50 = vadd.f32 %v2937_v8, %v7102_v26  ;;  %v2939_v27 = vpop.f32.mrb[99].mxu1 }
 0x35c   : > { %3959 = vst [vmem:[%s7007_s0 + $0x438] sm:$0xff] %v2936_v48  ;;  %v2940_v6 = vadd.f32 %v2939_v27, %v7102_v26  ;;  %v2750_v29 = vpop.f32.mrb[100].mxu0 }
 0x35d   : > { %3974 = vst [vmem:[%s7007_s0 + $0x4b0] sm:$0xff] %v2938_v50  ;;  %5252 = vmatmul.mubr.msk.bf16.gmra.mrb[204].mxu1 %vm956_vm0, %v7599_v4  ;;  %v2751_v35 = vadd.f32 %v2750_v29, %v7122_v51  ;;  %v2752_v37 = vpop.f32.mrb[101].mxu0 }
 0x35e   : > { %3975 = vst [vmem:[%s7007_s0 + $0x4b8] sm:$0xff] %v2940_v6  ;;  %v2753_v18 = vadd.f32 %v2752_v37, %v7122_v51  ;;  %v2754_v13 = vpop.f32.mrb[102].mxu0  ;;  %3663 = vmatprep.mubr.bf16.mxu1 %v8726_v21 }
 0x35f   : > { %3988 = vst [vmem:[%s7007_s0 + $0x520] sm:$0xff] %v2751_v35  ;;  %v2755_v48 = vadd.f32 %v2754_v13, %v7128_v1  ;;  %v2756_v8 = vpop.f32.mrb[103].mxu0 }
 0x360   : > { %v2943_v50 = vpop.f32.mrb[100].mxu1  ;;  %3989 = vst [vmem:[%s7007_s0 + $0x528] sm:$0xff] %v2753_v18  ;;  %v2757_v27 = vadd.f32 %v2756_v8, %v7128_v1 }
 0x361   : > { %v2944_v29 = vadd.f32 %v2943_v50, %v7122_v51  ;;  %v2945_v6 = vpop.f32.mrb[101].mxu1  ;;  %4004 = vst [vmem:[%s7007_s0 + $0x5a0] sm:$0xff] %v2755_v48  ;;  %5253 = vmatmul.mubr.msk.bf16.vlgmr.msra.gmra.mrb[208].mxu0 %vm956_vm0, %v7146_v44 }
 0x362   : > { %v2946_v37 = vadd.f32 %v2945_v6, %v7122_v51  ;;  %v2947_v35 = vpop.f32.mrb[102].mxu1  ;;  %4005 = vst [vmem:[%s7007_s0 + $0x5a8] sm:$0xff] %v2757_v27  ;;  %4359 = vmatpush1.bf16.msra.mxu0 %v6573_v11  ;;  %3480 = vmatprep.mubr.bf16.mxu0 %v8726_v21 }
 0x363   : > { %3990 = vst [vmem:[%s7007_s0 + $0x530] sm:$0xff] %v2944_v29  ;;  %v2948_v13 = vadd.f32 %v2947_v35, %v7128_v1  ;;  %v2949_v18 = vpop.f32.mrb[103].mxu1  ;;  %4444 = vmatprep.subr.bf16.mxu0 %v6670_v15 }
 0x364   : > { %3991 = vst [vmem:[%s7007_s0 + $0x538] sm:$0xff] %v2946_v37  ;;  %v2950_v48 = vadd.f32 %v2949_v18, %v7128_v1  ;;  %v2760_v8 = vpop.f32.mrb[104].mxu0 }
 0x365   : > { %4006 = vst [vmem:[%s7007_s0 + $0x5b0] sm:$0xff] %v2948_v13  ;;  %5269 = vmatmul.mubr.msk.bf16.vlgmr.msra.gmra.mrb[208].mxu1 %vm956_vm0, %v7146_v44  ;;  %v2761_v11 = vadd.f32 %v2760_v8, %v7154_v7  ;;  %v2762_v50 = vpop.f32.mrb[105].mxu0 }
 0x366   : > { %4007 = vst [vmem:[%s7007_s0 + $0x5b8] sm:$0xff] %v2950_v48  ;;  %4402 = vmatpush1.bf16.msra.mxu1 %v6577_v28  ;;  %v2763_v27 = vadd.f32 %v2762_v50, %v7154_v7  ;;  %v2764_v15 = vpop.f32.mrb[106].mxu0  ;;  %3673 = vmatprep.mubr.bf16.mxu1 %v8726_v21 }
 0x367   : > { %4487 = vmatprep.subr.bf16.mxu1 %v6689_v5  ;;  %4020 = vst [vmem:[%s7007_s0 + $0x620] sm:$0xff] %v2761_v11  ;;  %v2765_v29 = vadd.f32 %v2764_v15, %v7159_v38  ;;  %v2766_v44 = vpop.f32.mrb[107].mxu0 }
 0x368   : > { %v2953_v6 = vpop.f32.mrb[104].mxu1  ;;  %4021 = vst [vmem:[%s7007_s0 + $0x628] sm:$0xff] %v2763_v27  ;;  %v2767_v37 = vadd.f32 %v2766_v44, %v7159_v38 }
 0x369   : > { %v2954_v28 = vadd.f32 %v2953_v6, %v7154_v7  ;;  %v2955_v35 = vpop.f32.mrb[105].mxu1  ;;  %4036 = vst [vmem:[%s7007_s0 + $0x6a0] sm:$0xff] %v2765_v29  ;;  %5254 = vmatmul.mubr.msk.bf16.gmra.mrb[212].mxu0 %vm956_vm0, %v7183_v46 }
 0x36a   : > { %v2956_v5 = vadd.f32 %v2955_v35, %v7154_v7  ;;  %v2957_v13 = vpop.f32.mrb[106].mxu1  ;;  %4037 = vst [vmem:[%s7007_s0 + $0x6a8] sm:$0xff] %v2767_v37  ;;  %3490 = vmatprep.mubr.bf16.mxu0 %v8726_v21 }
 0x36b   : > { %4022 = vst [vmem:[%s7007_s0 + $0x630] sm:$0xff] %v2954_v28  ;;  %v2958_v18 = vadd.f32 %v2957_v13, %v7159_v38  ;;  %v2959_v48 = vpop.f32.mrb[107].mxu1 }
 0x36c   : > { %4023 = vst [vmem:[%s7007_s0 + $0x638] sm:$0xff] %v2956_v5  ;;  %v2960_v8 = vadd.f32 %v2959_v48, %v7159_v38  ;;  %v2770_v11 = vpop.f32.mrb[108].mxu0 }
 0x36d   : > { %4038 = vst [vmem:[%s7007_s0 + $0x6b0] sm:$0xff] %v2958_v18  ;;  %5270 = vmatmul.mubr.msk.bf16.gmra.mrb[212].mxu1 %vm956_vm0, %v7183_v46  ;;  %v2771_v50 = vadd.f32 %v2770_v11, %v7190_v34  ;;  %v2772_v27 = vpop.f32.mrb[109].mxu0 }
 0x36e   : > { %4039 = vst [vmem:[%s7007_s0 + $0x6b8] sm:$0xff] %v2960_v8  ;;  %v2773_v15 = vadd.f32 %v2772_v27, %v7190_v34  ;;  %v2774_v29 = vpop.f32.mrb[110].mxu0  ;;  %3683 = vmatprep.mubr.bf16.mxu1 %v8726_v21 }
 0x36f   : > { %4052 = vst [vmem:[%s7007_s0 + $0x720] sm:$0xff] %v2771_v50  ;;  %v2775_v44 = vadd.f32 %v2774_v29, %v7174_v25  ;;  %v2776_v6 = vpop.f32.mrb[111].mxu0 }
 0x370   : > { %v2963_v37 = vpop.f32.mrb[108].mxu1  ;;  %4053 = vst [vmem:[%s7007_s0 + $0x728] sm:$0xff] %v2773_v15  ;;  %v2777_v46 = vadd.f32 %v2776_v6, %v7174_v25 }
 0x371   : > { %v2964_v28 = vadd.f32 %v2963_v37, %v7190_v34  ;;  %v2965_v35 = vpop.f32.mrb[109].mxu1  ;;  %4068 = vst [vmem:[%s7007_s0 + $0x7a0] sm:$0xff] %v2775_v44  ;;  %5255 = vmatmul.mubr.msk.bf16.gmra.mrb[216].mxu0 %vm956_vm0, %v7216_v60 }
 0x372   : > { %v2966_v5 = vadd.f32 %v2965_v35, %v7190_v34  ;;  %v2967_v13 = vpop.f32.mrb[110].mxu1  ;;  %4069 = vst [vmem:[%s7007_s0 + $0x7a8] sm:$0xff] %v2777_v46  ;;  %3500 = vmatprep.mubr.bf16.mxu0 %v8726_v21 }
 0x373   : > { %4054 = vst [vmem:[%s7007_s0 + $0x730] sm:$0xff] %v2964_v28  ;;  %v2968_v18 = vadd.f32 %v2967_v13, %v7174_v25  ;;  %v2969_v48 = vpop.f32.mrb[111].mxu1 }
 0x374   : > { %4055 = vst [vmem:[%s7007_s0 + $0x738] sm:$0xff] %v2966_v5  ;;  %v2970_v8 = vadd.f32 %v2969_v48, %v7174_v25  ;;  %v2780_v11 = vpop.f32.mrb[112].mxu0 }
 0x375   : > { %4070 = vst [vmem:[%s7007_s0 + $0x7b0] sm:$0xff] %v2968_v18  ;;  %5271 = vmatmul.mubr.msk.bf16.gmra.mrb[216].mxu1 %vm956_vm0, %v7216_v60  ;;  %v2781_v50 = vadd.f32 %v2780_v11, %v7205_v58  ;;  %v2782_v27 = vpop.f32.mrb[113].mxu0 }
 0x376   : > { %4071 = vst [vmem:[%s7007_s0 + $0x7b8] sm:$0xff] %v2970_v8  ;;  %v2783_v15 = vadd.f32 %v2782_v27, %v7205_v58  ;;  %v2784_v29 = vpop.f32.mrb[114].mxu0  ;;  %3693 = vmatprep.mubr.bf16.mxu1 %v8726_v21 }
 0x377   : > { %4084 = vst [vmem:[%s7007_s0 + $0x820] sm:$0xff] %v2781_v50  ;;  %v2785_v44 = vadd.f32 %v2784_v29, %v7225_v32  ;;  %v2786_v6 = vpop.f32.mrb[115].mxu0 }
 0x378   : > { %v2973_v37 = vpop.f32.mrb[112].mxu1  ;;  %4085 = vst [vmem:[%s7007_s0 + $0x828] sm:$0xff] %v2783_v15  ;;  %v2787_v60 = vadd.f32 %v2786_v6, %v7225_v32 }
 0x379   : > { %v2974_v46 = vadd.f32 %v2973_v37, %v7205_v58  ;;  %v2975_v28 = vpop.f32.mrb[113].mxu1  ;;  %4100 = vst [vmem:[%s7007_s0 + $0x8a0] sm:$0xff] %v2785_v44  ;;  %5256 = vmatmul.mubr.msk.bf16.gmra.mrb[220].mxu0 %vm956_vm0, %v7247_v14 }
 0x37a   : > { %v2976_v35 = vadd.f32 %v2975_v28, %v7205_v58  ;;  %v2977_v5 = vpop.f32.mrb[114].mxu1  ;;  %4101 = vst [vmem:[%s7007_s0 + $0x8a8] sm:$0xff] %v2787_v60  ;;  %3510 = vmatprep.mubr.bf16.mxu0 %v8726_v21 }
 0x37b   : > { %4086 = vst [vmem:[%s7007_s0 + $0x830] sm:$0xff] %v2974_v46  ;;  %v2978_v13 = vadd.f32 %v2977_v5, %v7225_v32  ;;  %v2979_v18 = vpop.f32.mrb[115].mxu1 }
 0x37c   : > { %4087 = vst [vmem:[%s7007_s0 + $0x838] sm:$0xff] %v2976_v35  ;;  %v2980_v48 = vadd.f32 %v2979_v18, %v7225_v32  ;;  %v2790_v8 = vpop.f32.mrb[116].mxu0 }
 0x37d   : > { %4102 = vst [vmem:[%s7007_s0 + $0x8b0] sm:$0xff] %v2978_v13  ;;  %5272 = vmatmul.mubr.msk.bf16.gmra.mrb[220].mxu1 %vm956_vm0, %v7247_v14  ;;  %v2791_v11 = vadd.f32 %v2790_v8, %v7254_v19  ;;  %v2792_v50 = vpop.f32.mrb[117].mxu0 }
 0x37e   : > { %4103 = vst [vmem:[%s7007_s0 + $0x8b8] sm:$0xff] %v2980_v48  ;;  %v2793_v27 = vadd.f32 %v2792_v50, %v7254_v19  ;;  %v2794_v15 = vpop.f32.mrb[118].mxu0  ;;  %3703 = vmatprep.mubr.bf16.mxu1 %v8726_v21 }
 0x37f   : > { %4116 = vst [vmem:[%s7007_s0 + $0x920] sm:$0xff] %v2791_v11  ;;  %v2795_v29 = vadd.f32 %v2794_v15, %v7260_v59  ;;  %v2796_v44 = vpop.f32.mrb[119].mxu0 }
 0x380   : > { %v2983_v6 = vpop.f32.mrb[116].mxu1  ;;  %4117 = vst [vmem:[%s7007_s0 + $0x928] sm:$0xff] %v2793_v27  ;;  %v2797_v14 = vadd.f32 %v2796_v44, %v7260_v59 }
 0x381   : > { %v2984_v37 = vadd.f32 %v2983_v6, %v7254_v19  ;;  %v2985_v60 = vpop.f32.mrb[117].mxu1  ;;  %4132 = vst [vmem:[%s7007_s0 + $0x9a0] sm:$0xff] %v2795_v29  ;;  %5257 = vmatmul.mubr.msk.bf16.gmra.mrb[224].mxu0 %vm956_vm0, %v7278_v55 }
 0x382   : > { %v2986_v46 = vadd.f32 %v2985_v60, %v7254_v19  ;;  %v2987_v28 = vpop.f32.mrb[118].mxu1  ;;  %4133 = vst [vmem:[%s7007_s0 + $0x9a8] sm:$0xff] %v2797_v14  ;;  %3520 = vmatprep.mubr.bf16.mxu0 %v8726_v21 }
 0x383   : > { %4118 = vst [vmem:[%s7007_s0 + $0x930] sm:$0xff] %v2984_v37  ;;  %v2988_v35 = vadd.f32 %v2987_v28, %v7260_v59  ;;  %v2989_v5 = vpop.f32.mrb[119].mxu1 }
 0x384   : > { %4119 = vst [vmem:[%s7007_s0 + $0x938] sm:$0xff] %v2986_v46  ;;  %v2990_v13 = vadd.f32 %v2989_v5, %v7260_v59  ;;  %v2800_v18 = vpop.f32.mrb[120].mxu0 }
 0x385   : > { %4134 = vst [vmem:[%s7007_s0 + $0x9b0] sm:$0xff] %v2988_v35  ;;  %5273 = vmatmul.mubr.msk.bf16.gmra.mrb[224].mxu1 %vm956_vm0, %v7278_v55  ;;  %v2801_v48 = vadd.f32 %v2800_v18, %v7285_v12  ;;  %v2802_v8 = vpop.f32.mrb[121].mxu0 }
 0x386   : > { %4135 = vst [vmem:[%s7007_s0 + $0x9b8] sm:$0xff] %v2990_v13  ;;  %v2803_v11 = vadd.f32 %v2802_v8, %v7285_v12  ;;  %v2804_v50 = vpop.f32.mrb[122].mxu0  ;;  %3713 = vmatprep.mubr.bf16.mxu1 %v8726_v21 }
 0x387   : > { %4148 = vst [vmem:[%s7007_s0 + $0xa20] sm:$0xff] %v2801_v48  ;;  %v2805_v27 = vadd.f32 %v2804_v50, %v7291_v47  ;;  %v2806_v15 = vpop.f32.mrb[123].mxu0 }
 0x388   : > { %v2993_v29 = vpop.f32.mrb[120].mxu1  ;;  %4149 = vst [vmem:[%s7007_s0 + $0xa28] sm:$0xff] %v2803_v11  ;;  %v2807_v55 = vadd.f32 %v2806_v15, %v7291_v47 }
 0x389   : > { %v2994_v44 = vadd.f32 %v2993_v29, %v7285_v12  ;;  %v2995_v6 = vpop.f32.mrb[121].mxu1  ;;  %4164 = vst [vmem:[%s7007_s0 + $0xaa0] sm:$0xff] %v2805_v27  ;;  %5258 = vmatmul.mubr.msk.bf16.gmra.mrb[228].mxu0 %vm956_vm0, %v7309_v31 }
 0x38a   : > { %v2996_v14 = vadd.f32 %v2995_v6, %v7285_v12  ;;  %v2997_v37 = vpop.f32.mrb[122].mxu1  ;;  %4165 = vst [vmem:[%s7007_s0 + $0xaa8] sm:$0xff] %v2807_v55  ;;  %3530 = vmatprep.mubr.bf16.mxu0 %v8726_v21 }
 0x38b   : > { %4150 = vst [vmem:[%s7007_s0 + $0xa30] sm:$0xff] %v2994_v44  ;;  %v2998_v60 = vadd.f32 %v2997_v37, %v7291_v47  ;;  %v2999_v46 = vpop.f32.mrb[123].mxu1 }
 0x38c   : > { %4151 = vst [vmem:[%s7007_s0 + $0xa38] sm:$0xff] %v2996_v14  ;;  %v3000_v28 = vadd.f32 %v2999_v46, %v7291_v47  ;;  %v2810_v35 = vpop.f32.mrb[124].mxu0 }
 0x38d   : > { %4166 = vst [vmem:[%s7007_s0 + $0xab0] sm:$0xff] %v2998_v60  ;;  %5274 = vmatmul.mubr.msk.bf16.gmra.mrb[228].mxu1 %vm956_vm0, %v7309_v31  ;;  %v2811_v5 = vadd.f32 %v2810_v35, %v7316_v57  ;;  %v2812_v13 = vpop.f32.mrb[125].mxu0 }
 0x38e   : > { %4167 = vst [vmem:[%s7007_s0 + $0xab8] sm:$0xff] %v3000_v28  ;;  %v2813_v18 = vadd.f32 %v2812_v13, %v7316_v57  ;;  %v2814_v48 = vpop.f32.mrb[126].mxu0  ;;  %3723 = vmatprep.mubr.bf16.mxu1 %v8726_v21 }
 0x38f   : > { %4180 = vst [vmem:[%s7007_s0 + $0xb20] sm:$0xff] %v2811_v5  ;;  %v2815_v8 = vadd.f32 %v2814_v48, %v7322_v53  ;;  %v2816_v11 = vpop.f32.mrb[127].mxu0 }
 0x390   : > { %v3003_v50 = vpop.f32.mrb[124].mxu1  ;;  %4181 = vst [vmem:[%s7007_s0 + $0xb28] sm:$0xff] %v2813_v18  ;;  %v2817_v31 = vadd.f32 %v2816_v11, %v7322_v53 }
 0x391   : > { %v3004_v27 = vadd.f32 %v3003_v50, %v7316_v57  ;;  %v3005_v15 = vpop.f32.mrb[125].mxu1  ;;  %4196 = vst [vmem:[%s7007_s0 + $0xba0] sm:$0xff] %v2815_v8  ;;  %5259 = vmatmul.mubr.msk.bf16.gmra.mrb[232].mxu0 %vm956_vm0, %v7340_v33 }
 0x392   : > { %v3006_v29 = vadd.f32 %v3005_v15, %v7316_v57  ;;  %v3007_v55 = vpop.f32.mrb[126].mxu1  ;;  %4197 = vst [vmem:[%s7007_s0 + $0xba8] sm:$0xff] %v2817_v31  ;;  %3540 = vmatprep.mubr.bf16.mxu0 %v8726_v21 }
 0x393   : > { %4182 = vst [vmem:[%s7007_s0 + $0xb30] sm:$0xff] %v3004_v27  ;;  %v3008_v44 = vadd.f32 %v3007_v55, %v7322_v53  ;;  %v3009_v6 = vpop.f32.mrb[127].mxu1 }
 0x394   : > { %4183 = vst [vmem:[%s7007_s0 + $0xb38] sm:$0xff] %v3006_v29  ;;  %v3010_v14 = vadd.f32 %v3009_v6, %v7322_v53  ;;  %v2820_v37 = vpop.f32.mrb[128].mxu0 }
 0x395   : > { %4198 = vst [vmem:[%s7007_s0 + $0xbb0] sm:$0xff] %v3008_v44  ;;  %5275 = vmatmul.mubr.msk.bf16.gmra.mrb[232].mxu1 %vm956_vm0, %v7340_v33  ;;  %v2821_v60 = vadd.f32 %v2820_v37, %v7347_v16  ;;  %v2822_v46 = vpop.f32.mrb[129].mxu0 }
 0x396   : > { %4199 = vst [vmem:[%s7007_s0 + $0xbb8] sm:$0xff] %v3010_v14  ;;  %v2823_v28 = vadd.f32 %v2822_v46, %v7347_v16  ;;  %v2824_v35 = vpop.f32.mrb[130].mxu0  ;;  %3733 = vmatprep.mubr.bf16.mxu1 %v8726_v21 }
 0x397   : > { %4212 = vst [vmem:[%s7007_s0 + $0xc20] sm:$0xff] %v2821_v60  ;;  %v2825_v5 = vadd.f32 %v2824_v35, %v7353_v3  ;;  %v2826_v13 = vpop.f32.mrb[131].mxu0 }
 0x398   : > { %v3013_v18 = vpop.f32.mrb[128].mxu1  ;;  %4213 = vst [vmem:[%s7007_s0 + $0xc28] sm:$0xff] %v2823_v28  ;;  %v2827_v33 = vadd.f32 %v2826_v13, %v7353_v3 }
 0x399   : > { %v3014_v48 = vadd.f32 %v3013_v18, %v7347_v16  ;;  %v3015_v8 = vpop.f32.mrb[129].mxu1  ;;  %4228 = vst [vmem:[%s7007_s0 + $0xca0] sm:$0xff] %v2825_v5  ;;  %5260 = vmatmul.mubr.msk.bf16.gmra.mrb[236].mxu0 %vm956_vm0, %v7371_v40 }
 0x39a   : > { %v3016_v11 = vadd.f32 %v3015_v8, %v7347_v16  ;;  %v3017_v50 = vpop.f32.mrb[130].mxu1  ;;  %4229 = vst [vmem:[%s7007_s0 + $0xca8] sm:$0xff] %v2827_v33  ;;  %3550 = vmatprep.mubr.bf16.mxu0 %v8726_v21 }
 0x39b   : > { %4214 = vst [vmem:[%s7007_s0 + $0xc30] sm:$0xff] %v3014_v48  ;;  %v3018_v31 = vadd.f32 %v3017_v50, %v7353_v3  ;;  %v3019_v27 = vpop.f32.mrb[131].mxu1 }
 0x39c   : > { %4215 = vst [vmem:[%s7007_s0 + $0xc38] sm:$0xff] %v3016_v11  ;;  %v3020_v15 = vadd.f32 %v3019_v27, %v7353_v3  ;;  %v2830_v29 = vpop.f32.mrb[132].mxu0 }
 0x39d   : > { %4230 = vst [vmem:[%s7007_s0 + $0xcb0] sm:$0xff] %v3018_v31  ;;  %5276 = vmatmul.mubr.msk.bf16.gmra.mrb[236].mxu1 %vm956_vm0, %v7371_v40  ;;  %v2831_v55 = vadd.f32 %v2830_v29, %v7378_v2  ;;  %v2832_v44 = vpop.f32.mrb[133].mxu0 }
 0x39e   : > { %4231 = vst [vmem:[%s7007_s0 + $0xcb8] sm:$0xff] %v3020_v15  ;;  %v2833_v6 = vadd.f32 %v2832_v44, %v7378_v2  ;;  %v2834_v14 = vpop.f32.mrb[134].mxu0  ;;  %3743 = vmatprep.mubr.bf16.mxu1 %v8726_v21 }
 0x39f   : > { %4244 = vst [vmem:[%s7007_s0 + $0xd20] sm:$0xff] %v2831_v55  ;;  %v2835_v37 = vadd.f32 %v2834_v14, %v7384_v24  ;;  %v2836_v60 = vpop.f32.mrb[135].mxu0 }
 0x3a0   : > { %v3023_v46 = vpop.f32.mrb[132].mxu1  ;;  %4245 = vst [vmem:[%s7007_s0 + $0xd28] sm:$0xff] %v2833_v6  ;;  %v2837_v40 = vadd.f32 %v2836_v60, %v7384_v24 }
 0x3a1   : > { %v3024_v28 = vadd.f32 %v3023_v46, %v7378_v2  ;;  %v3025_v35 = vpop.f32.mrb[133].mxu1  ;;  %4260 = vst [vmem:[%s7007_s0 + $0xda0] sm:$0xff] %v2835_v37  ;;  %5261 = vmatmul.mubr.msk.bf16.gmra.mrb[240].mxu0 %vm956_vm0, %v7402_v9 }
 0x3a2   : > { %v3026_v5 = vadd.f32 %v3025_v35, %v7378_v2  ;;  %v3027_v13 = vpop.f32.mrb[134].mxu1  ;;  %4261 = vst [vmem:[%s7007_s0 + $0xda8] sm:$0xff] %v2837_v40  ;;  %3560 = vmatprep.mubr.bf16.mxu0 %v8726_v21 }
 0x3a3   : > { %4246 = vst [vmem:[%s7007_s0 + $0xd30] sm:$0xff] %v3024_v28  ;;  %v3028_v18 = vadd.f32 %v3027_v13, %v7384_v24  ;;  %v3029_v33 = vpop.f32.mrb[135].mxu1 }
 0x3a4   : > { %4247 = vst [vmem:[%s7007_s0 + $0xd38] sm:$0xff] %v3026_v5  ;;  %v3030_v48 = vadd.f32 %v3029_v33, %v7384_v24  ;;  %v2840_v8 = vpop.f32.mrb[136].mxu0 }
 0x3a5   : > { %4262 = vst [vmem:[%s7007_s0 + $0xdb0] sm:$0xff] %v3028_v18  ;;  %5277 = vmatmul.mubr.msk.bf16.gmra.mrb[240].mxu1 %vm956_vm0, %v7402_v9  ;;  %v2841_v11 = vadd.f32 %v2840_v8, %v7409_v20  ;;  %v2842_v50 = vpop.f32.mrb[137].mxu0 }
 0x3a6   : > { %4263 = vst [vmem:[%s7007_s0 + $0xdb8] sm:$0xff] %v3030_v48  ;;  %v2843_v31 = vadd.f32 %v2842_v50, %v7409_v20  ;;  %v2844_v27 = vpop.f32.mrb[138].mxu0  ;;  %3753 = vmatprep.mubr.bf16.mxu1 %v8726_v21 }
 0x3a7   : > { %4276 = vst [vmem:[%s7007_s0 + $0xe20] sm:$0xff] %v2841_v11  ;;  %v2845_v15 = vadd.f32 %v2844_v27, %v7415_v36  ;;  %v2846_v29 = vpop.f32.mrb[139].mxu0 }
 0x3a8   : > { %v3033_v55 = vpop.f32.mrb[136].mxu1  ;;  %4277 = vst [vmem:[%s7007_s0 + $0xe28] sm:$0xff] %v2843_v31  ;;  %v2847_v9 = vadd.f32 %v2846_v29, %v7415_v36 }
 0x3a9   : > { %v3034_v44 = vadd.f32 %v3033_v55, %v7409_v20  ;;  %v3035_v6 = vpop.f32.mrb[137].mxu1  ;;  %4292 = vst [vmem:[%s7007_s0 + $0xea0] sm:$0xff] %v2845_v15  ;;  %5262 = vmatmul.mubr.msk.bf16.gmra.mrb[244].mxu0 %vm956_vm0, %v7433_v43 }
 0x3aa   : > { %v3036_v14 = vadd.f32 %v3035_v6, %v7409_v20  ;;  %v3037_v37 = vpop.f32.mrb[138].mxu1  ;;  %4293 = vst [vmem:[%s7007_s0 + $0xea8] sm:$0xff] %v2847_v9  ;;  %3570 = vmatprep.mubr.bf16.mxu0 %v8726_v21 }
 0x3ab   : > { %4278 = vst [vmem:[%s7007_s0 + $0xe30] sm:$0xff] %v3034_v44  ;;  %v3038_v60 = vadd.f32 %v3037_v37, %v7415_v36  ;;  %v3039_v46 = vpop.f32.mrb[139].mxu1 }
 0x3ac   : > { %4279 = vst [vmem:[%s7007_s0 + $0xe38] sm:$0xff] %v3036_v14  ;;  %v3040_v40 = vadd.f32 %v3039_v46, %v7415_v36  ;;  %v2850_v28 = vpop.f32.mrb[140].mxu0 }
 0x3ad   : > { %4294 = vst [vmem:[%s7007_s0 + $0xeb0] sm:$0xff] %v3038_v60  ;;  %5278 = vmatmul.mubr.msk.bf16.gmra.mrb[244].mxu1 %vm956_vm0, %v7433_v43  ;;  %v2851_v35 = vadd.f32 %v2850_v28, %v7440_v39  ;;  %v2852_v5 = vpop.f32.mrb[141].mxu0 }
 0x3ae   : > { %4295 = vst [vmem:[%s7007_s0 + $0xeb8] sm:$0xff] %v3040_v40  ;;  %v2853_v13 = vadd.f32 %v2852_v5, %v7440_v39  ;;  %v2854_v18 = vpop.f32.mrb[142].mxu0  ;;  %3763 = vmatprep.mubr.bf16.mxu1 %v8726_v21 }
 0x3af   : > { %4308 = vst [vmem:[%s7007_s0 + $0xf20] sm:$0xff] %v2851_v35  ;;  %v2855_v33 = vadd.f32 %v2854_v18, %v7446_v62  ;;  %v2856_v48 = vpop.f32.mrb[143].mxu0 }
 0x3b0   : > { %v3043_v8 = vpop.f32.mrb[140].mxu1  ;;  %4309 = vst [vmem:[%s7007_s0 + $0xf28] sm:$0xff] %v2853_v13  ;;  %v2857_v43 = vadd.f32 %v2856_v48, %v7446_v62 }
 0x3b1   : > { %v3044_v11 = vadd.f32 %v3043_v8, %v7440_v39  ;;  %v3045_v50 = vpop.f32.mrb[141].mxu1  ;;  %4324 = vst [vmem:[%s7007_s0 + $0xfa0] sm:$0xff] %v2855_v33  ;;  %5263 = vmatmul.mubr.msk.bf16.gmra.mrb[248].mxu0 %vm956_vm0, %v7464_v0 }
 0x3b2   : > { %v3046_v31 = vadd.f32 %v3045_v50, %v7440_v39  ;;  %v3047_v27 = vpop.f32.mrb[142].mxu1  ;;  %4325 = vst [vmem:[%s7007_s0 + $0xfa8] sm:$0xff] %v2857_v43  ;;  %3580 = vmatprep.mubr.bf16.mxu0 %v8726_v21 }
 0x3b3   : > { %4310 = vst [vmem:[%s7007_s0 + $0xf30] sm:$0xff] %v3044_v11  ;;  %v3048_v15 = vadd.f32 %v3047_v27, %v7446_v62  ;;  %v3049_v29 = vpop.f32.mrb[143].mxu1 }
 0x3b4   : > { %4311 = vst [vmem:[%s7007_s0 + $0xf38] sm:$0xff] %v3046_v31  ;;  %v3050_v55 = vadd.f32 %v3049_v29, %v7446_v62  ;;  %v3086_v9 = vpop.f32.mrb[144].mxu0 }
 0x3b5   : > { %4326 = vst [vmem:[%s7007_s0 + $0xfb0] sm:$0xff] %v3048_v15  ;;  %5279 = vmatmul.mubr.msk.bf16.gmra.mrb[248].mxu1 %vm956_vm0, %v7464_v0  ;;  %v3087_v44 = vadd.f32 %v3086_v9, %v6992_v63  ;;  %v3088_v6 = vpop.f32.mrb[145].mxu0 }
 0x3b6   : > { %4327 = vst [vmem:[%s7007_s0 + $0xfb8] sm:$0xff] %v3050_v55  ;;  %v3089_v14 = vadd.f32 %v3088_v6, %v6992_v63  ;;  %v3090_v37 = vpop.f32.mrb[146].mxu0  ;;  %3773 = vmatprep.mubr.bf16.mxu1 %v8726_v21 }
 0x3b7   : > { %3832 = vst [vmem:[%s7007_s0 + $0x40] sm:$0xff] %v3087_v44  ;;  %v3091_v60 = vadd.f32 %v3090_v37, %v6998_v61  ;;  %v3092_v46 = vpop.f32.mrb[147].mxu0 }
 0x3b8   : > { %v3279_v40 = vpop.f32.mrb[144].mxu1  ;;  %3833 = vst [vmem:[%s7007_s0 + $0x48] sm:$0xff] %v3089_v14  ;;  %v3093_v0 = vadd.f32 %v3092_v46, %v6998_v61 }
 0x3b9   : > { %v3280_v28 = vadd.f32 %v3279_v40, %v6992_v63  ;;  %v3281_v35 = vpop.f32.mrb[145].mxu1  ;;  %3848 = vst [vmem:[%s7007_s0 + $0xc0] sm:$0xff] %v3091_v60  ;;  %5264 = vmatmul.mubr.msk.bf16.gmra.mrb[252].mxu0 %vm956_vm0, %v7491_v22 }
 0x3ba   : > { %v3282_v5 = vadd.f32 %v3281_v35, %v6992_v63  ;;  %v3283_v13 = vpop.f32.mrb[146].mxu1  ;;  %3849 = vst [vmem:[%s7007_s0 + $0xc8] sm:$0xff] %v3093_v0  ;;  %3590 = vmatprep.mubr.bf16.mxu0 %v8726_v21 }
 0x3bb   : > { %3834 = vst [vmem:[%s7007_s0 + $0x50] sm:$0xff] %v3280_v28  ;;  %v3284_v18 = vadd.f32 %v3283_v13, %v6998_v61  ;;  %v3285_v33 = vpop.f32.mrb[147].mxu1 }
 0x3bc   : > { %3835 = vst [vmem:[%s7007_s0 + $0x58] sm:$0xff] %v3282_v5  ;;  %v3286_v48 = vadd.f32 %v3285_v33, %v6998_v61  ;;  %v3096_v8 = vpop.f32.mrb[148].mxu0 }
 0x3bd   : > { %3850 = vst [vmem:[%s7007_s0 + $0xd0] sm:$0xff] %v3284_v18  ;;  %5280 = vmatmul.mubr.msk.bf16.gmra.mrb[252].mxu1 %vm956_vm0, %v7491_v22  ;;  %v3097_v43 = vadd.f32 %v3096_v8, %v7005_v42  ;;  %v3098_v11 = vpop.f32.mrb[149].mxu0 }
 0x3be   : > { %3851 = vst [vmem:[%s7007_s0 + $0xd8] sm:$0xff] %v3286_v48  ;;  %v3099_v50 = vadd.f32 %v3098_v11, %v7005_v42  ;;  %v3100_v31 = vpop.f32.mrb[150].mxu0  ;;  %3783 = vmatprep.mubr.bf16.mxu1 %v8726_v21 }
 0x3bf   : > { %3864 = vst [vmem:[%s7007_s0 + $0x140] sm:$0xff] %v3097_v43  ;;  %v3101_v27 = vadd.f32 %v3100_v31, %v7024_v56  ;;  %v3102_v15 = vpop.f32.mrb[151].mxu0 }
 0x3c0   : > { %v3289_v29 = vpop.f32.mrb[148].mxu1  ;;  %3865 = vst [vmem:[%s7007_s0 + $0x148] sm:$0xff] %v3099_v50  ;;  %v3103_v22 = vadd.f32 %v3102_v15, %v7024_v56 }
 0x3c1   : > { %v3290_v55 = vadd.f32 %v3289_v29, %v7005_v42  ;;  %v3291_v9 = vpop.f32.mrb[149].mxu1  ;;  %3880 = vst [vmem:[%s7007_s0 + $0x1c0] sm:$0xff] %v3101_v27  ;;  %5265 = vmatmul.mubr.msk.bf16.gmra.mrb[0].mxu0 %vm956_vm0, %v7518_v49 }
 0x3c2   : > { %v3292_v44 = vadd.f32 %v3291_v9, %v7005_v42  ;;  %v3293_v6 = vpop.f32.mrb[150].mxu1  ;;  %3881 = vst [vmem:[%s7007_s0 + $0x1c8] sm:$0xff] %v3103_v22  ;;  %3600 = vmatprep.mubr.bf16.mxu0 %v8726_v21 }
 0x3c3   : > { %3866 = vst [vmem:[%s7007_s0 + $0x150] sm:$0xff] %v3290_v55  ;;  %v3294_v14 = vadd.f32 %v3293_v6, %v7024_v56  ;;  %v3295_v37 = vpop.f32.mrb[151].mxu1 }
 0x3c4   : > { %3867 = vst [vmem:[%s7007_s0 + $0x158] sm:$0xff] %v3292_v44  ;;  %v3296_v60 = vadd.f32 %v3295_v37, %v7024_v56  ;;  %v3106_v46 = vpop.f32.mrb[152].mxu0 }
 0x3c5   : > { %3882 = vst [vmem:[%s7007_s0 + $0x1d0] sm:$0xff] %v3294_v14  ;;  %5281 = vmatmul.mubr.msk.bf16.gmra.mrb[0].mxu1 %vm956_vm0, %v7518_v49  ;;  %v3107_v40 = vadd.f32 %v3106_v46, %v7044_v23  ;;  %v3108_v0 = vpop.f32.mrb[153].mxu0 }
 0x3c6   : > { %3883 = vst [vmem:[%s7007_s0 + $0x1d8] sm:$0xff] %v3296_v60  ;;  %v3109_v28 = vadd.f32 %v3108_v0, %v7044_v23  ;;  %v3110_v35 = vpop.f32.mrb[154].mxu0  ;;  %3793 = vmatprep.mubr.bf16.mxu1 %v8726_v21 }
 0x3c7   : > { %3896 = vst [vmem:[%s7007_s0 + $0x240] sm:$0xff] %v3107_v40  ;;  %v3111_v5 = vadd.f32 %v3110_v35, %v7050_v41  ;;  %v3112_v13 = vpop.f32.mrb[155].mxu0 }
 0x3c8   : > { %v3299_v18 = vpop.f32.mrb[152].mxu1  ;;  %3897 = vst [vmem:[%s7007_s0 + $0x248] sm:$0xff] %v3109_v28  ;;  %v3113_v49 = vadd.f32 %v3112_v13, %v7050_v41 }
 0x3c9   : > { %v3300_v33 = vadd.f32 %v3299_v18, %v7044_v23  ;;  %v3301_v48 = vpop.f32.mrb[153].mxu1  ;;  %3912 = vst [vmem:[%s7007_s0 + $0x2c0] sm:$0xff] %v3111_v5  ;;  %5266 = vmatmul.mubr.msk.bf16.gmra.mrb[4].mxu0 %vm956_vm0, %v7545_v17 }
 0x3ca   : > { %v3302_v8 = vadd.f32 %v3301_v48, %v7044_v23  ;;  %v3303_v43 = vpop.f32.mrb[154].mxu1  ;;  %3913 = vst [vmem:[%s7007_s0 + $0x2c8] sm:$0xff] %v3113_v49  ;;  %3610 = vmatprep.mubr.bf16.mxu0 %v8726_v21 }
 0x3cb   : > { %3898 = vst [vmem:[%s7007_s0 + $0x250] sm:$0xff] %v3300_v33  ;;  %v3304_v11 = vadd.f32 %v3303_v43, %v7050_v41  ;;  %v3305_v50 = vpop.f32.mrb[155].mxu1 }
 0x3cc   : > { %3899 = vst [vmem:[%s7007_s0 + $0x258] sm:$0xff] %v3302_v8  ;;  %v3306_v31 = vadd.f32 %v3305_v50, %v7050_v41  ;;  %v3116_v27 = vpop.f32.mrb[156].mxu0 }
 0x3cd   : > { %3914 = vst [vmem:[%s7007_s0 + $0x2d0] sm:$0xff] %v3304_v11  ;;  %5282 = vmatmul.mubr.msk.bf16.gmra.mrb[4].mxu1 %vm956_vm0, %v7545_v17  ;;  %v3117_v15 = vadd.f32 %v3116_v27, %v7070_v52  ;;  %v3118_v29 = vpop.f32.mrb[157].mxu0 }
 0x3ce   : > { %3915 = vst [vmem:[%s7007_s0 + $0x2d8] sm:$0xff] %v3306_v31  ;;  %v3119_v22 = vadd.f32 %v3118_v29, %v7070_v52  ;;  %v3120_v55 = vpop.f32.mrb[158].mxu0  ;;  %3803 = vmatprep.mubr.bf16.mxu1 %v8726_v21 }
 0x3cf   : > { %3928 = vst [vmem:[%s7007_s0 + $0x340] sm:$0xff] %v3117_v15  ;;  %v3121_v9 = vadd.f32 %v3120_v55, %v7076_v45  ;;  %v3122_v44 = vpop.f32.mrb[159].mxu0 }
 0x3d0   : > { %v3309_v6 = vpop.f32.mrb[156].mxu1  ;;  %3929 = vst [vmem:[%s7007_s0 + $0x348] sm:$0xff] %v3119_v22  ;;  %v3123_v17 = vadd.f32 %v3122_v44, %v7076_v45  ;;  %v7973_v44 = vld [vmem:[%s8674_s5] sm:$0xff]  }
 0x3d1   : > { %v3310_v14 = vadd.f32 %v3309_v6, %v7070_v52  ;;  %v3311_v37 = vpop.f32.mrb[157].mxu1  ;;  %3944 = vst [vmem:[%s7007_s0 + $0x3c0] sm:$0xff] %v3121_v9  ;;  %5267 = vmatmul.mubr.msk.bf16.gmra.mrb[8].mxu0 %vm956_vm0, %v7572_v54 }
 0x3d2   : > { %v3312_v60 = vadd.f32 %v3311_v37, %v7070_v52  ;;  %v3313_v46 = vpop.f32.mrb[158].mxu1  ;;  %3945 = vst [vmem:[%s7007_s0 + $0x3c8] sm:$0xff] %v3123_v17  ;;  %3620 = vmatprep.mubr.bf16.mxu0 %v8726_v21 }
 0x3d3   : > { %3930 = vst [vmem:[%s7007_s0 + $0x350] sm:$0xff] %v3310_v14  ;;  %v3314_v40 = vadd.f32 %v3313_v46, %v7076_v45  ;;  %v3315_v0 = vpop.f32.mrb[159].mxu1 }
 0x3d4   : > { %3931 = vst [vmem:[%s7007_s0 + $0x358] sm:$0xff] %v3312_v60  ;;  %v3316_v28 = vadd.f32 %v3315_v0, %v7076_v45  ;;  %v3126_v35 = vpop.f32.mrb[160].mxu0 }
 0x3d5   : > { %3946 = vst [vmem:[%s7007_s0 + $0x3d0] sm:$0xff] %v3314_v40  ;;  %5283 = vmatmul.mubr.msk.bf16.gmra.mrb[8].mxu1 %vm956_vm0, %v7572_v54  ;;  %v3127_v5 = vadd.f32 %v3126_v35, %v7096_v10  ;;  %v3128_v13 = vpop.f32.mrb[161].mxu0 }
 0x3d6   : > { %3947 = vst [vmem:[%s7007_s0 + $0x3d8] sm:$0xff] %v3316_v28  ;;  %v3129_v18 = vadd.f32 %v3128_v13, %v7096_v10  ;;  %v3130_v49 = vpop.f32.mrb[162].mxu0  ;;  %3813 = vmatprep.mubr.bf16.mxu1 %v8726_v21  ;;  %v8727_v13 = vld [vmem:[#allocation23_spill] sm:$0xff] }
 0x3d7   : > { %3960 = vst [vmem:[%s7007_s0 + $0x440] sm:$0xff] %v3127_v5  ;;  %v3131_v33 = vadd.f32 %v3130_v49, %v7102_v26  ;;  %v3132_v48 = vpop.f32.mrb[163].mxu0 }
 0x3d8   : > { %v3319_v8 = vpop.f32.mrb[160].mxu1  ;;  %3961 = vst [vmem:[%s7007_s0 + $0x448] sm:$0xff] %v3129_v18  ;;  %v3133_v54 = vadd.f32 %v3132_v48, %v7102_v26  ;;  %v8728_v48 = vld [vmem:[#allocation20_spill] sm:$0xff] }
 0x3d9   : > { %v3320_v43 = vadd.f32 %v3319_v8, %v7096_v10  ;;  %v3321_v11 = vpop.f32.mrb[161].mxu1  ;;  %3976 = vst [vmem:[%s7007_s0 + $0x4c0] sm:$0xff] %v3131_v33  ;;  %5268 = vmatmul.mubr.msk.bf16.gmra.mrb[12].mxu0 %vm956_vm0, %v7599_v4 }
 0x3da   : > { %v3322_v50 = vadd.f32 %v3321_v11, %v7096_v10  ;;  %v3323_v31 = vpop.f32.mrb[162].mxu1  ;;  %3977 = vst [vmem:[%s7007_s0 + $0x4c8] sm:$0xff] %v3133_v54  ;;  %4390 = vmatprep.mubr.bf16.mxu0 %v8726_v21 }
 0x3db   : > { %3962 = vst [vmem:[%s7007_s0 + $0x450] sm:$0xff] %v3320_v43  ;;  %v3324_v27 = vadd.f32 %v3323_v31, %v7102_v26  ;;  %v3325_v15 = vpop.f32.mrb[163].mxu1  ;;  %v8729_v43 = vld [vmem:[#allocation24_spill] sm:$0xff] }
 0x3dc   : > { %3963 = vst [vmem:[%s7007_s0 + $0x458] sm:$0xff] %v3322_v50  ;;  %v3326_v29 = vadd.f32 %v3325_v15, %v7102_v26  ;;  %v3136_v22 = vpop.f32.mrb[164].mxu0 }
 0x3dd   : > { %3978 = vst [vmem:[%s7007_s0 + $0x4d0] sm:$0xff] %v3324_v27  ;;  %5284 = vmatmul.mubr.msk.bf16.gmra.mrb[12].mxu1 %vm956_vm0, %v7599_v4  ;;  %v3137_v55 = vadd.f32 %v3136_v22, %v7122_v51  ;;  %v3138_v9 = vpop.f32.mrb[165].mxu0 }
 0x3de   : > { %3979 = vst [vmem:[%s7007_s0 + $0x4d8] sm:$0xff] %v3326_v29  ;;  %v3139_v6 = vadd.f32 %v3138_v9, %v7122_v51  ;;  %v3140_v17 = vpop.f32.mrb[166].mxu0  ;;  %4433 = vmatprep.mubr.bf16.mxu1 %v8726_v21  ;;  %v8730_v9 = vld [vmem:[#allocation21_spill] sm:$0xff] }
 0x3df   : > { %3992 = vst [vmem:[%s7007_s0 + $0x540] sm:$0xff] %v3137_v55  ;;  %v3141_v4 = vadd.f32 %v3140_v17, %v7128_v1  ;;  %v3142_v14 = vpop.f32.mrb[167].mxu0 }
 0x3e0   : > { %v3329_v37 = vpop.f32.mrb[164].mxu1  ;;  %3993 = vst [vmem:[%s7007_s0 + $0x548] sm:$0xff] %v3139_v6  ;;  %v3143_v60 = vadd.f32 %v3142_v14, %v7128_v1 }
 0x3e1   : > { %v3330_v46 = vadd.f32 %v3329_v37, %v7122_v51  ;;  %v3331_v40 = vpop.f32.mrb[165].mxu1  ;;  %4008 = vst [vmem:[%s7007_s0 + $0x5c0] sm:$0xff] %v3141_v4  ;;  %5286 = vmatmul.mubr.msk.bf16.vlgmr.msra.gmra.mrb[16].mxu0 %vm956_vm0, %v7973_v44  ;;  %v8731_v4 = vld [vmem:[#allocation27_spill] sm:$0xff] }
 0x3e2   : > { %v3332_v0 = vadd.f32 %v3331_v40, %v7122_v51  ;;  %v3333_v28 = vpop.f32.mrb[166].mxu1  ;;  %4009 = vst [vmem:[%s7007_s0 + $0x5c8] sm:$0xff] %v3143_v60  ;;  %4445 = vmatpush1.bf16.msra.mxu0 %v6656_v30  ;;  %4476 = vmatprep.mubr.bf16.mxu0 %v8726_v21  ;;  %v8732_v40 = vld [vmem:[#allocation22_spill] sm:$0xff] }
 0x3e3   : > { %3994 = vst [vmem:[%s7007_s0 + $0x550] sm:$0xff] %v3330_v46  ;;  %v3334_v35 = vadd.f32 %v3333_v28, %v7128_v1  ;;  %v3335_v5 = vpop.f32.mrb[167].mxu1  ;;  %4530 = vmatprep.subr.bf16.mxu0 %v8727_v13 }
 0x3e4   : > { %3995 = vst [vmem:[%s7007_s0 + $0x558] sm:$0xff] %v3332_v0  ;;  %v3336_v18 = vadd.f32 %v3335_v5, %v7128_v1  ;;  %v3146_v49 = vpop.f32.mrb[168].mxu0 }
 0x3e5   : > { %4010 = vst [vmem:[%s7007_s0 + $0x5d0] sm:$0xff] %v3334_v35  ;;  %5287 = vmatmul.mubr.msk.bf16.vlgmr.msra.gmra.mrb[16].mxu1 %vm956_vm0, %v7973_v44  ;;  %v3147_v30 = vadd.f32 %v3146_v49, %v7154_v7  ;;  %v3148_v33 = vpop.f32.mrb[169].mxu0  ;;  %v8733_v35 = vld [vmem:[#allocation28_spill] sm:$0xff] }
 0x3e6   : > { %4011 = vst [vmem:[%s7007_s0 + $0x5d8] sm:$0xff] %v3336_v18  ;;  %4488 = vmatpush1.bf16.msra.mxu1 %v8728_v48  ;;  %v3149_v8 = vadd.f32 %v3148_v33, %v7154_v7  ;;  %v3150_v54 = vpop.f32.mrb[170].mxu0  ;;  %4519 = vmatprep.mubr.bf16.mxu1 %v8726_v21 }
 0x3e7   : > { %4573 = vmatprep.subr.bf16.mxu1 %v8729_v43  ;;  %4024 = vst [vmem:[%s7007_s0 + $0x640] sm:$0xff] %v3147_v30  ;;  %v3151_v11 = vadd.f32 %v3150_v54, %v7159_v38  ;;  %v3152_v50 = vpop.f32.mrb[171].mxu0  ;;  %v8734_v54 = vld [vmem:[#allocation25_spill] sm:$0xff] }
 0x3e8   : > { %v3339_v31 = vpop.f32.mrb[168].mxu1  ;;  %4025 = vst [vmem:[%s7007_s0 + $0x648] sm:$0xff] %v3149_v8  ;;  %v3153_v27 = vadd.f32 %v3152_v50, %v7159_v38 }
 0x3e9   : > { %v3340_v15 = vadd.f32 %v3339_v31, %v7154_v7  ;;  %v3341_v29 = vpop.f32.mrb[169].mxu1  ;;  %4040 = vst [vmem:[%s7007_s0 + $0x6c0] sm:$0xff] %v3151_v11  ;;  %5288 = vmatmul.mubr.msk.bf16.vlgmr.msra.gmra.mrb[20].mxu0 %vm956_vm0, %v7973_v44 }
 0x3ea   : > { %v3342_v22 = vadd.f32 %v3341_v29, %v7154_v7  ;;  %v3343_v55 = vpop.f32.mrb[170].mxu1  ;;  %4041 = vst [vmem:[%s7007_s0 + $0x6c8] sm:$0xff] %v3153_v27  ;;  %4531 = vmatpush1.bf16.msra.mxu0 %v8730_v9  ;;  %4562 = vmatprep.mubr.bf16.mxu0 %v8726_v21  ;;  %v8735_v29 = vld [vmem:[#allocation26_spill] sm:$0xff] }
 0x3eb   : > { %4026 = vst [vmem:[%s7007_s0 + $0x650] sm:$0xff] %v3340_v15  ;;  %v3344_v6 = vadd.f32 %v3343_v55, %v7159_v38  ;;  %v3345_v17 = vpop.f32.mrb[171].mxu1  ;;  %4616 = vmatprep.subr.bf16.mxu0 %v8731_v4 }
 0x3ec   : > { %4027 = vst [vmem:[%s7007_s0 + $0x658] sm:$0xff] %v3342_v22  ;;  %v3346_v14 = vadd.f32 %v3345_v17, %v7159_v38  ;;  %v3156_v37 = vpop.f32.mrb[172].mxu0 }
 0x3ed   : > { %4042 = vst [vmem:[%s7007_s0 + $0x6d0] sm:$0xff] %v3344_v6  ;;  %5289 = vmatmul.mubr.msk.bf16.vlgmr.msra.gmra.mrb[20].mxu1 %vm956_vm0, %v7973_v44  ;;  %v3157_v60 = vadd.f32 %v3156_v37, %v7190_v34  ;;  %v3158_v46 = vpop.f32.mrb[173].mxu0 }
 0x3ee   : > { %4043 = vst [vmem:[%s7007_s0 + $0x6d8] sm:$0xff] %v3346_v14  ;;  %4574 = vmatpush1.bf16.msra.mxu1 %v8732_v40  ;;  %v3159_v0 = vadd.f32 %v3158_v46, %v7190_v34  ;;  %v3160_v28 = vpop.f32.mrb[174].mxu0  ;;  %4605 = vmatprep.mubr.bf16.mxu1 %v8726_v21 }
 0x3ef   : > { %4659 = vmatprep.subr.bf16.mxu1 %v8733_v35  ;;  %4056 = vst [vmem:[%s7007_s0 + $0x740] sm:$0xff] %v3157_v60  ;;  %v3161_v5 = vadd.f32 %v3160_v28, %v7174_v25  ;;  %v3162_v13 = vpop.f32.mrb[175].mxu0 }
 0x3f0   : > { %v3349_v18 = vpop.f32.mrb[172].mxu1  ;;  %4057 = vst [vmem:[%s7007_s0 + $0x748] sm:$0xff] %v3159_v0  ;;  %v3163_v49 = vadd.f32 %v3162_v13, %v7174_v25 }
 0x3f1   : > { %v3350_v30 = vadd.f32 %v3349_v18, %v7190_v34  ;;  %v3351_v33 = vpop.f32.mrb[173].mxu1  ;;  %4072 = vst [vmem:[%s7007_s0 + $0x7c0] sm:$0xff] %v3161_v5  ;;  %5290 = vmatmul.mubr.msk.bf16.vlgmr.msra.gmra.mrb[24].mxu0 %vm956_vm0, %v7973_v44 }
 0x3f2   : > { %v3352_v48 = vadd.f32 %v3351_v33, %v7190_v34  ;;  %v3353_v8 = vpop.f32.mrb[174].mxu1  ;;  %4073 = vst [vmem:[%s7007_s0 + $0x7c8] sm:$0xff] %v3163_v49  ;;  %4617 = vmatpush1.bf16.msra.mxu0 %v8734_v54  ;;  %4648 = vmatprep.mubr.bf16.mxu0 %v8726_v21 }
 0x3f3   : > { %4058 = vst [vmem:[%s7007_s0 + $0x750] sm:$0xff] %v3350_v30  ;;  %v3354_v43 = vadd.f32 %v3353_v8, %v7174_v25  ;;  %v3355_v11 = vpop.f32.mrb[175].mxu1 }
 0x3f4   : > { %4059 = vst [vmem:[%s7007_s0 + $0x758] sm:$0xff] %v3352_v48  ;;  %v3356_v50 = vadd.f32 %v3355_v11, %v7174_v25  ;;  %v3166_v31 = vpop.f32.mrb[176].mxu0 }
 0x3f5   : > { %4074 = vst [vmem:[%s7007_s0 + $0x7d0] sm:$0xff] %v3354_v43  ;;  %5291 = vmatmul.mubr.msk.bf16.vlgmr.msra.gmra.mrb[24].mxu1 %vm956_vm0, %v7973_v44  ;;  %v3167_v27 = vadd.f32 %v3166_v31, %v7205_v58  ;;  %v3168_v15 = vpop.f32.mrb[177].mxu0 }
 0x3f6   : > { %4075 = vst [vmem:[%s7007_s0 + $0x7d8] sm:$0xff] %v3356_v50  ;;  %4660 = vmatpush1.bf16.msra.mxu1 %v8735_v29  ;;  %v3169_v22 = vadd.f32 %v3168_v15, %v7205_v58  ;;  %v3170_v55 = vpop.f32.mrb[178].mxu0  ;;  %4691 = vmatprep.mubr.bf16.mxu1 %v8726_v21 }
 0x3f7   : > { %4088 = vst [vmem:[%s7007_s0 + $0x840] sm:$0xff] %v3167_v27  ;;  %v3171_v9 = vadd.f32 %v3170_v55, %v7225_v32  ;;  %v3172_v6 = vpop.f32.mrb[179].mxu0 }
 0x3f8   : > { %v3359_v17 = vpop.f32.mrb[176].mxu1  ;;  %4089 = vst [vmem:[%s7007_s0 + $0x848] sm:$0xff] %v3169_v22  ;;  %v3173_v4 = vadd.f32 %v3172_v6, %v7225_v32 }
 0x3f9   : > { %v3360_v14 = vadd.f32 %v3359_v17, %v7205_v58  ;;  %v3361_v37 = vpop.f32.mrb[177].mxu1  ;;  %4104 = vst [vmem:[%s7007_s0 + $0x8c0] sm:$0xff] %v3171_v9  ;;  %5292 = vmatmul.mubr.msk.bf16.vlgmr.msra.gmra.mrb[28].mxu0 %vm956_vm0, %v7973_v44 }
 0x3fa   : > { %v3362_v21 = vadd.f32 %v3361_v37, %v7205_v58  ;;  %v3363_v60 = vpop.f32.mrb[178].mxu1  ;;  %4105 = vst [vmem:[%s7007_s0 + $0x8c8] sm:$0xff] %v3173_v4 }
 0x3fb   : > { %4090 = vst [vmem:[%s7007_s0 + $0x850] sm:$0xff] %v3360_v14  ;;  %v3364_v46 = vadd.f32 %v3363_v60, %v7225_v32  ;;  %v3365_v40 = vpop.f32.mrb[179].mxu1 }
 0x3fc   : > { %4091 = vst [vmem:[%s7007_s0 + $0x858] sm:$0xff] %v3362_v21  ;;  %v3366_v0 = vadd.f32 %v3365_v40, %v7225_v32  ;;  %v3176_v28 = vpop.f32.mrb[180].mxu0 }
 0x3fd   : > { %4106 = vst [vmem:[%s7007_s0 + $0x8d0] sm:$0xff] %v3364_v46  ;;  %5293 = vmatmul.mubr.msk.bf16.vlgmr.msra.gmra.mrb[28].mxu1 %vm956_vm0, %v7973_v44  ;;  %v3177_v35 = vadd.f32 %v3176_v28, %v7254_v19  ;;  %v3178_v5 = vpop.f32.mrb[181].mxu0 }
 0x3fe   : > { %4107 = vst [vmem:[%s7007_s0 + $0x8d8] sm:$0xff] %v3366_v0  ;;  %v3179_v13 = vadd.f32 %v3178_v5, %v7254_v19  ;;  %v3180_v18 = vpop.f32.mrb[182].mxu0 }
 0x3ff   : > { %4120 = vst [vmem:[%s7007_s0 + $0x940] sm:$0xff] %v3177_v35  ;;  %v3181_v49 = vadd.f32 %v3180_v18, %v7260_v59  ;;  %v3182_v30 = vpop.f32.mrb[183].mxu0 }
 0x400   : > { %v3369_v33 = vpop.f32.mrb[180].mxu1  ;;  %4121 = vst [vmem:[%s7007_s0 + $0x948] sm:$0xff] %v3179_v13  ;;  %v3183_v48 = vadd.f32 %v3182_v30, %v7260_v59 }
 0x401   : > { %v3370_v44 = vadd.f32 %v3369_v33, %v7254_v19  ;;  %v3371_v8 = vpop.f32.mrb[181].mxu1  ;;  %4136 = vst [vmem:[%s7007_s0 + $0x9c0] sm:$0xff] %v3181_v49 }
 0x402   : > { %v3372_v54 = vadd.f32 %v3371_v8, %v7254_v19  ;;  %v3373_v43 = vpop.f32.mrb[182].mxu1  ;;  %4137 = vst [vmem:[%s7007_s0 + $0x9c8] sm:$0xff] %v3183_v48 }
 0x403   : > { %4122 = vst [vmem:[%s7007_s0 + $0x950] sm:$0xff] %v3370_v44  ;;  %v3374_v11 = vadd.f32 %v3373_v43, %v7260_v59  ;;  %v3375_v50 = vpop.f32.mrb[183].mxu1 }
 0x404   : > { %4123 = vst [vmem:[%s7007_s0 + $0x958] sm:$0xff] %v3372_v54  ;;  %v3376_v31 = vadd.f32 %v3375_v50, %v7260_v59  ;;  %v3186_v27 = vpop.f32.mrb[184].mxu0 }
 0x405   : > { %4138 = vst [vmem:[%s7007_s0 + $0x9d0] sm:$0xff] %v3374_v11  ;;  %v3187_v15 = vadd.f32 %v3186_v27, %v7285_v12  ;;  %v3188_v29 = vpop.f32.mrb[185].mxu0 }
 0x406   : > { %4139 = vst [vmem:[%s7007_s0 + $0x9d8] sm:$0xff] %v3376_v31  ;;  %v3189_v22 = vadd.f32 %v3188_v29, %v7285_v12  ;;  %v3190_v55 = vpop.f32.mrb[186].mxu0 }
 0x407   : > { %4152 = vst [vmem:[%s7007_s0 + $0xa40] sm:$0xff] %v3187_v15  ;;  %v3191_v9 = vadd.f32 %v3190_v55, %v7291_v47  ;;  %v3192_v6 = vpop.f32.mrb[187].mxu0 }
 0x408   : > { %v3379_v17 = vpop.f32.mrb[184].mxu1  ;;  %4153 = vst [vmem:[%s7007_s0 + $0xa48] sm:$0xff] %v3189_v22  ;;  %v3193_v4 = vadd.f32 %v3192_v6, %v7291_v47 }
 0x409   : > { %v3380_v14 = vadd.f32 %v3379_v17, %v7285_v12  ;;  %v3381_v37 = vpop.f32.mrb[185].mxu1  ;;  %4168 = vst [vmem:[%s7007_s0 + $0xac0] sm:$0xff] %v3191_v9 }
 0x40a   : > { %v3382_v21 = vadd.f32 %v3381_v37, %v7285_v12  ;;  %v3383_v60 = vpop.f32.mrb[186].mxu1  ;;  %4169 = vst [vmem:[%s7007_s0 + $0xac8] sm:$0xff] %v3193_v4 }
 0x40b   : > { %4154 = vst [vmem:[%s7007_s0 + $0xa50] sm:$0xff] %v3380_v14  ;;  %v3384_v46 = vadd.f32 %v3383_v60, %v7291_v47  ;;  %v3385_v40 = vpop.f32.mrb[187].mxu1 }
 0x40c   : > { %4155 = vst [vmem:[%s7007_s0 + $0xa58] sm:$0xff] %v3382_v21  ;;  %v3386_v0 = vadd.f32 %v3385_v40, %v7291_v47  ;;  %v3196_v28 = vpop.f32.mrb[188].mxu0 }
 0x40d   : > { %4170 = vst [vmem:[%s7007_s0 + $0xad0] sm:$0xff] %v3384_v46  ;;  %v3197_v35 = vadd.f32 %v3196_v28, %v7316_v57  ;;  %v3198_v5 = vpop.f32.mrb[189].mxu0 }
 0x40e   : > { %4171 = vst [vmem:[%s7007_s0 + $0xad8] sm:$0xff] %v3386_v0  ;;  %v3199_v13 = vadd.f32 %v3198_v5, %v7316_v57  ;;  %v3200_v18 = vpop.f32.mrb[190].mxu0 }
 0x40f   : > { %4184 = vst [vmem:[%s7007_s0 + $0xb40] sm:$0xff] %v3197_v35  ;;  %v3201_v49 = vadd.f32 %v3200_v18, %v7322_v53  ;;  %v3202_v30 = vpop.f32.mrb[191].mxu0 }
 0x410   : > { %v3389_v33 = vpop.f32.mrb[188].mxu1  ;;  %4185 = vst [vmem:[%s7007_s0 + $0xb48] sm:$0xff] %v3199_v13  ;;  %v3203_v48 = vadd.f32 %v3202_v30, %v7322_v53 }
 0x411   : > { %v3390_v44 = vadd.f32 %v3389_v33, %v7316_v57  ;;  %v3391_v8 = vpop.f32.mrb[189].mxu1  ;;  %4200 = vst [vmem:[%s7007_s0 + $0xbc0] sm:$0xff] %v3201_v49 }
 0x412   : > { %v3392_v54 = vadd.f32 %v3391_v8, %v7316_v57  ;;  %v3393_v43 = vpop.f32.mrb[190].mxu1  ;;  %4201 = vst [vmem:[%s7007_s0 + $0xbc8] sm:$0xff] %v3203_v48 }
 0x413   : > { %4186 = vst [vmem:[%s7007_s0 + $0xb50] sm:$0xff] %v3390_v44  ;;  %v3394_v11 = vadd.f32 %v3393_v43, %v7322_v53  ;;  %v3395_v50 = vpop.f32.mrb[191].mxu1 }
 0x414   : > { %4187 = vst [vmem:[%s7007_s0 + $0xb58] sm:$0xff] %v3392_v54  ;;  %v3396_v31 = vadd.f32 %v3395_v50, %v7322_v53  ;;  %v3206_v27 = vpop.f32.mrb[192].mxu0 }
 0x415   : > { %4202 = vst [vmem:[%s7007_s0 + $0xbd0] sm:$0xff] %v3394_v11  ;;  %v3207_v15 = vadd.f32 %v3206_v27, %v7347_v16  ;;  %v3208_v29 = vpop.f32.mrb[193].mxu0 }
 0x416   : > { %4203 = vst [vmem:[%s7007_s0 + $0xbd8] sm:$0xff] %v3396_v31  ;;  %v3209_v22 = vadd.f32 %v3208_v29, %v7347_v16  ;;  %v3210_v55 = vpop.f32.mrb[194].mxu0 }
 0x417   : > { %4216 = vst [vmem:[%s7007_s0 + $0xc40] sm:$0xff] %v3207_v15  ;;  %v3211_v9 = vadd.f32 %v3210_v55, %v7353_v3  ;;  %v3212_v6 = vpop.f32.mrb[195].mxu0 }
 0x418   : > { %v3399_v17 = vpop.f32.mrb[192].mxu1  ;;  %4217 = vst [vmem:[%s7007_s0 + $0xc48] sm:$0xff] %v3209_v22  ;;  %v3213_v4 = vadd.f32 %v3212_v6, %v7353_v3 }
 0x419   : > { %v3400_v14 = vadd.f32 %v3399_v17, %v7347_v16  ;;  %v3401_v37 = vpop.f32.mrb[193].mxu1  ;;  %4232 = vst [vmem:[%s7007_s0 + $0xcc0] sm:$0xff] %v3211_v9 }
 0x41a   : > { %v3402_v21 = vadd.f32 %v3401_v37, %v7347_v16  ;;  %v3403_v60 = vpop.f32.mrb[194].mxu1  ;;  %4233 = vst [vmem:[%s7007_s0 + $0xcc8] sm:$0xff] %v3213_v4 }
 0x41b   : > { %4218 = vst [vmem:[%s7007_s0 + $0xc50] sm:$0xff] %v3400_v14  ;;  %v3404_v46 = vadd.f32 %v3403_v60, %v7353_v3  ;;  %v3405_v40 = vpop.f32.mrb[195].mxu1 }
 0x41c   : > { %4219 = vst [vmem:[%s7007_s0 + $0xc58] sm:$0xff] %v3402_v21  ;;  %v3406_v0 = vadd.f32 %v3405_v40, %v7353_v3  ;;  %v3216_v28 = vpop.f32.mrb[196].mxu0 }
 0x41d   : > { %4234 = vst [vmem:[%s7007_s0 + $0xcd0] sm:$0xff] %v3404_v46  ;;  %v3217_v35 = vadd.f32 %v3216_v28, %v7378_v2  ;;  %v3218_v5 = vpop.f32.mrb[197].mxu0 }
 0x41e   : > { %4235 = vst [vmem:[%s7007_s0 + $0xcd8] sm:$0xff] %v3406_v0  ;;  %v3219_v13 = vadd.f32 %v3218_v5, %v7378_v2  ;;  %v3220_v18 = vpop.f32.mrb[198].mxu0 }
 0x41f   : > { %4248 = vst [vmem:[%s7007_s0 + $0xd40] sm:$0xff] %v3217_v35  ;;  %v3221_v49 = vadd.f32 %v3220_v18, %v7384_v24  ;;  %v3222_v30 = vpop.f32.mrb[199].mxu0 }
 0x420   : > { %v3409_v33 = vpop.f32.mrb[196].mxu1  ;;  %4249 = vst [vmem:[%s7007_s0 + $0xd48] sm:$0xff] %v3219_v13  ;;  %v3223_v48 = vadd.f32 %v3222_v30, %v7384_v24 }
 0x421   : > { %v3410_v44 = vadd.f32 %v3409_v33, %v7378_v2  ;;  %v3411_v8 = vpop.f32.mrb[197].mxu1  ;;  %4264 = vst [vmem:[%s7007_s0 + $0xdc0] sm:$0xff] %v3221_v49 }
 0x422   : > { %v3412_v54 = vadd.f32 %v3411_v8, %v7378_v2  ;;  %v3413_v43 = vpop.f32.mrb[198].mxu1  ;;  %4265 = vst [vmem:[%s7007_s0 + $0xdc8] sm:$0xff] %v3223_v48 }
 0x423   : > { %4250 = vst [vmem:[%s7007_s0 + $0xd50] sm:$0xff] %v3410_v44  ;;  %v3414_v11 = vadd.f32 %v3413_v43, %v7384_v24  ;;  %v3415_v50 = vpop.f32.mrb[199].mxu1 }
 0x424   : > { %4251 = vst [vmem:[%s7007_s0 + $0xd58] sm:$0xff] %v3412_v54  ;;  %v3416_v31 = vadd.f32 %v3415_v50, %v7384_v24  ;;  %v3226_v27 = vpop.f32.mrb[200].mxu0 }
 0x425   : > { %4266 = vst [vmem:[%s7007_s0 + $0xdd0] sm:$0xff] %v3414_v11  ;;  %v3227_v15 = vadd.f32 %v3226_v27, %v7409_v20  ;;  %v3228_v29 = vpop.f32.mrb[201].mxu0 }
 0x426   : > { %4267 = vst [vmem:[%s7007_s0 + $0xdd8] sm:$0xff] %v3416_v31  ;;  %v3229_v22 = vadd.f32 %v3228_v29, %v7409_v20  ;;  %v3230_v55 = vpop.f32.mrb[202].mxu0 }
 0x427   : > { %4280 = vst [vmem:[%s7007_s0 + $0xe40] sm:$0xff] %v3227_v15  ;;  %v3231_v9 = vadd.f32 %v3230_v55, %v7415_v36  ;;  %v3232_v6 = vpop.f32.mrb[203].mxu0 }
 0x428   : > { %v3419_v17 = vpop.f32.mrb[200].mxu1  ;;  %4281 = vst [vmem:[%s7007_s0 + $0xe48] sm:$0xff] %v3229_v22  ;;  %v3233_v4 = vadd.f32 %v3232_v6, %v7415_v36 }
 0x429   : > { %v3420_v14 = vadd.f32 %v3419_v17, %v7409_v20  ;;  %v3421_v37 = vpop.f32.mrb[201].mxu1  ;;  %4296 = vst [vmem:[%s7007_s0 + $0xec0] sm:$0xff] %v3231_v9 }
 0x42a   : > { %v3422_v21 = vadd.f32 %v3421_v37, %v7409_v20  ;;  %v3423_v60 = vpop.f32.mrb[202].mxu1  ;;  %4297 = vst [vmem:[%s7007_s0 + $0xec8] sm:$0xff] %v3233_v4 }
 0x42b   : > { %4282 = vst [vmem:[%s7007_s0 + $0xe50] sm:$0xff] %v3420_v14  ;;  %v3424_v46 = vadd.f32 %v3423_v60, %v7415_v36  ;;  %v3425_v40 = vpop.f32.mrb[203].mxu1 }
 0x42c   : > { %4283 = vst [vmem:[%s7007_s0 + $0xe58] sm:$0xff] %v3422_v21  ;;  %v3426_v0 = vadd.f32 %v3425_v40, %v7415_v36  ;;  %v3236_v28 = vpop.f32.mrb[204].mxu0 }
 0x42d   : > { %4298 = vst [vmem:[%s7007_s0 + $0xed0] sm:$0xff] %v3424_v46  ;;  %v3237_v35 = vadd.f32 %v3236_v28, %v7440_v39  ;;  %v3238_v5 = vpop.f32.mrb[205].mxu0 }
 0x42e   : > { %4299 = vst [vmem:[%s7007_s0 + $0xed8] sm:$0xff] %v3426_v0  ;;  %v3239_v13 = vadd.f32 %v3238_v5, %v7440_v39  ;;  %v3240_v18 = vpop.f32.mrb[206].mxu0 }
 0x42f   : > { %4312 = vst [vmem:[%s7007_s0 + $0xf40] sm:$0xff] %v3237_v35  ;;  %v3241_v49 = vadd.f32 %v3240_v18, %v7446_v62  ;;  %v3242_v30 = vpop.f32.mrb[207].mxu0 }
 0x430   : > { %v3429_v33 = vpop.f32.mrb[204].mxu1  ;;  %4313 = vst [vmem:[%s7007_s0 + $0xf48] sm:$0xff] %v3239_v13  ;;  %v3243_v48 = vadd.f32 %v3242_v30, %v7446_v62 }
 0x431   : > { %v3430_v44 = vadd.f32 %v3429_v33, %v7440_v39  ;;  %v3431_v8 = vpop.f32.mrb[205].mxu1  ;;  %4328 = vst [vmem:[%s7007_s0 + $0xfc0] sm:$0xff] %v3241_v49 }
 0x432   : > { %v3432_v54 = vadd.f32 %v3431_v8, %v7440_v39  ;;  %v3433_v43 = vpop.f32.mrb[206].mxu1  ;;  %4329 = vst [vmem:[%s7007_s0 + $0xfc8] sm:$0xff] %v3243_v48 }
 0x433   : > { %4314 = vst [vmem:[%s7007_s0 + $0xf50] sm:$0xff] %v3430_v44  ;;  %v3434_v11 = vadd.f32 %v3433_v43, %v7446_v62  ;;  %v3435_v50 = vpop.f32.mrb[207].mxu1 }
 0x434   : > { %4315 = vst [vmem:[%s7007_s0 + $0xf58] sm:$0xff] %v3432_v54  ;;  %v3436_v31 = vadd.f32 %v3435_v50, %v7446_v62  ;;  %v3472_v27 = vpop.f32.mrb[208].mxu0 }
 0x435   : > { %4330 = vst [vmem:[%s7007_s0 + $0xfd0] sm:$0xff] %v3434_v11  ;;  %v3473_v15 = vadd.f32 %v3472_v27, %v6992_v63  ;;  %v3474_v29 = vpop.f32.mrb[209].mxu0 }
 0x436   : > { %4331 = vst [vmem:[%s7007_s0 + $0xfd8] sm:$0xff] %v3436_v31  ;;  %v3475_v22 = vadd.f32 %v3474_v29, %v6992_v63  ;;  %v3476_v55 = vpop.f32.mrb[210].mxu0 }
 0x437   : > { %3836 = vst [vmem:[%s7007_s0 + $0x60] sm:$0xff] %v3473_v15  ;;  %v3477_v9 = vadd.f32 %v3476_v55, %v6998_v61  ;;  %v3478_v6 = vpop.f32.mrb[211].mxu0 }
 0x438   : > { %v3665_v17 = vpop.f32.mrb[208].mxu1  ;;  %3837 = vst [vmem:[%s7007_s0 + $0x68] sm:$0xff] %v3475_v22  ;;  %v3479_v4 = vadd.f32 %v3478_v6, %v6998_v61 }
 0x439   : > { %v3666_v14 = vadd.f32 %v3665_v17, %v6992_v63  ;;  %v3667_v37 = vpop.f32.mrb[209].mxu1  ;;  %3852 = vst [vmem:[%s7007_s0 + $0xe0] sm:$0xff] %v3477_v9 }
 0x43a   : > { %v3668_v21 = vadd.f32 %v3667_v37, %v6992_v63  ;;  %v3669_v60 = vpop.f32.mrb[210].mxu1  ;;  %3853 = vst [vmem:[%s7007_s0 + $0xe8] sm:$0xff] %v3479_v4 }
 0x43b   : > { %3838 = vst [vmem:[%s7007_s0 + $0x70] sm:$0xff] %v3666_v14  ;;  %v3670_v46 = vadd.f32 %v3669_v60, %v6998_v61  ;;  %v3671_v40 = vpop.f32.mrb[211].mxu1 }
 0x43c   : > { %3839 = vst [vmem:[%s7007_s0 + $0x78] sm:$0xff] %v3668_v21  ;;  %v3672_v0 = vadd.f32 %v3671_v40, %v6998_v61  ;;  %v3482_v28 = vpop.f32.mrb[212].mxu0 }
 0x43d   : > { %3854 = vst [vmem:[%s7007_s0 + $0xf0] sm:$0xff] %v3670_v46  ;;  %v3483_v35 = vadd.f32 %v3482_v28, %v7005_v42  ;;  %v3484_v5 = vpop.f32.mrb[213].mxu0 }
 0x43e   : > { %3855 = vst [vmem:[%s7007_s0 + $0xf8] sm:$0xff] %v3672_v0  ;;  %v3485_v63 = vadd.f32 %v3484_v5, %v7005_v42  ;;  %v3486_v13 = vpop.f32.mrb[214].mxu0 }
 0x43f   : > { %3868 = vst [vmem:[%s7007_s0 + $0x160] sm:$0xff] %v3483_v35  ;;  %v3487_v18 = vadd.f32 %v3486_v13, %v7024_v56  ;;  %v3488_v49 = vpop.f32.mrb[215].mxu0 }
 0x440   : > { %v3675_v30 = vpop.f32.mrb[212].mxu1  ;;  %3869 = vst [vmem:[%s7007_s0 + $0x168] sm:$0xff] %v3485_v63  ;;  %v3489_v61 = vadd.f32 %v3488_v49, %v7024_v56 }
 0x441   : > { %v3676_v33 = vadd.f32 %v3675_v30, %v7005_v42  ;;  %v3677_v48 = vpop.f32.mrb[213].mxu1  ;;  %3884 = vst [vmem:[%s7007_s0 + $0x1e0] sm:$0xff] %v3487_v18 }
 0x442   : > { %v3678_v44 = vadd.f32 %v3677_v48, %v7005_v42  ;;  %v3679_v8 = vpop.f32.mrb[214].mxu1  ;;  %3885 = vst [vmem:[%s7007_s0 + $0x1e8] sm:$0xff] %v3489_v61 }
 0x443   : > { %3870 = vst [vmem:[%s7007_s0 + $0x170] sm:$0xff] %v3676_v33  ;;  %v3680_v54 = vadd.f32 %v3679_v8, %v7024_v56  ;;  %v3681_v43 = vpop.f32.mrb[215].mxu1 }
 0x444   : > { %3871 = vst [vmem:[%s7007_s0 + $0x178] sm:$0xff] %v3678_v44  ;;  %v3682_v11 = vadd.f32 %v3681_v43, %v7024_v56  ;;  %v3492_v50 = vpop.f32.mrb[216].mxu0 }
 0x445   : > { %3886 = vst [vmem:[%s7007_s0 + $0x1f0] sm:$0xff] %v3680_v54  ;;  %v3493_v31 = vadd.f32 %v3492_v50, %v7044_v23  ;;  %v3494_v27 = vpop.f32.mrb[217].mxu0 }
 0x446   : > { %3887 = vst [vmem:[%s7007_s0 + $0x1f8] sm:$0xff] %v3682_v11  ;;  %v3495_v42 = vadd.f32 %v3494_v27, %v7044_v23  ;;  %v3496_v15 = vpop.f32.mrb[218].mxu0 }
 0x447   : > { %3900 = vst [vmem:[%s7007_s0 + $0x260] sm:$0xff] %v3493_v31  ;;  %v3497_v29 = vadd.f32 %v3496_v15, %v7050_v41  ;;  %v3498_v22 = vpop.f32.mrb[219].mxu0 }
 0x448   : > { %v3685_v55 = vpop.f32.mrb[216].mxu1  ;;  %3901 = vst [vmem:[%s7007_s0 + $0x268] sm:$0xff] %v3495_v42  ;;  %v3499_v56 = vadd.f32 %v3498_v22, %v7050_v41 }
 0x449   : > { %v3686_v9 = vadd.f32 %v3685_v55, %v7044_v23  ;;  %v3687_v6 = vpop.f32.mrb[217].mxu1  ;;  %3916 = vst [vmem:[%s7007_s0 + $0x2e0] sm:$0xff] %v3497_v29 }
 0x44a   : > { %v3688_v17 = vadd.f32 %v3687_v6, %v7044_v23  ;;  %v3689_v4 = vpop.f32.mrb[218].mxu1  ;;  %3917 = vst [vmem:[%s7007_s0 + $0x2e8] sm:$0xff] %v3499_v56 }
 0x44b   : > { %3902 = vst [vmem:[%s7007_s0 + $0x270] sm:$0xff] %v3686_v9  ;;  %v3690_v14 = vadd.f32 %v3689_v4, %v7050_v41  ;;  %v3691_v37 = vpop.f32.mrb[219].mxu1 }
 0x44c   : > { %3903 = vst [vmem:[%s7007_s0 + $0x278] sm:$0xff] %v3688_v17  ;;  %v3692_v21 = vadd.f32 %v3691_v37, %v7050_v41  ;;  %v3502_v60 = vpop.f32.mrb[220].mxu0 }
 0x44d   : > { %3918 = vst [vmem:[%s7007_s0 + $0x2f0] sm:$0xff] %v3690_v14  ;;  %v3503_v46 = vadd.f32 %v3502_v60, %v7070_v52  ;;  %v3504_v40 = vpop.f32.mrb[221].mxu0 }
 0x44e   : > { %3919 = vst [vmem:[%s7007_s0 + $0x2f8] sm:$0xff] %v3692_v21  ;;  %v3505_v23 = vadd.f32 %v3504_v40, %v7070_v52  ;;  %v3506_v0 = vpop.f32.mrb[222].mxu0 }
 0x44f   : > { %3932 = vst [vmem:[%s7007_s0 + $0x360] sm:$0xff] %v3503_v46  ;;  %v3507_v28 = vadd.f32 %v3506_v0, %v7076_v45  ;;  %v3508_v35 = vpop.f32.mrb[223].mxu0 }
 0x450   : > { %v3695_v5 = vpop.f32.mrb[220].mxu1  ;;  %3933 = vst [vmem:[%s7007_s0 + $0x368] sm:$0xff] %v3505_v23  ;;  %v3509_v41 = vadd.f32 %v3508_v35, %v7076_v45 }
 0x451   : > { %v3696_v63 = vadd.f32 %v3695_v5, %v7070_v52  ;;  %v3697_v13 = vpop.f32.mrb[221].mxu1  ;;  %3948 = vst [vmem:[%s7007_s0 + $0x3e0] sm:$0xff] %v3507_v28 }
 0x452   : > { %v3698_v18 = vadd.f32 %v3697_v13, %v7070_v52  ;;  %v3699_v49 = vpop.f32.mrb[222].mxu1  ;;  %3949 = vst [vmem:[%s7007_s0 + $0x3e8] sm:$0xff] %v3509_v41 }
 0x453   : > { %3934 = vst [vmem:[%s7007_s0 + $0x370] sm:$0xff] %v3696_v63  ;;  %v3700_v30 = vadd.f32 %v3699_v49, %v7076_v45  ;;  %v3701_v61 = vpop.f32.mrb[223].mxu1 }
 0x454   : > { %3935 = vst [vmem:[%s7007_s0 + $0x378] sm:$0xff] %v3698_v18  ;;  %v3702_v33 = vadd.f32 %v3701_v61, %v7076_v45  ;;  %v3512_v48 = vpop.f32.mrb[224].mxu0 }
 0x455   : > { %3950 = vst [vmem:[%s7007_s0 + $0x3f0] sm:$0xff] %v3700_v30  ;;  %v3513_v44 = vadd.f32 %v3512_v48, %v7096_v10  ;;  %v3514_v8 = vpop.f32.mrb[225].mxu0 }
 0x456   : > { %3951 = vst [vmem:[%s7007_s0 + $0x3f8] sm:$0xff] %v3702_v33  ;;  %v3515_v52 = vadd.f32 %v3514_v8, %v7096_v10  ;;  %v3516_v54 = vpop.f32.mrb[226].mxu0 }
 0x457   : > { %3964 = vst [vmem:[%s7007_s0 + $0x460] sm:$0xff] %v3513_v44  ;;  %v3517_v43 = vadd.f32 %v3516_v54, %v7102_v26  ;;  %v3518_v11 = vpop.f32.mrb[227].mxu0 }
 0x458   : > { %v3705_v50 = vpop.f32.mrb[224].mxu1  ;;  %3965 = vst [vmem:[%s7007_s0 + $0x468] sm:$0xff] %v3515_v52  ;;  %v3519_v45 = vadd.f32 %v3518_v11, %v7102_v26 }
 0x459   : > { %v3706_v31 = vadd.f32 %v3705_v50, %v7096_v10  ;;  %v3707_v27 = vpop.f32.mrb[225].mxu1  ;;  %3980 = vst [vmem:[%s7007_s0 + $0x4e0] sm:$0xff] %v3517_v43 }
 0x45a   : > { %v3708_v42 = vadd.f32 %v3707_v27, %v7096_v10  ;;  %v3709_v15 = vpop.f32.mrb[226].mxu1  ;;  %3981 = vst [vmem:[%s7007_s0 + $0x4e8] sm:$0xff] %v3519_v45 }
 0x45b   : > { %3966 = vst [vmem:[%s7007_s0 + $0x470] sm:$0xff] %v3706_v31  ;;  %v3710_v29 = vadd.f32 %v3709_v15, %v7102_v26  ;;  %v3711_v22 = vpop.f32.mrb[227].mxu1 }
 0x45c   : > { %3967 = vst [vmem:[%s7007_s0 + $0x478] sm:$0xff] %v3708_v42  ;;  %v3712_v55 = vadd.f32 %v3711_v22, %v7102_v26  ;;  %v3522_v56 = vpop.f32.mrb[228].mxu0 }
 0x45d   : > { %3982 = vst [vmem:[%s7007_s0 + $0x4f0] sm:$0xff] %v3710_v29  ;;  %v3523_v9 = vadd.f32 %v3522_v56, %v7122_v51  ;;  %v3524_v6 = vpop.f32.mrb[229].mxu0 }
 0x45e   : > { %3983 = vst [vmem:[%s7007_s0 + $0x4f8] sm:$0xff] %v3712_v55  ;;  %v3525_v10 = vadd.f32 %v3524_v6, %v7122_v51  ;;  %v3526_v17 = vpop.f32.mrb[230].mxu0 }
 0x45f   : > { %3996 = vst [vmem:[%s7007_s0 + $0x560] sm:$0xff] %v3523_v9  ;;  %v3527_v4 = vadd.f32 %v3526_v17, %v7128_v1  ;;  %v3528_v14 = vpop.f32.mrb[231].mxu0 }
 0x460   : > { %v3715_v37 = vpop.f32.mrb[228].mxu1  ;;  %3997 = vst [vmem:[%s7007_s0 + $0x568] sm:$0xff] %v3525_v10  ;;  %v3529_v26 = vadd.f32 %v3528_v14, %v7128_v1 }
 0x461   : > { %v3716_v21 = vadd.f32 %v3715_v37, %v7122_v51  ;;  %v3717_v60 = vpop.f32.mrb[229].mxu1  ;;  %4012 = vst [vmem:[%s7007_s0 + $0x5e0] sm:$0xff] %v3527_v4 }
 0x462   : > { %v3718_v46 = vadd.f32 %v3717_v60, %v7122_v51  ;;  %v3719_v40 = vpop.f32.mrb[230].mxu1  ;;  %4013 = vst [vmem:[%s7007_s0 + $0x5e8] sm:$0xff] %v3529_v26 }
 0x463   : > { %3998 = vst [vmem:[%s7007_s0 + $0x570] sm:$0xff] %v3716_v21  ;;  %v3720_v23 = vadd.f32 %v3719_v40, %v7128_v1  ;;  %v3721_v0 = vpop.f32.mrb[231].mxu1 }
 0x464   : > { %3999 = vst [vmem:[%s7007_s0 + $0x578] sm:$0xff] %v3718_v46  ;;  %v3722_v28 = vadd.f32 %v3721_v0, %v7128_v1  ;;  %v3532_v35 = vpop.f32.mrb[232].mxu0 }
 0x465   : > { %4014 = vst [vmem:[%s7007_s0 + $0x5f0] sm:$0xff] %v3720_v23  ;;  %v3533_v5 = vadd.f32 %v3532_v35, %v7154_v7  ;;  %v3534_v41 = vpop.f32.mrb[233].mxu0 }
 0x466   : > { %4015 = vst [vmem:[%s7007_s0 + $0x5f8] sm:$0xff] %v3722_v28  ;;  %v3535_v51 = vadd.f32 %v3534_v41, %v7154_v7  ;;  %v3536_v63 = vpop.f32.mrb[234].mxu0 }
 0x467   : > { %4028 = vst [vmem:[%s7007_s0 + $0x660] sm:$0xff] %v3533_v5  ;;  %v3537_v13 = vadd.f32 %v3536_v63, %v7159_v38  ;;  %v3538_v18 = vpop.f32.mrb[235].mxu0 }
 0x468   : > { %v3725_v49 = vpop.f32.mrb[232].mxu1  ;;  %4029 = vst [vmem:[%s7007_s0 + $0x668] sm:$0xff] %v3535_v51  ;;  %v3539_v1 = vadd.f32 %v3538_v18, %v7159_v38 }
 0x469   : > { %v3726_v30 = vadd.f32 %v3725_v49, %v7154_v7  ;;  %v3727_v61 = vpop.f32.mrb[233].mxu1  ;;  %4044 = vst [vmem:[%s7007_s0 + $0x6e0] sm:$0xff] %v3537_v13 }
 0x46a   : > { %v3728_v33 = vadd.f32 %v3727_v61, %v7154_v7  ;;  %v3729_v48 = vpop.f32.mrb[234].mxu1  ;;  %4045 = vst [vmem:[%s7007_s0 + $0x6e8] sm:$0xff] %v3539_v1 }
 0x46b   : > { %4030 = vst [vmem:[%s7007_s0 + $0x670] sm:$0xff] %v3726_v30  ;;  %v3730_v44 = vadd.f32 %v3729_v48, %v7159_v38  ;;  %v3731_v8 = vpop.f32.mrb[235].mxu1 }
 0x46c   : > { %4031 = vst [vmem:[%s7007_s0 + $0x678] sm:$0xff] %v3728_v33  ;;  %v3732_v52 = vadd.f32 %v3731_v8, %v7159_v38  ;;  %v3542_v54 = vpop.f32.mrb[236].mxu0 }
 0x46d   : > { %4046 = vst [vmem:[%s7007_s0 + $0x6f0] sm:$0xff] %v3730_v44  ;;  %v3543_v43 = vadd.f32 %v3542_v54, %v7190_v34  ;;  %v3544_v11 = vpop.f32.mrb[237].mxu0 }
 0x46e   : > { %4047 = vst [vmem:[%s7007_s0 + $0x6f8] sm:$0xff] %v3732_v52  ;;  %v3545_v7 = vadd.f32 %v3544_v11, %v7190_v34  ;;  %v3546_v50 = vpop.f32.mrb[238].mxu0 }
 0x46f   : > { %4060 = vst [vmem:[%s7007_s0 + $0x760] sm:$0xff] %v3543_v43  ;;  %v3547_v45 = vadd.f32 %v3546_v50, %v7174_v25  ;;  %v3548_v31 = vpop.f32.mrb[239].mxu0 }
 0x470   : > { %v3735_v27 = vpop.f32.mrb[236].mxu1  ;;  %4061 = vst [vmem:[%s7007_s0 + $0x768] sm:$0xff] %v3545_v7  ;;  %v3549_v38 = vadd.f32 %v3548_v31, %v7174_v25 }
 0x471   : > { %v3736_v42 = vadd.f32 %v3735_v27, %v7190_v34  ;;  %v3737_v15 = vpop.f32.mrb[237].mxu1  ;;  %4076 = vst [vmem:[%s7007_s0 + $0x7e0] sm:$0xff] %v3547_v45 }
 0x472   : > { %v3738_v29 = vadd.f32 %v3737_v15, %v7190_v34  ;;  %v3739_v22 = vpop.f32.mrb[238].mxu1  ;;  %4077 = vst [vmem:[%s7007_s0 + $0x7e8] sm:$0xff] %v3549_v38 }
 0x473   : > { %4062 = vst [vmem:[%s7007_s0 + $0x770] sm:$0xff] %v3736_v42  ;;  %v3740_v55 = vadd.f32 %v3739_v22, %v7174_v25  ;;  %v3741_v56 = vpop.f32.mrb[239].mxu1 }
 0x474   : > { %4063 = vst [vmem:[%s7007_s0 + $0x778] sm:$0xff] %v3738_v29  ;;  %v3742_v9 = vadd.f32 %v3741_v56, %v7174_v25  ;;  %v3552_v6 = vpop.f32.mrb[240].mxu0 }
 0x475   : > { %4078 = vst [vmem:[%s7007_s0 + $0x7f0] sm:$0xff] %v3740_v55  ;;  %v3553_v10 = vadd.f32 %v3552_v6, %v7205_v58  ;;  %v3554_v17 = vpop.f32.mrb[241].mxu0 }
 0x476   : > { %4079 = vst [vmem:[%s7007_s0 + $0x7f8] sm:$0xff] %v3742_v9  ;;  %v3555_v34 = vadd.f32 %v3554_v17, %v7205_v58  ;;  %v3556_v4 = vpop.f32.mrb[242].mxu0 }
 0x477   : > { %4092 = vst [vmem:[%s7007_s0 + $0x860] sm:$0xff] %v3553_v10  ;;  %v3557_v14 = vadd.f32 %v3556_v4, %v7225_v32  ;;  %v3558_v37 = vpop.f32.mrb[243].mxu0 }
 0x478   : > { %v3745_v26 = vpop.f32.mrb[240].mxu1  ;;  %4093 = vst [vmem:[%s7007_s0 + $0x868] sm:$0xff] %v3555_v34  ;;  %v3559_v25 = vadd.f32 %v3558_v37, %v7225_v32 }
 0x479   : > { %v3746_v21 = vadd.f32 %v3745_v26, %v7205_v58  ;;  %v3747_v60 = vpop.f32.mrb[241].mxu1  ;;  %4108 = vst [vmem:[%s7007_s0 + $0x8e0] sm:$0xff] %v3557_v14 }
 0x47a   : > { %v3748_v46 = vadd.f32 %v3747_v60, %v7205_v58  ;;  %v3749_v40 = vpop.f32.mrb[242].mxu1  ;;  %4109 = vst [vmem:[%s7007_s0 + $0x8e8] sm:$0xff] %v3559_v25 }
 0x47b   : > { %4094 = vst [vmem:[%s7007_s0 + $0x870] sm:$0xff] %v3746_v21  ;;  %v3750_v23 = vadd.f32 %v3749_v40, %v7225_v32  ;;  %v3751_v0 = vpop.f32.mrb[243].mxu1 }
 0x47c   : > { %4095 = vst [vmem:[%s7007_s0 + $0x878] sm:$0xff] %v3748_v46  ;;  %v3752_v28 = vadd.f32 %v3751_v0, %v7225_v32  ;;  %v3562_v35 = vpop.f32.mrb[244].mxu0 }
 0x47d   : > { %4110 = vst [vmem:[%s7007_s0 + $0x8f0] sm:$0xff] %v3750_v23  ;;  %v3563_v5 = vadd.f32 %v3562_v35, %v7254_v19  ;;  %v3564_v41 = vpop.f32.mrb[245].mxu0 }
 0x47e   : > { %4111 = vst [vmem:[%s7007_s0 + $0x8f8] sm:$0xff] %v3752_v28  ;;  %v3565_v58 = vadd.f32 %v3564_v41, %v7254_v19  ;;  %v3566_v51 = vpop.f32.mrb[246].mxu0 }
 0x47f   : > { %4124 = vst [vmem:[%s7007_s0 + $0x960] sm:$0xff] %v3563_v5  ;;  %v3567_v63 = vadd.f32 %v3566_v51, %v7260_v59  ;;  %v3568_v13 = vpop.f32.mrb[247].mxu0 }
 0x480   : > { %v3755_v18 = vpop.f32.mrb[244].mxu1  ;;  %4125 = vst [vmem:[%s7007_s0 + $0x968] sm:$0xff] %v3565_v58  ;;  %v3569_v32 = vadd.f32 %v3568_v13, %v7260_v59 }
 0x481   : > { %v3756_v49 = vadd.f32 %v3755_v18, %v7254_v19  ;;  %v3757_v1 = vpop.f32.mrb[245].mxu1  ;;  %4140 = vst [vmem:[%s7007_s0 + $0x9e0] sm:$0xff] %v3567_v63 }
 0x482   : > { %v3758_v30 = vadd.f32 %v3757_v1, %v7254_v19  ;;  %v3759_v61 = vpop.f32.mrb[246].mxu1  ;;  %4141 = vst [vmem:[%s7007_s0 + $0x9e8] sm:$0xff] %v3569_v32 }
 0x483   : > { %4126 = vst [vmem:[%s7007_s0 + $0x970] sm:$0xff] %v3756_v49  ;;  %v3760_v33 = vadd.f32 %v3759_v61, %v7260_v59  ;;  %v3761_v48 = vpop.f32.mrb[247].mxu1 }
 0x484   : > { %4127 = vst [vmem:[%s7007_s0 + $0x978] sm:$0xff] %v3758_v30  ;;  %v3762_v44 = vadd.f32 %v3761_v48, %v7260_v59  ;;  %v3572_v8 = vpop.f32.mrb[248].mxu0 }
 0x485   : > { %4142 = vst [vmem:[%s7007_s0 + $0x9f0] sm:$0xff] %v3760_v33  ;;  %v3573_v52 = vadd.f32 %v3572_v8, %v7285_v12  ;;  %v3574_v54 = vpop.f32.mrb[249].mxu0 }
 0x486   : > { %4143 = vst [vmem:[%s7007_s0 + $0x9f8] sm:$0xff] %v3762_v44  ;;  %v3575_v19 = vadd.f32 %v3574_v54, %v7285_v12  ;;  %v3576_v43 = vpop.f32.mrb[250].mxu0 }
 0x487   : > { %4156 = vst [vmem:[%s7007_s0 + $0xa60] sm:$0xff] %v3573_v52  ;;  %v3577_v11 = vadd.f32 %v3576_v43, %v7291_v47  ;;  %v3578_v7 = vpop.f32.mrb[251].mxu0 }
 0x488   : > { %v3765_v50 = vpop.f32.mrb[248].mxu1  ;;  %4157 = vst [vmem:[%s7007_s0 + $0xa68] sm:$0xff] %v3575_v19  ;;  %v3579_v59 = vadd.f32 %v3578_v7, %v7291_v47 }
 0x489   : > { %v3766_v45 = vadd.f32 %v3765_v50, %v7285_v12  ;;  %v3767_v31 = vpop.f32.mrb[249].mxu1  ;;  %4172 = vst [vmem:[%s7007_s0 + $0xae0] sm:$0xff] %v3577_v11 }
 0x48a   : > { %v3768_v27 = vadd.f32 %v3767_v31, %v7285_v12  ;;  %v3769_v38 = vpop.f32.mrb[250].mxu1  ;;  %4173 = vst [vmem:[%s7007_s0 + $0xae8] sm:$0xff] %v3579_v59 }
 0x48b   : > { %4158 = vst [vmem:[%s7007_s0 + $0xa70] sm:$0xff] %v3766_v45  ;;  %v3770_v42 = vadd.f32 %v3769_v38, %v7291_v47  ;;  %v3771_v15 = vpop.f32.mrb[251].mxu1 }
 0x48c   : > { %4159 = vst [vmem:[%s7007_s0 + $0xa78] sm:$0xff] %v3768_v27  ;;  %v3772_v29 = vadd.f32 %v3771_v15, %v7291_v47  ;;  %v3582_v22 = vpop.f32.mrb[252].mxu0 }
 0x48d   : > { %4174 = vst [vmem:[%s7007_s0 + $0xaf0] sm:$0xff] %v3770_v42  ;;  %v3583_v55 = vadd.f32 %v3582_v22, %v7316_v57  ;;  %v3584_v56 = vpop.f32.mrb[253].mxu0 }
 0x48e   : > { %4175 = vst [vmem:[%s7007_s0 + $0xaf8] sm:$0xff] %v3772_v29  ;;  %v3585_v12 = vadd.f32 %v3584_v56, %v7316_v57  ;;  %v3586_v9 = vpop.f32.mrb[254].mxu0 }
 0x48f   : > { %4188 = vst [vmem:[%s7007_s0 + $0xb60] sm:$0xff] %v3583_v55  ;;  %v3587_v6 = vadd.f32 %v3586_v9, %v7322_v53  ;;  %v3588_v10 = vpop.f32.mrb[255].mxu0 }
 0x490   : > { %v3775_v17 = vpop.f32.mrb[252].mxu1  ;;  %4189 = vst [vmem:[%s7007_s0 + $0xb68] sm:$0xff] %v3585_v12  ;;  %v3589_v47 = vadd.f32 %v3588_v10, %v7322_v53 }
 0x491   : > { %v3776_v34 = vadd.f32 %v3775_v17, %v7316_v57  ;;  %v3777_v4 = vpop.f32.mrb[253].mxu1  ;;  %4204 = vst [vmem:[%s7007_s0 + $0xbe0] sm:$0xff] %v3587_v6 }
 0x492   : > { %v3778_v14 = vadd.f32 %v3777_v4, %v7316_v57  ;;  %v3779_v37 = vpop.f32.mrb[254].mxu1  ;;  %4205 = vst [vmem:[%s7007_s0 + $0xbe8] sm:$0xff] %v3589_v47 }
 0x493   : > { %4190 = vst [vmem:[%s7007_s0 + $0xb70] sm:$0xff] %v3776_v34  ;;  %v3780_v26 = vadd.f32 %v3779_v37, %v7322_v53  ;;  %v3781_v25 = vpop.f32.mrb[255].mxu1 }
 0x494   : > { %4191 = vst [vmem:[%s7007_s0 + $0xb78] sm:$0xff] %v3778_v14  ;;  %v3782_v21 = vadd.f32 %v3781_v25, %v7322_v53  ;;  %v3592_v60 = vpop.f32.mrb[0].mxu0 }
 0x495   : > { %4206 = vst [vmem:[%s7007_s0 + $0xbf0] sm:$0xff] %v3780_v26  ;;  %v3593_v46 = vadd.f32 %v3592_v60, %v7347_v16  ;;  %v3594_v40 = vpop.f32.mrb[1].mxu0 }
 0x496   : > { %4207 = vst [vmem:[%s7007_s0 + $0xbf8] sm:$0xff] %v3782_v21  ;;  %v3595_v57 = vadd.f32 %v3594_v40, %v7347_v16  ;;  %v3596_v23 = vpop.f32.mrb[2].mxu0 }
 0x497   : > { %4220 = vst [vmem:[%s7007_s0 + $0xc60] sm:$0xff] %v3593_v46  ;;  %v3597_v0 = vadd.f32 %v3596_v23, %v7353_v3  ;;  %v3598_v28 = vpop.f32.mrb[3].mxu0 }
 0x498   : > { %v3785_v35 = vpop.f32.mrb[0].mxu1  ;;  %4221 = vst [vmem:[%s7007_s0 + $0xc68] sm:$0xff] %v3595_v57  ;;  %v3599_v53 = vadd.f32 %v3598_v28, %v7353_v3  ;;  %v8736_v57 = vld [vmem:[#allocation29_spill] sm:$0xff] }
 0x499   : > { %v3786_v5 = vadd.f32 %v3785_v35, %v7347_v16  ;;  %v3787_v41 = vpop.f32.mrb[1].mxu1  ;;  %4236 = vst [vmem:[%s7007_s0 + $0xce0] sm:$0xff] %v3597_v0  ;;  %v5799_v35 = vld [vmem:[%s6364_s24] sm:$0xff] }
 0x49a   : > { %v3788_v58 = vadd.f32 %v3787_v41, %v7347_v16  ;;  %v3789_v51 = vpop.f32.mrb[2].mxu1  ;;  %4237 = vst [vmem:[%s7007_s0 + $0xce8] sm:$0xff] %v3599_v53 }
 0x49b   : > { %4222 = vst [vmem:[%s7007_s0 + $0xc70] sm:$0xff] %v3786_v5  ;;  %v3790_v63 = vadd.f32 %v3789_v51, %v7353_v3  ;;  %v3791_v13 = vpop.f32.mrb[3].mxu1  ;;  %v8737_v5 = vld [vmem:[#allocation30_spill] sm:$0xff] }
 0x49c   : > { %4223 = vst [vmem:[%s7007_s0 + $0xc78] sm:$0xff] %v3788_v58  ;;  %v3792_v18 = vadd.f32 %v3791_v13, %v7353_v3  ;;  %v3602_v32 = vpop.f32.mrb[4].mxu0 }
 0x49d   : > { %4238 = vst [vmem:[%s7007_s0 + $0xcf0] sm:$0xff] %v3790_v63  ;;  %v3603_v49 = vadd.f32 %v3602_v32, %v7378_v2  ;;  %v3604_v1 = vpop.f32.mrb[5].mxu0 }
 0x49e   : > { %4239 = vst [vmem:[%s7007_s0 + $0xcf8] sm:$0xff] %v3792_v18  ;;  %v3605_v16 = vadd.f32 %v3604_v1, %v7378_v2  ;;  %v3606_v30 = vpop.f32.mrb[6].mxu0 }
 0x49f   : > { %4252 = vst [vmem:[%s7007_s0 + $0xd60] sm:$0xff] %v3603_v49  ;;  %v3607_v61 = vadd.f32 %v3606_v30, %v7384_v24  ;;  %v3608_v33 = vpop.f32.mrb[7].mxu0  ;;  %v5801_v49 = vld [vmem:[%s6364_s24 + $0x80] sm:$0xff] }
 0x4a0   : > { %v3795_v48 = vpop.f32.mrb[4].mxu1  ;;  %4253 = vst [vmem:[%s7007_s0 + $0xd68] sm:$0xff] %v3605_v16  ;;  %v3609_v3 = vadd.f32 %v3608_v33, %v7384_v24 }
 0x4a1   : > { %v3796_v44 = vadd.f32 %v3795_v48, %v7378_v2  ;;  %v3797_v8 = vpop.f32.mrb[5].mxu1  ;;  %4268 = vst [vmem:[%s7007_s0 + $0xde0] sm:$0xff] %v3607_v61  ;;  %v5802_v61 = vld [vmem:[%s6364_s24 + $0x88] sm:$0xff]  ;;  %v5803_v48 = vld [vmem:[%s6364_s24 + $0x10] sm:$0xff] }
 0x4a2   : > { %v3798_v52 = vadd.f32 %v3797_v8, %v7378_v2  ;;  %v3799_v54 = vpop.f32.mrb[6].mxu1  ;;  %4269 = vst [vmem:[%s7007_s0 + $0xde8] sm:$0xff] %v3609_v3 }
 0x4a3   : > { %4254 = vst [vmem:[%s7007_s0 + $0xd70] sm:$0xff] %v3796_v44  ;;  %v3800_v19 = vadd.f32 %v3799_v54, %v7384_v24  ;;  %v3801_v43 = vpop.f32.mrb[7].mxu1 }
 0x4a4   : > { %4255 = vst [vmem:[%s7007_s0 + $0xd78] sm:$0xff] %v3798_v52  ;;  %v3802_v11 = vadd.f32 %v3801_v43, %v7384_v24  ;;  %v3612_v7 = vpop.f32.mrb[8].mxu0  ;;  %v5804_v52 = vld [vmem:[%s6364_s24 + $0x18] sm:$0xff] }
 0x4a5   : > { %4270 = vst [vmem:[%s7007_s0 + $0xdf0] sm:$0xff] %v3800_v19  ;;  %v3613_v50 = vadd.f32 %v3612_v7, %v7409_v20  ;;  %v3614_v59 = vpop.f32.mrb[9].mxu0 }
 0x4a6   : > { %4271 = vst [vmem:[%s7007_s0 + $0xdf8] sm:$0xff] %v3802_v11  ;;  %v3615_v2 = vadd.f32 %v3614_v59, %v7409_v20  ;;  %v3616_v45 = vpop.f32.mrb[10].mxu0  ;;  %v5805_v11 = vld [vmem:[%s6364_s24 + $0x90] sm:$0xff] }
 0x4a7   : > { %4284 = vst [vmem:[%s7007_s0 + $0xe60] sm:$0xff] %v3613_v50  ;;  %v3617_v31 = vadd.f32 %v3616_v45, %v7415_v36  ;;  %v3618_v27 = vpop.f32.mrb[11].mxu0 }
 0x4a8   : > { %v3805_v38 = vpop.f32.mrb[8].mxu1  ;;  %4285 = vst [vmem:[%s7007_s0 + $0xe68] sm:$0xff] %v3615_v2  ;;  %v3619_v24 = vadd.f32 %v3618_v27, %v7415_v36  ;;  %v5806_v2 = vld [vmem:[%s6364_s24 + $0x98] sm:$0xff] }
 0x4a9   : > { %v3806_v42 = vadd.f32 %v3805_v38, %v7409_v20  ;;  %v3807_v15 = vpop.f32.mrb[9].mxu1  ;;  %4300 = vst [vmem:[%s7007_s0 + $0xee0] sm:$0xff] %v3617_v31  ;;  %v5807_v38 = vld [vmem:[%s6364_s24 + $0x20] sm:$0xff] }
 0x4aa   : > { %v3808_v29 = vadd.f32 %v3807_v15, %v7409_v20  ;;  %v3809_v22 = vpop.f32.mrb[10].mxu1  ;;  %4301 = vst [vmem:[%s7007_s0 + $0xee8] sm:$0xff] %v3619_v24 }
 0x4ab   : > { %4286 = vst [vmem:[%s7007_s0 + $0xe70] sm:$0xff] %v3806_v42  ;;  %v3810_v55 = vadd.f32 %v3809_v22, %v7415_v36  ;;  %v3811_v56 = vpop.f32.mrb[11].mxu1  ;;  %v5808_v22 = vld [vmem:[%s6364_s24 + $0x28] sm:$0xff] }
 0x4ac   : > { %4287 = vst [vmem:[%s7007_s0 + $0xe78] sm:$0xff] %v3808_v29  ;;  %v3812_v12 = vadd.f32 %v3811_v56, %v7415_v36  ;;  %v3622_v9 = vpop.f32.mrb[12].mxu0 }
 0x4ad   : > { %4302 = vst [vmem:[%s7007_s0 + $0xef0] sm:$0xff] %v3810_v55  ;;  %v3623_v6 = vadd.f32 %v3622_v9, %v7440_v39  ;;  %v3624_v10 = vpop.f32.mrb[13].mxu0 }
 0x4ae   : > { %4303 = vst [vmem:[%s7007_s0 + $0xef8] sm:$0xff] %v3812_v12  ;;  %v3625_v20 = vadd.f32 %v3624_v10, %v7440_v39  ;;  %v3626_v17 = vpop.f32.mrb[14].mxu0 }
 0x4af   : > { %4316 = vst [vmem:[%s7007_s0 + $0xf60] sm:$0xff] %v3623_v6  ;;  %v3627_v47 = vadd.f32 %v3626_v17, %v7446_v62  ;;  %v3628_v34 = vpop.f32.mrb[15].mxu0  ;;  %v5809_v6 = vld [vmem:[%s6364_s24 + $0xa0] sm:$0xff] }
 0x4b0   : > { %v3815_v4 = vpop.f32.mrb[12].mxu1  ;;  %4317 = vst [vmem:[%s7007_s0 + $0xf68] sm:$0xff] %v3625_v20  ;;  %v3629_v36 = vadd.f32 %v3628_v34, %v7446_v62 }
 0x4b1   : > { %v3816_v14 = vadd.f32 %v3815_v4, %v7440_v39  ;;  %v3817_v37 = vpop.f32.mrb[13].mxu1  ;;  %4332 = vst [vmem:[%s7007_s0 + $0xfe0] sm:$0xff] %v3627_v47  ;;  %v5810_v47 = vld [vmem:[%s6364_s24 + $0xa8] sm:$0xff]  ;;  %v5811_v4 = vld [vmem:[%s6364_s24 + $0x30] sm:$0xff] }
 0x4b2   : > { %v3818_v26 = vadd.f32 %v3817_v37, %v7440_v39  ;;  %v3819_v25 = vpop.f32.mrb[14].mxu1  ;;  %4333 = vst [vmem:[%s7007_s0 + $0xfe8] sm:$0xff] %v3629_v36 }
 0x4b3   : > { %4318 = vst [vmem:[%s7007_s0 + $0xf70] sm:$0xff] %v3816_v14  ;;  %v3820_v21 = vadd.f32 %v3819_v25, %v7446_v62  ;;  %v3821_v60 = vpop.f32.mrb[15].mxu1 }
 0x4b4   : > { %4319 = vst [vmem:[%s7007_s0 + $0xf78] sm:$0xff] %v3818_v26  ;;  %v3822_v46 = vadd.f32 %v3821_v60, %v7446_v62  ;;  %v4392_v40 = vpop.f32.mrb[16].mxu0  ;;  %v5800_v62 = vld [vmem:[%s6364_s24 + $0x8] sm:$0xff]  ;;  %v5812_v26 = vld [vmem:[%s6364_s24 + $0x38] sm:$0xff] }
 0x4b5   : > { %4334 = vst [vmem:[%s7007_s0 + $0xff0] sm:$0xff] %v3820_v21  ;;  %v4393_v23 = vadd.f32 %v4392_v40, %v8736_v57  ;;  %v4394_v0 = vpop.f32.mrb[17].mxu0 }
 0x4b6   : > { %4335 = vst [vmem:[%s7007_s0 + $0xff8] sm:$0xff] %v3822_v46  ;;  %v4395_v39 = vadd.f32 %v4394_v0, %v8736_v57  ;;  %v4396_v28 = vpop.f32.mrb[18].mxu0  ;;  %v5813_v46 = vld [vmem:[%s6364_s24 + $0xb0] sm:$0xff] }
 0x4b7   : > { %v4702_v53 = vadd.f32 %v5799_v35, %v4393_v23  ;;  %v4397_v41 = vadd.f32 %v4396_v28, %v8737_v5  ;;  %v4398_v58 = vpop.f32.mrb[19].mxu0 }
 0x4b8   : > { %v4435_v51 = vpop.f32.mrb[16].mxu1  ;;  %v4703_v63 = vadd.f32 %v5800_v62, %v4395_v39  ;;  %v4399_v13 = vadd.f32 %v4398_v58, %v8737_v5  ;;  %v5814_v39 = vld [vmem:[%s6364_s24 + $0xb8] sm:$0xff] }
 0x4b9   : > { %4734 = vst [vmem:[%s8447_s30] sm:$0xff] %v4702_v53  ;;  %v4436_v18 = vadd.f32 %v4435_v51, %v8736_v57  ;;  %v4437_v32 = vpop.f32.mrb[17].mxu1  ;;  %v4718_v1 = vadd.f32 %v5801_v49, %v4397_v41  ;;  %v5815_v41 = vld [vmem:[%s6364_s24 + $0x40] sm:$0xff] }
 0x4ba   : > { %4735 = vst [vmem:[%s8447_s30 + $0x8] sm:$0xff] %v4703_v63  ;;  %v4438_v16 = vadd.f32 %v4437_v32, %v8736_v57  ;;  %v4439_v30 = vpop.f32.mrb[18].mxu1  ;;  %v4719_v33 = vadd.f32 %v5802_v61, %v4399_v13  ;;  %v5816_v13 = vld [vmem:[%s6364_s24 + $0x48] sm:$0xff] }
 0x4bb   : > { %v4704_v3 = vadd.f32 %v5803_v48, %v4436_v18  ;;  %4750 = vst [vmem:[%s8447_s30 + $0x80] sm:$0xff] %v4718_v1  ;;  %v4440_v44 = vadd.f32 %v4439_v30, %v8737_v5  ;;  %v4441_v8 = vpop.f32.mrb[19].mxu1  ;;  %v5818_v48 = vld [vmem:[%s6364_s24 + $0xc8] sm:$0xff] }
 0x4bc   : > { %v4705_v54 = vadd.f32 %v5804_v52, %v4438_v16  ;;  %4751 = vst [vmem:[%s8447_s30 + $0x88] sm:$0xff] %v4719_v33  ;;  %v4442_v19 = vadd.f32 %v4441_v8, %v8737_v5  ;;  %v4478_v43 = vpop.f32.mrb[20].mxu0  ;;  %v5817_v16 = vld [vmem:[%s6364_s24 + $0xc0] sm:$0xff] }
 0x4bd   : > { %4736 = vst [vmem:[%s8447_s30 + $0x10] sm:$0xff] %v4704_v3  ;;  %v4720_v7 = vadd.f32 %v5805_v11, %v4440_v44  ;;  %v4479_v50 = vadd.f32 %v4478_v43, %v8736_v57  ;;  %v4480_v59 = vpop.f32.mrb[21].mxu0  ;;  %v5819_v44 = vld [vmem:[%s6364_s24 + $0x50] sm:$0xff] }
 0x4be   : > { %4737 = vst [vmem:[%s8447_s30 + $0x18] sm:$0xff] %v4705_v54  ;;  %v4721_v45 = vadd.f32 %v5806_v2, %v4442_v19  ;;  %v4481_v31 = vadd.f32 %v4480_v59, %v8736_v57  ;;  %v4482_v27 = vpop.f32.mrb[22].mxu0  ;;  %v5820_v19 = vld [vmem:[%s6364_s24 + $0x58] sm:$0xff] }
 0x4bf   : > { %4752 = vst [vmem:[%s8447_s30 + $0x90] sm:$0xff] %v4720_v7  ;;  %v4706_v24 = vadd.f32 %v5807_v38, %v4479_v50  ;;  %v4483_v42 = vadd.f32 %v4482_v27, %v8737_v5  ;;  %v4484_v15 = vpop.f32.mrb[23].mxu0  ;;  %v5821_v50 = vld [vmem:[%s6364_s24 + $0xd0] sm:$0xff] }
 0x4c0   : > { %4753 = vst [vmem:[%s8447_s30 + $0x98] sm:$0xff] %v4721_v45  ;;  %v4521_v29 = vpop.f32.mrb[20].mxu1  ;;  %v4707_v55 = vadd.f32 %v5808_v22, %v4481_v31  ;;  %v4485_v56 = vadd.f32 %v4484_v15, %v8737_v5  ;;  %v5822_v31 = vld [vmem:[%s6364_s24 + $0xd8] sm:$0xff] }
 0x4c1   : > { %4738 = vst [vmem:[%s8447_s30 + $0x20] sm:$0xff] %v4706_v24  ;;  %v4522_v12 = vadd.f32 %v4521_v29, %v8736_v57  ;;  %v4523_v9 = vpop.f32.mrb[21].mxu1  ;;  %v4722_v10 = vadd.f32 %v5809_v6, %v4483_v42  ;;  %v5823_v42 = vld [vmem:[%s6364_s24 + $0x60] sm:$0xff] }
 0x4c2   : > { %4739 = vst [vmem:[%s8447_s30 + $0x28] sm:$0xff] %v4707_v55  ;;  %v4524_v20 = vadd.f32 %v4523_v9, %v8736_v57  ;;  %v4525_v17 = vpop.f32.mrb[22].mxu1  ;;  %v4723_v34 = vadd.f32 %v5810_v47, %v4485_v56  ;;  %v5824_v56 = vld [vmem:[%s6364_s24 + $0x68] sm:$0xff] }
 0x4c3   : > { %v4708_v36 = vadd.f32 %v5811_v4, %v4522_v12  ;;  %4754 = vst [vmem:[%s8447_s30 + $0xa0] sm:$0xff] %v4722_v10  ;;  %v4526_v14 = vadd.f32 %v4525_v17, %v8737_v5  ;;  %v4527_v37 = vpop.f32.mrb[23].mxu1  ;;  %v5826_v4 = vld [vmem:[%s6364_s24 + $0xe8] sm:$0xff] }
 0x4c4   : > { %v4709_v25 = vadd.f32 %v5812_v26, %v4524_v20  ;;  %4755 = vst [vmem:[%s8447_s30 + $0xa8] sm:$0xff] %v4723_v34  ;;  %v4528_v21 = vadd.f32 %v4527_v37, %v8737_v5  ;;  %v4564_v60 = vpop.f32.mrb[24].mxu0  ;;  %v5825_v20 = vld [vmem:[%s6364_s24 + $0xe0] sm:$0xff] }
 0x4c5   : > { %4740 = vst [vmem:[%s8447_s30 + $0x30] sm:$0xff] %v4708_v36  ;;  %v4724_v40 = vadd.f32 %v5813_v46, %v4526_v14  ;;  %v4565_v23 = vadd.f32 %v4564_v60, %v8736_v57  ;;  %v4566_v0 = vpop.f32.mrb[25].mxu0  ;;  %v5827_v14 = vld [vmem:[%s6364_s24 + $0x70] sm:$0xff] }
 0x4c6   : > { %4741 = vst [vmem:[%s8447_s30 + $0x38] sm:$0xff] %v4709_v25  ;;  %v4725_v28 = vadd.f32 %v5814_v39, %v4528_v21  ;;  %v4567_v35 = vadd.f32 %v4566_v0, %v8736_v57  ;;  %v4568_v53 = vpop.f32.mrb[26].mxu0  ;;  %v5828_v21 = vld [vmem:[%s6364_s24 + $0x78] sm:$0xff]  ;;  %v5829_v46 = vld [vmem:[%s6364_s24 + $0xf0] sm:$0xff] }
 0x4c7   : > { %4756 = vst [vmem:[%s8447_s30 + $0xb0] sm:$0xff] %v4724_v40  ;;  %v4710_v58 = vadd.f32 %v5815_v41, %v4565_v23  ;;  %v4569_v51 = vadd.f32 %v4568_v53, %v8737_v5  ;;  %v4570_v62 = vpop.f32.mrb[27].mxu0  ;;  %v5830_v23 = vld [vmem:[%s6364_s24 + $0xf8] sm:$0xff] }
 0x4c8   : > { %4757 = vst [vmem:[%s8447_s30 + $0xb8] sm:$0xff] %v4725_v28  ;;  %v4607_v63 = vpop.f32.mrb[24].mxu1  ;;  %v4711_v18 = vadd.f32 %v5816_v13, %v4567_v35  ;;  %v4571_v32 = vadd.f32 %v4570_v62, %v8737_v5 }
 0x4c9   : > { %4742 = vst [vmem:[%s8447_s30 + $0x40] sm:$0xff] %v4710_v58  ;;  %v4608_v49 = vadd.f32 %v4607_v63, %v8736_v57  ;;  %v4609_v1 = vpop.f32.mrb[25].mxu1  ;;  %v4726_v30 = vadd.f32 %v5817_v16, %v4569_v51 }
 0x4ca   : > { %4743 = vst [vmem:[%s8447_s30 + $0x48] sm:$0xff] %v4711_v18  ;;  %v4610_v61 = vadd.f32 %v4609_v1, %v8736_v57  ;;  %v4611_v33 = vpop.f32.mrb[26].mxu1  ;;  %v4727_v3 = vadd.f32 %v5818_v48, %v4571_v32 }
 0x4cb   : > { %v4712_v8 = vadd.f32 %v5819_v44, %v4608_v49  ;;  %4758 = vst [vmem:[%s8447_s30 + $0xc0] sm:$0xff] %v4726_v30  ;;  %v4612_v52 = vadd.f32 %v4611_v33, %v8737_v5  ;;  %v4613_v54 = vpop.f32.mrb[27].mxu1 }
 0x4cc   : > { %v4713_v43 = vadd.f32 %v5820_v19, %v4610_v61  ;;  %4759 = vst [vmem:[%s8447_s30 + $0xc8] sm:$0xff] %v4727_v3  ;;  %v4614_v11 = vadd.f32 %v4613_v54, %v8737_v5  ;;  %v4650_v7 = vpop.f32.mrb[28].mxu0 }
 0x4cd   : > { %4744 = vst [vmem:[%s8447_s30 + $0x50] sm:$0xff] %v4712_v8  ;;  %v4728_v59 = vadd.f32 %v5821_v50, %v4612_v52  ;;  %v4651_v2 = vadd.f32 %v4650_v7, %v8736_v57  ;;  %v4652_v45 = vpop.f32.mrb[29].mxu0 }
 0x4ce   : > { %4745 = vst [vmem:[%s8447_s30 + $0x58] sm:$0xff] %v4713_v43  ;;  %v4729_v27 = vadd.f32 %v5822_v31, %v4614_v11  ;;  %v4653_v38 = vadd.f32 %v4652_v45, %v8736_v57  ;;  %v4654_v24 = vpop.f32.mrb[30].mxu0 }
 0x4cf   : > { %4760 = vst [vmem:[%s8447_s30 + $0xd0] sm:$0xff] %v4728_v59  ;;  %v4714_v15 = vadd.f32 %v5823_v42, %v4651_v2  ;;  %v4655_v29 = vadd.f32 %v4654_v24, %v8737_v5  ;;  %v4656_v22 = vpop.f32.mrb[31].mxu0 }
 0x4d0   : > { %4761 = vst [vmem:[%s8447_s30 + $0xd8] sm:$0xff] %v4729_v27  ;;  %v4693_v55 = vpop.f32.mrb[28].mxu1  ;;  %v4715_v12 = vadd.f32 %v5824_v56, %v4653_v38  ;;  %v4657_v9 = vadd.f32 %v4656_v22, %v8737_v5 }
 0x4d1   : > { %4746 = vst [vmem:[%s8447_s30 + $0x60] sm:$0xff] %v4714_v15  ;;  %v4694_v6 = vadd.f32 %v4693_v55, %v8736_v57  ;;  %v4695_v10 = vpop.f32.mrb[29].mxu1  ;;  %v4730_v17 = vadd.f32 %v5825_v20, %v4655_v29 }
 0x4d2   : > { %4747 = vst [vmem:[%s8447_s30 + $0x68] sm:$0xff] %v4715_v12  ;;  %v4696_v47 = vadd.f32 %v4695_v10, %v8736_v57  ;;  %v4697_v34 = vpop.f32.mrb[30].mxu1  ;;  %v4731_v36 = vadd.f32 %v5826_v4, %v4657_v9  ;;  %4778 = sbr.rel (!%p8739_p8) target bundleno = 1274 (0x4fa), region = 126 }
 0x4d3   : > { %v4716_v37 = vadd.f32 %v5827_v14, %v4694_v6  ;;  %4762 = vst [vmem:[%s8447_s30 + $0xe0] sm:$0xff] %v4730_v17  ;;  %v4698_v26 = vadd.f32 %v4697_v34, %v8737_v5  ;;  %v4699_v25 = vpop.f32.mrb[31].mxu1 }
 0x4d4   : > { %v4717_v60 = vadd.f32 %v5828_v21, %v4696_v47  ;;  %4763 = vst [vmem:[%s8447_s30 + $0xe8] sm:$0xff] %v4731_v36  ;;  %v4700_v57 = vadd.f32 %v4699_v25, %v8737_v5 }
 0x4d5   : > { %4748 = vst [vmem:[%s8447_s30 + $0x70] sm:$0xff] %v4716_v37  ;;  %v4732_v40 = vadd.f32 %v5829_v46, %v4698_v26 }
 0x4d6   : > { %4749 = vst [vmem:[%s8447_s30 + $0x78] sm:$0xff] %v4717_v60  ;;  %v4733_v0 = vadd.f32 %v5830_v23, %v4700_v57 }
 0x4d7   : > { %4764 = vst [vmem:[%s8447_s30 + $0xf0] sm:$0xff] %v4732_v40 }
 0x4d8   : > { %4765 = vst [vmem:[%s8447_s30 + $0xf8] sm:$0xff] %v4733_v0 }
 0x4d9   : > { %s8778_s9 = smov (!%p4781_p12, %s4780_s9), 16 }
 0x4da   : > { %s8547_s8 = sshll.u32 %s8778_s9, 8 }
 0x4db   : > { %s4785_s24 = ssub.s32 4096, %s8547_s8 }
 0x4dc   : > { %4786 = vsyncadd %s4767_s22, %s4785_s24  ;;  %s8741_s12 = sld [smem:[#allocation14_spill]]  ;;  %p5298_p1 = scmp.ne.s32.totalorder %s8547_s8, 0 }
 0x4dd   : > { %s5300_s26 = sshll.u32 %s8778_s9, 3  ;;  %s4794_s21 = sshll.u32 %s8447_s30, 4  ;;  %s8556_s21 = int_to_ptr.vmem [resolvable:$true] %s4794_s21 }
 0x4de   : > { %s8742_s23 = sld [smem:[#allocation32_spill]]  ;;  %s5859_s24 = scalar_lea.vmem %s8556_s21, %s8547_s8 }
 0x4df   : > { %p5860_p5 = scmp.ne.s32.totalorder %s8556_s21, %s5859_s24 }
 0x4e1   : > { %p5861_p11 = pnand %p5860_p5, %p5298_p1 }
 0x4e2   : > { %s5356_s13 = smul.u32 38, %s8741_s12  ;;  %s6093_s12 = smov [#allocation6]  }
 0x4e3   : > { %p5862_p13 = pneg %p5861_p11  ;;  %s5863_s28 = sshll.u32 %s6093_s12, 4  ;;  %s5864_s28 = int_to_ptr.vmem [resolvable:$false] %s5863_s28 }
 0x4e4   : > { %s4789_s18 = sadd.s32 %s5356_s13, %s5296_s20  ;;  %s5865_s30 = scalar_lea.vmem %s5864_s28, 8192 }
 0x4e5   : > { %s5299_s27 = sshll.u32 %s4789_s18, 7  ;;  %p5866_p0 = scmp.lt.s32.totalorder %s8556_s21, %s5864_s28 }
 0x4e6   : > { %s8561_s17 = scalar_lea.hbm %s8742_s23, %s5299_s27  ;;  %p5867_p2 = scmp.lt.s32.totalorder %s5865_s30, %s5859_s24 }
 0x4e8   : > { %p5868_p4 = por %p5867_p2, %p5866_p0 }
 0x4ea   : > { %p5869_p6 = pnand %p5868_p4, %p5862_p13 }
 0x4ec   : > { %5872 = shalt.err (!%p5869_p6)
}
 0x4ed   : > { %s5873_s20 = scalar_lea.hbm %s8561_s17, %s8547_s8  ;;  %s5877_s27 = scalar_lea.hbm %s8742_s23, 9728 }
 0x4ee   : > { %p5874_p7 = scmp.ne.s32.totalorder %s8561_s17, %s5873_s20  ;;  %p5878_p3 = scmp.lt.u32.totalorder %s8561_s17, %s8742_s23 }
 0x4ef   : > { %p5879_p8 = scmp.lt.u32.totalorder %s5877_s27, %s5873_s20  ;;  %p5881_p5 = scmp.lt.u32.totalorder %s5873_s20, %s8561_s17 }
 0x4f0   : > { %p5875_p10 = pnand %p5874_p7, %p5298_p1 }
 0x4f1   : > { %p5880_p12 = por %p5879_p8, %p5878_p3 }
 0x4f2   : > { %p5876_p9 = pneg %p5875_p10 }
 0x4f3   : > { %p5882_p11 = por %p5881_p5, %p5880_p12 }
 0x4f5   : > { %p5883_p13 = pnand %p5882_p11, %p5876_p9 }
 0x4f7   : > { %5886 = shalt.err (!%p5883_p13)
}
 0x4f8   : > { %s6094_s29 = smov 2048   ;;  %s6095_s24 = smov 2432  }
 0x4f9   : > { %4800 = dma.vmem_to_hbm [thread:$0]  (%p5298_p1), %s8556_s21, %s8547_s8, %s8561_s17, %s4767_s22, %s6094_s29, %s6095_s24, %s5300_s26  }
 0x4fa PF: > { %s8743_s12 = sld [smem:[#allocation17_spill]] }
 0x500   : > { %p8744_p0 = scmp.ne.s32.totalorder %s8743_s12, 0 }
 0x501   : > { %s8745_s30 = sld [smem:[#allocation13_spill]] (%p8744_p0)  ;;  %s8746_s28 = scalar_lea.sflag (%p8744_p0), [#allocation8], %s6346_s25 }
 0x502   : > { %4803 = sbr.rel (!%p8744_p0) target bundleno = 1322 (0x52a), region = 130 }
 0x507   : > { %s5303_s20 = sshll.u32 (%p8744_p0), %s8745_s30, 4 }
 0x508   : > { %s4805_s13 = ssub.s32 (%p8744_p0), 19, %s5303_s20 }
 0x509   : > { %p4806_p2 = scmp.lt.s32.totalorder %s4805_s13, 16 }
 0x50b   : > { %s8780_s13 = smov (!%p4806_p2, %s4805_s13), 16 }
 0x50c   : > { %s8597_s18 = sshll.u32 %s8780_s13, 12 }
 0x50d   : > { %s4810_s27 = ssub.s32 65536, %s8597_s18 }
 0x50e   : > { %4811 = vsyncadd %s8746_s28, %s4810_s27  ;;  %s8747_s22 = sld [smem:[#allocation14_spill]]  ;;  %p5305_p1 = scmp.ne.s32.totalorder %s8597_s18, 0 }
 0x50f   : > { %s5307_s8 = sshll.u32 %s8780_s13, 3  ;;  %s4819_s26 = sshll.u32 %s7007_s0, 4  ;;  %s8606_s26 = int_to_ptr.vmem [resolvable:$true] %s4819_s26 }
 0x510   : > { %s8748_s24 = sld [smem:[#allocation33_spill]]  ;;  %s5887_s30 = scalar_lea.vmem %s8606_s26, %s8597_s18 }
 0x511   : > { %p5888_p4 = scmp.ne.s32.totalorder %s8606_s26, %s5887_s30  ;;  %s6096_s27 = smov [#allocation7]  }
 0x512   : > { %s5891_s28 = sshll.u32 %s6096_s27, 4  ;;  %s5892_s28 = int_to_ptr.vmem [resolvable:$false] %s5891_s28 }
 0x513   : > { %p5889_p6 = pnand %p5888_p4, %p5305_p1  ;;  %s5893_s0 = scalar_lea.vmem %s5892_s28, 131072 }
 0x514   : > { %s5357_s9 = smul.u32 608, %s8747_s22  ;;  %p5894_p10 = scmp.lt.s32.totalorder %s8606_s26, %s5892_s28 }
 0x515   : > { %p5890_p7 = pneg %p5889_p6  ;;  %p5895_p9 = scmp.lt.s32.totalorder %s5893_s0, %s5887_s30 }
 0x516   : > { %s4814_s21 = sadd.s32 %s5357_s9, %s5303_s20 }
 0x517   : > { %s5306_s17 = sshll.u32 %s4814_s21, 7  ;;  %p5896_p3 = por %p5895_p9, %p5894_p10 }
 0x518   : > { %s8611_s12 = scalar_lea.hbm %s8748_s24, %s5306_s17 }
 0x519   : > { %p5897_p8 = pnand %p5896_p3, %p5890_p7 }
 0x51b   : > { %5900 = shalt.err (!%p5897_p8)
}
 0x51c   : > { %s5901_s20 = scalar_lea.hbm %s8611_s12, %s8597_s18  ;;  %s5905_s21 = scalar_lea.hbm %s8748_s24, 155648 }
 0x51d   : > { %p5902_p12 = scmp.ne.s32.totalorder %s8611_s12, %s5901_s20  ;;  %p5906_p13 = scmp.lt.u32.totalorder %s8611_s12, %s8748_s24 }
 0x51e   : > { %p5907_p0 = scmp.lt.u32.totalorder %s5905_s21, %s5901_s20  ;;  %p5909_p4 = scmp.lt.u32.totalorder %s5901_s20, %s8611_s12 }
 0x51f   : > { %p5903_p5 = pnand %p5902_p12, %p5305_p1 }
 0x520   : > { %p5908_p2 = por %p5907_p0, %p5906_p13 }
 0x521   : > { %p5904_p11 = pneg %p5903_p5 }
 0x522   : > { %p5910_p6 = por %p5909_p4, %p5908_p2 }
 0x524   : > { %p5911_p7 = pnand %p5910_p6, %p5904_p11 }
 0x526   : > { %5914 = shalt.err (!%p5911_p7)
}
 0x527   : > { %s6097_s29 = smov 2048   ;;  %s6098_s30 = smov 2432  }
 0x528   : > { %s8749_s27 = scalar_lea.sflag [#allocation8], %s6346_s25 }
 0x529   : > { %4825 = dma.vmem_to_hbm [thread:$0]  (%p5305_p1), %s8606_s26, %s8597_s18, %s8611_s12, %s8749_s27, %s6097_s29, %s6098_s30, %s5307_s8  }
 0x52a PF: > { %s8750_s28 = sld [smem:[#allocation12_spill]]  ;;  %s8751_s0 = sld [smem:[#allocation18_spill]] }
 0x52b   : > { %p5368_p10 = scmp.ge.s32.totalorder %s6053_s16, 2 }
 0x530   : > { %s4834_s20 = sand.u32 1, %s8750_s28   ;;  %p8752_p9 = scmp.ne.s32.totalorder %s8751_s0, 0 }
 0x531   : > { %s4835_s22 = scalar_lea.sflag [#allocation4], %s4834_s20 }
 0x532   : > { %p5362_p3 = pnand %p5368_p10, %p8752_p9 }
 0x534   : > { %6016 = dma.done.wait (!%p5362_p3), %s4835_s22, 4096  }
 0x535   : > { %6018 = vsyncadd (!%p5362_p3), %s4835_s22, 4294963200  ;;  %s4844_s9 = scalar_lea.sflag [#allocation8], %s4834_s20 }
 0x536   : > { %6020 = dma.done.wait (!%p5362_p3), %s4844_s9, 65536  }
 0x537   : > { %6022 = vsyncadd (!%p5362_p3), %s4844_s9, 4294901760  ;;  %s29_s16 = sadd.s32 1, %s6053_s16   ;;  %s8753_s25 = sld [smem:[#allocation19_spill]] }
 0x538   : > { %p26_p8 = scmp.ge.s32.totalorder %s29_s16, 6   ;;  %s8754_s18 = sld [smem:[#allocation15_spill]] }
 0x539   : > { %s8755_s8 = sld [smem:[#allocation16_spill]]  ;;  %s8756_s30 = smov %s6029_s10 }
 0x53a   : > { %s8757_s10 = smov %s6033_s11  ;;  %s8759_s12 = smov %s6045_s14 }
 0x53b   : > { %s8760_s13 = smov %s6049_s15  ;;  %28 = sbr.rel (!%p26_p8) target bundleno = 13 (0xd), region = 250 }
 0x53d   : > { %s8758_s11 = smov %s8753_s25 }
 0x53e   : > { %s8761_s14 = smov %s8754_s18 }
 0x53f   : > { %s8762_s15 = smov %s8755_s8 }
 0x542   :  { %4849 = vsyncpa [#allocation3], 1 }
 0x543   :  { %4851 = vsyncpa [#allocation3 + $0x1], 1 }
 0x544   :  { %4852 = vsyncpa [#allocation4], 1 }
 0x545   :  { %4854 = vsyncpa [#allocation4 + $0x1], 1 }
 0x546   :  { %4855 = vsyncpa [#allocation8], 1 }
 0x547   :  { %4857 = vsyncpa [#allocation8 + $0x1], 1 }

</bundles_post_ra>
